<compile_context>
chip_gen: v7x
topology: tpu7x:2x2x1
jax: 0.10.0
libtpu: 0.0.40
codegen_flags: <defaults>
</compile_context>

<pallas_src>
import functools

import jax
import jax.numpy as jnp
from jax import lax
from jax.experimental import pallas as pl
from jax.experimental.pallas import tpu as pltpu


def _round_up(x, m):
    return (x + m - 1) // m * m


# ----------------------------------------------------------------------------
# Pallas kernel 1: lane-dense conv matmul with fused bias / act / residual
# ----------------------------------------------------------------------------
def _conv_mm_kernel(*refs, act, has_res):
    """o(Coutp, TM) = act(w(Coutp, K) @ cols(K, TM) + b(Coutp, 1)) [+ res(Coutp, TM)]."""
    if has_res:
        w_ref, c_ref, b_ref, r_ref, o_ref = refs
    else:
        w_ref, c_ref, b_ref, o_ref = refs
        r_ref = None
    # bf16 inputs, f32 accumulation on the MXU.
    y = jnp.dot(w_ref[...], c_ref[...], preferred_element_type=jnp.float32)
    y = y + b_ref[...]                       # (Coutp, 1) broadcast over lanes
    if act == "leaky":
        y = jnp.where(y >= 0, y, 0.2 * y)    # LeakyReLU(0.2)
    elif act == "tanh":
        y = jnp.tanh(y)
    if has_res:
        y = y + r_ref[...]                   # fused ResBlock residual add
    o_ref[...] = y.astype(o_ref.dtype)


def _im2col_cm(x_cm, k, stride, pad):
    """Channel-major im2col: (C,N,D,H,W) -> cols (k^3*C, N*Do*Ho*Wo); K order (tap, c)."""
    C, N, D, H, W = x_cm.shape
    xp = jnp.pad(x_cm, ((0, 0), (0, 0), (pad, pad), (pad, pad), (pad, pad)))
    Do = (D + 2 * pad - k) // stride + 1
    Ho = (H + 2 * pad - k) // stride + 1
    Wo = (W + 2 * pad - k) // stride + 1
    M = N * Do * Ho * Wo
    slabs = []
    for kd in range(k):
        for kh in range(k):
            for kw in range(k):
                s = xp[:, :,
                       kd:kd + stride * Do:stride,
                       kh:kh + stride * Ho:stride,
                       kw:kw + stride * Wo:stride]
                slabs.append(s.reshape(C, M))
    cols = jnp.concatenate(slabs, axis=0)    # (k^3*C, M), no big transpose pass
    return cols, (Do, Ho, Wo)


def conv3d_cm(x_cm, w, b, *, stride, pad, act="none", residual_cm=None):
    """PyTorch-semantics Conv3d on channel-major activations, fused bias+act[+residual].

    x_cm: (Cin, N, D, H, W); w: torch layout (Cout, Cin, k, k, k); b: (Cout,)
    returns (Cout, N, Do, Ho, Wo)
    """
    Cin, N, D, H, W = x_cm.shape
    Cout, Cin_w, k, _, _ = w.shape
    assert Cin == Cin_w

    cols, (Do, Ho, Wo) = _im2col_cm(x_cm, k, stride, pad)
    K, M = cols.shape

    # M tiling: lane-dense tiles, multiple of 128; 512 rows already ~85% of HBM
    # roofline and stays well inside v7x's 64 MiB VMEM even double-buffered.
    TM = min(512, _round_up(M, 128))
    Mp = _round_up(M, TM)
    Coutp = _round_up(Cout, 8)               # full sublane groups in the output block

    cols = jnp.pad(cols, ((0, 0), (0, Mp - M))).astype(jnp.bfloat16)
    w2 = w.transpose(0, 2, 3, 4, 1).reshape(Cout, K)          # K order (tap, cin)
    w2 = jnp.pad(w2, ((0, Coutp - Cout), (0, 0))).astype(jnp.bfloat16)
    b2 = jnp.pad(b.reshape(Cout, 1), ((0, Coutp - Cout), (0, 0))).astype(jnp.float32)

    inputs = [w2, cols, b2]
    in_specs = [
        pl.BlockSpec((Coutp, K), lambda i: (0, 0)),     # weights resident across grid
        pl.BlockSpec((K, TM), lambda i: (0, i)),        # streamed, lane-dense
        pl.BlockSpec((Coutp, 1), lambda i: (0, 0)),
    ]
    has_res = residual_cm is not None
    if has_res:
        r = residual_cm.reshape(Cout, M)
        r = jnp.pad(r, ((0, Coutp - Cout), (0, Mp - M))).astype(jnp.float32)
        inputs.append(r)
        in_specs.append(pl.BlockSpec((Coutp, TM), lambda i: (0, i)))

    kernel = functools.partial(_conv_mm_kernel, act=act, has_res=has_res)
    out = pl.pallas_call(
        kernel,
        out_shape=jax.ShapeDtypeStruct((Coutp, Mp), jnp.float32),
        grid=(Mp // TM,),
        in_specs=in_specs,
        out_specs=pl.BlockSpec((Coutp, TM), lambda i: (0, i)),
        compiler_params=pltpu.CompilerParams(
            dimension_semantics=("parallel",),          # shards M across TCs on v7x
            vmem_limit_bytes=32 * 1024 * 1024,
        ),
    )(*inputs)
    return out[:Cout, :M].reshape(Cout, N, Do, Ho, Wo)


# ----------------------------------------------------------------------------
# Pallas kernel 2: AdaIN (instance norm + style affine) + LeakyReLU(0.2), tiled rows
# ----------------------------------------------------------------------------
def _adain_lrelu_kernel(x_ref, g_ref, b_ref, o_ref):
    """Per-row instance norm (biased var, eps=1e-5) + style affine + LeakyReLU(0.2)."""
    x = x_ref[...]
    mean = jnp.mean(x, axis=-1, keepdims=True)
    var = jnp.mean(jnp.square(x - mean), axis=-1, keepdims=True)
    xn = (x - mean) * lax.rsqrt(var + 1e-5)
    y = g_ref[...] * xn + b_ref[...]
    o_ref[...] = jnp.where(y >= 0, y, 0.2 * y)


def adain_lrelu_cm(x_cm, gamma, beta):
    # x_cm: (C, N, D, H, W); gamma/beta: (N, C)
    # TODO(synk): for very large D*H*W, switch to streamed sum/sumsq stats over an
    #             S grid axis instead of a full-S block.
    C, N, D, H, W = x_cm.shape
    S = D * H * W
    R = C * N
    xr = x_cm.reshape(R, S).astype(jnp.float32)
    g = jnp.transpose(gamma, (1, 0)).reshape(R, 1).astype(jnp.float32)
    b = jnp.transpose(beta, (1, 0)).reshape(R, 1).astype(jnp.float32)

    TR = min(256, _round_up(R, 8))
    Rp = _round_up(R, TR)
    if Rp != R:
        xr = jnp.pad(xr, ((0, Rp - R), (0, 0)))
        g = jnp.pad(g, ((0, Rp - R), (0, 0)))
        b = jnp.pad(b, ((0, Rp - R), (0, 0)))

    y = pl.pallas_call(
        _adain_lrelu_kernel,
        out_shape=jax.ShapeDtypeStruct((Rp, S), jnp.float32),
        grid=(Rp // TR,),
        in_specs=[pl.BlockSpec((TR, S), lambda i: (i, 0)),
                  pl.BlockSpec((TR, 1), lambda i: (i, 0)),
                  pl.BlockSpec((TR, 1), lambda i: (i, 0))],
        out_specs=pl.BlockSpec((TR, S), lambda i: (i, 0)),
        compiler_params=pltpu.CompilerParams(
            dimension_semantics=("parallel",),
            vmem_limit_bytes=32 * 1024 * 1024,
        ),
    )(xr, g, b)
    return y[:R].reshape(C, N, D, H, W)


# ----------------------------------------------------------------------------
# jnp glue: LeakyReLU, gather-free x2 trilinear upsample (align_corners=False)
# ----------------------------------------------------------------------------
def _leaky(x):
    return jnp.where(x >= 0, x, 0.2 * x)


def _upsample_axis_x2(x, axis):
    """Half-pixel-center linear interp == nn.Upsample(mode='trilinear', align_corners=False),
    implemented with clamp-shift slices + interleave (no gathers)."""
    n = x.shape[axis]

    def shift(arr, d):
        if d < 0:   # previous element, clamped at the left edge
            lead = lax.slice_in_dim(arr, 0, 1, axis=axis)
            body = lax.slice_in_dim(arr, 0, n - 1, axis=axis)
            return jnp.concatenate([lead, body], axis=axis)
        else:       # next element, clamped at the right edge
            body = lax.slice_in_dim(arr, 1, n, axis=axis)
            tail = lax.slice_in_dim(arr, n - 1, n, axis=axis)
            return jnp.concatenate([body, tail], axis=axis)

    even = 0.75 * x + 0.25 * shift(x, -1)    # out[2i]   = 0.25*x[i-1] + 0.75*x[i]
    odd = 0.75 * x + 0.25 * shift(x, +1)     # out[2i+1] = 0.75*x[i]   + 0.25*x[i+1]
    y = jnp.stack([even, odd], axis=axis + 1)
    new_shape = list(x.shape)
    new_shape[axis] = 2 * n
    return y.reshape(new_shape)


def trilinear_upsample_x2_cm(x_cm):
    # channel-major (C, N, D, H, W): spatial axes are 2, 3, 4
    for ax in (2, 3, 4):
        x_cm = _upsample_axis_x2(x_cm, ax)
    return x_cm


# ----------------------------------------------------------------------------
# Parameters (deterministic synthetic init, torch weight layouts) + forward
# ----------------------------------------------------------------------------
def init_params(key, nf, style_dim):
    keys = iter(jax.random.split(key, 40))
    w = lambda shape, s=0.05: s * jax.random.normal(next(keys), shape, dtype=jnp.float32)
    p = {}
    # style MLP: Linear(style_dim, style_dim) x2   (torch weight layout (out, in))
    p["mlp_w1"], p["mlp_b1"] = w((style_dim, style_dim)), w((style_dim,))
    p["mlp_w2"], p["mlp_b2"] = w((style_dim, style_dim)), w((style_dim,))
    # init_layer: Conv3d(1, nf, 7, padding=3)
    p["init_w"], p["init_b"] = w((nf, 1, 7, 7, 7)), w((nf,))
    # content encoder: 2x ConvBlockDown (nf->2nf, 2nf->2nf), 2x ResBlock(2nf)
    p["down1_w"], p["down1_b"] = w((2 * nf, nf, 3, 3, 3)), w((2 * nf,))
    p["down2_w"], p["down2_b"] = w((2 * nf, 2 * nf, 3, 3, 3)), w((2 * nf,))
    for name in ("res1", "res2"):
        p[f"{name}_w1"], p[f"{name}_b1"] = w((2 * nf, 2 * nf, 3, 3, 3)), w((2 * nf,))
        p[f"{name}_w2"], p[f"{name}_b2"] = w((2 * nf, 2 * nf, 3, 3, 3)), w((2 * nf,))
    # style decoder: ConvAdaInBlock(2nf->2nf), (2nf->2nf), (2nf->nf)
    dec_io = [(2 * nf, 2 * nf), (2 * nf, 2 * nf), (2 * nf, nf)]
    for i, (cin, cout) in enumerate(dec_io):
        p[f"dec{i}_w"], p[f"dec{i}_b"] = w((cout, cin, 3, 3, 3)), w((cout,))
        p[f"dec{i}_sw"], p[f"dec{i}_sb"] = w((2 * cout, style_dim)), w((2 * cout,))
    # final_layer: Conv3d(nf, 1, 3, padding=1)
    p["final_w"], p["final_b"] = w((1, nf, 3, 3, 3)), w((1,))
    return p


def appearance_model_style_forward(params, x, style):
    # --- style MLP (tiny -> plain jnp): (Linear -> LeakyReLU(0.2)) x2 ---
    s = _leaky(style @ params["mlp_w1"].T + params["mlp_b1"])
    s = _leaky(s @ params["mlp_w2"].T + params["mlp_b2"])

    # NCDHW (N, 1, D, H, W) -> channel-major (1, N, D, H, W)
    x_cm = jnp.transpose(x, (1, 0, 2, 3, 4))

    # --- init conv; `residual = x` in the reference is never consumed, and the content
    #     encoder starts with LeakyReLU(0.2), so the activation is fused here.
    x_cm = conv3d_cm(x_cm, params["init_w"], params["init_b"], stride=1, pad=3, act="leaky")

    # --- content encoder ---
    # TODO(synk): ConvBlockDown assumed = Conv3d(k=3, stride=2, pad=1) + LeakyReLU(0.2).
    x_cm = conv3d_cm(x_cm, params["down1_w"], params["down1_b"], stride=2, pad=1, act="leaky")
    x_cm = conv3d_cm(x_cm, params["down2_w"], params["down2_b"], stride=2, pad=1, act="leaky")
    # TODO(synk): ResBlock assumed = x + conv(lrelu(conv(x))), 3x3x3, stride 1.
    for name in ("res1", "res2"):
        y = conv3d_cm(x_cm, params[f"{name}_w1"], params[f"{name}_b1"],
                      stride=1, pad=1, act="leaky")
        # residual add fused into the second conv's epilogue (saves an HBM round-trip)
        x_cm = conv3d_cm(y, params[f"{name}_w2"], params[f"{name}_b2"],
                         stride=1, pad=1, act="none", residual_cm=x_cm)

    # --- style decoder ---
    # TODO(synk): ConvAdaInBlock assumed = Conv3d(k=3,s=1,p=1) -> AdaIN(style) -> LeakyReLU(0.2),
    #             with gamma/beta = Linear(style_dim, 2*C)(style).chunk(2, dim=1).
    for i in range(3):
        x_cm = conv3d_cm(x_cm, params[f"dec{i}_w"], params[f"dec{i}_b"],
                         stride=1, pad=1, act="none")
        gb = s @ params[f"dec{i}_sw"].T + params[f"dec{i}_sb"]    # tiny -> plain jnp
        c = x_cm.shape[0]
        gamma, beta = gb[:, :c], gb[:, c:]
        x_cm = adain_lrelu_cm(x_cm, gamma, beta)
        if i < 2:
            x_cm = trilinear_upsample_x2_cm(x_cm)   # nn.Upsample(2, 'trilinear')

    # --- final conv + tanh (fused) ---
    x_cm = conv3d_cm(x_cm, params["final_w"], params["final_b"], stride=1, pad=1, act="tanh")

    # channel-major (1, N, D, H, W) -> NCDHW (N, 1, D, H, W)
    return jnp.transpose(x_cm, (1, 0, 2, 3, 4))


if __name__ == "__main__":
    nf, style_dim = 4, 8
    key = jax.random.PRNGKey(0)
    pkey, xkey, skey = jax.random.split(key, 3)

    params = init_params(pkey, nf, style_dim)
    # Conv3d(1, nf, ...) => single-channel volumetric input, NCDHW.
    x = jax.random.normal(xkey, (2, 1, 16, 16, 16), dtype=jnp.float32)
    style = jax.random.normal(skey, (2, style_dim), dtype=jnp.float32)

    fwd = jax.jit(functools.partial(appearance_model_style_forward, params))
    out = fwd(x, style)
    jax.block_until_ready(out)
    assert out.shape == (2, 1, 16, 16, 16)
    assert bool(jnp.all(jnp.isfinite(out)))
    print("KERNEL_OK")
</pallas_src>

<mosaic_0001>
module attributes {stable_mosaic.version = 11 : i64} {
  func.func @_conv_mm_kernel(%arg0: i32, %arg1: memref<8x343xbf16, #tpu.memory_space<vmem>>, %arg2: memref<343x512xbf16, #tpu.memory_space<vmem>>, %arg3: memref<8x1xf32, #tpu.memory_space<vmem>>, %arg4: memref<8x512xf32, #tpu.memory_space<vmem>>) attributes {dimension_semantics = [#tpu.dimension_semantics<parallel>], iteration_bounds = array<i64: 16>, scalar_prefetch = 0 : i64, scratch_operands = 0 : i64, tpu.core_type = #tpu.core_type<tc>, window_params = [{pipeline_mode = #tpu.pipeline_mode<synchronous>, transform_indices = @transform_0, window_bounds = array<i64: 8, 343>}, {transform_indices = @transform_1, window_bounds = array<i64: 343, 512>}, {pipeline_mode = #tpu.pipeline_mode<synchronous>, transform_indices = @transform_2, window_bounds = array<i64: 8, 1>}, {transform_indices = @transform_3, window_bounds = array<i64: 8, 512>}]} {
    %c0 = arith.constant 0 : index
    %c0_0 = arith.constant 0 : index
    %0 = vector.load %arg1[%c0, %c0_0] : memref<8x343xbf16, #tpu.memory_space<vmem>>, vector<8x343xbf16>
    %c0_1 = arith.constant 0 : index
    %c0_2 = arith.constant 0 : index
    %1 = vector.load %arg2[%c0_1, %c0_2] : memref<343x512xbf16, #tpu.memory_space<vmem>>, vector<343x512xbf16>
    %cst = arith.constant dense<0.000000e+00> : vector<8x512xf32>
    %2 = tpu.matmul %0, %1, %cst {dimension_numbers = #tpu.dot_dimension_numbers<[1], [0], [0], [1], [0, 0, 1, 1], [], []>} : vector<8x343xbf16>, vector<343x512xbf16>, vector<8x512xf32> -> vector<8x512xf32>
    %c0_3 = arith.constant 0 : index
    %c0_4 = arith.constant 0 : index
    %3 = vector.load %arg3[%c0_3, %c0_4] : memref<8x1xf32, #tpu.memory_space<vmem>>, vector<8x1xf32>
    %4 = vector.broadcast %3 : vector<8x1xf32> to vector<8x512xf32>
    %5 = arith.addf %2, %4 : vector<8x512xf32>
    %cst_5 = arith.constant 0.000000e+00 : f32
    %6 = vector.broadcast %cst_5 : f32 to vector<8x512xf32>
    %7 = arith.cmpf oge, %5, %6 : vector<8x512xf32>
    %cst_6 = arith.constant 2.000000e-01 : f32
    %8 = vector.broadcast %cst_6 : f32 to vector<8x512xf32>
    %9 = arith.mulf %8, %5 : vector<8x512xf32>
    %10 = arith.select %7, %5, %9 : vector<8x512xi1>, vector<8x512xf32>
    %c0_7 = arith.constant 0 : index
    %c0_8 = arith.constant 0 : index
    %11 = vector.load %arg4[%c0_7, %c0_8] : memref<8x512xf32, #tpu.memory_space<vmem>>, vector<8x512xf32>
    tpu.vector_store %arg4[%c0_7, %c0_8], %10 {strides = array<i32>} : memref<8x512xf32, #tpu.memory_space<vmem>>, vector<8x512xf32>,
    return
  }
  func.func @transform_0(%arg0: i32) -> (i32, i32) {
    %c0_i32 = arith.constant 0 : i32
    %c0_i32_0 = arith.constant 0 : i32
    %c0_i32_1 = arith.constant 0 : i32
    return %c0_i32, %c0_i32_0 : i32, i32
  }
  func.func @transform_1(%arg0: i32) -> (i32, i32) {
    %c0_i32 = arith.constant 0 : i32
    %c0_i32_0 = arith.constant 0 : i32
    return %c0_i32, %arg0 : i32, i32
  }
  func.func @transform_2(%arg0: i32) -> (i32, i32) {
    %c0_i32 = arith.constant 0 : i32
    %c0_i32_0 = arith.constant 0 : i32
    %c0_i32_1 = arith.constant 0 : i32
    return %c0_i32, %c0_i32_0 : i32, i32
  }
  func.func @transform_3(%arg0: i32) -> (i32, i32) {
    %c0_i32 = arith.constant 0 : i32
    %c0_i32_0 = arith.constant 0 : i32
    return %c0_i32, %arg0 : i32, i32
  }
}

module attributes {stable_mosaic.version = 11 : i64} {
  func.func @_conv_mm_kernel(%arg0: i32, %arg1: memref<8x108xbf16, #tpu.memory_space<vmem>>, %arg2: memref<108x512xbf16, #tpu.memory_space<vmem>>, %arg3: memref<8x1xf32, #tpu.memory_space<vmem>>, %arg4: memref<8x512xf32, #tpu.memory_space<vmem>>) attributes {dimension_semantics = [#tpu.dimension_semantics<parallel>], iteration_bounds = array<i64: 2>, scalar_prefetch = 0 : i64, scratch_operands = 0 : i64, tpu.core_type = #tpu.core_type<tc>, window_params = [{pipeline_mode = #tpu.pipeline_mode<synchronous>, transform_indices = @transform_0, window_bounds = array<i64: 8, 108>}, {transform_indices = @transform_1, window_bounds = array<i64: 108, 512>}, {pipeline_mode = #tpu.pipeline_mode<synchronous>, transform_indices = @transform_2, window_bounds = array<i64: 8, 1>}, {transform_indices = @transform_3, window_bounds = array<i64: 8, 512>}]} {
    %c0 = arith.constant 0 : index
    %c0_0 = arith.constant 0 : index
    %0 = vector.load %arg1[%c0, %c0_0] : memref<8x108xbf16, #tpu.memory_space<vmem>>, vector<8x108xbf16>
    %c0_1 = arith.constant 0 : index
    %c0_2 = arith.constant 0 : index
    %1 = vector.load %arg2[%c0_1, %c0_2] : memref<108x512xbf16, #tpu.memory_space<vmem>>, vector<108x512xbf16>
    %cst = arith.constant dense<0.000000e+00> : vector<8x512xf32>
    %2 = tpu.matmul %0, %1, %cst {dimension_numbers = #tpu.dot_dimension_numbers<[1], [0], [0], [1], [0, 0, 1, 1], [], []>} : vector<8x108xbf16>, vector<108x512xbf16>, vector<8x512xf32> -> vector<8x512xf32>
    %c0_3 = arith.constant 0 : index
    %c0_4 = arith.constant 0 : index
    %3 = vector.load %arg3[%c0_3, %c0_4] : memref<8x1xf32, #tpu.memory_space<vmem>>, vector<8x1xf32>
    %4 = vector.broadcast %3 : vector<8x1xf32> to vector<8x512xf32>
    %5 = arith.addf %2, %4 : vector<8x512xf32>
    %cst_5 = arith.constant 0.000000e+00 : f32
    %6 = vector.broadcast %cst_5 : f32 to vector<8x512xf32>
    %7 = arith.cmpf oge, %5, %6 : vector<8x512xf32>
    %cst_6 = arith.constant 2.000000e-01 : f32
    %8 = vector.broadcast %cst_6 : f32 to vector<8x512xf32>
    %9 = arith.mulf %8, %5 : vector<8x512xf32>
    %10 = arith.select %7, %5, %9 : vector<8x512xi1>, vector<8x512xf32>
    %c0_7 = arith.constant 0 : index
    %c0_8 = arith.constant 0 : index
    %11 = vector.load %arg4[%c0_7, %c0_8] : memref<8x512xf32, #tpu.memory_space<vmem>>, vector<8x512xf32>
    tpu.vector_store %arg4[%c0_7, %c0_8], %10 {strides = array<i32>} : memref<8x512xf32, #tpu.memory_space<vmem>>, vector<8x512xf32>,
    return
  }
  func.func @transform_0(%arg0: i32) -> (i32, i32) {
    %c0_i32 = arith.constant 0 : i32
    %c0_i32_0 = arith.constant 0 : i32
    %c0_i32_1 = arith.constant 0 : i32
    return %c0_i32, %c0_i32_0 : i32, i32
  }
  func.func @transform_1(%arg0: i32) -> (i32, i32) {
    %c0_i32 = arith.constant 0 : i32
    %c0_i32_0 = arith.constant 0 : i32
    return %c0_i32, %arg0 : i32, i32
  }
  func.func @transform_2(%arg0: i32) -> (i32, i32) {
    %c0_i32 = arith.constant 0 : i32
    %c0_i32_0 = arith.constant 0 : i32
    %c0_i32_1 = arith.constant 0 : i32
    return %c0_i32, %c0_i32_0 : i32, i32
  }
  func.func @transform_3(%arg0: i32) -> (i32, i32) {
    %c0_i32 = arith.constant 0 : i32
    %c0_i32_0 = arith.constant 0 : i32
    return %c0_i32, %arg0 : i32, i32
  }
}

module attributes {stable_mosaic.version = 11 : i64} {
  func.func @_conv_mm_kernel(%arg0: i32, %arg1: memref<8x216xbf16, #tpu.memory_space<vmem>>, %arg2: memref<216x128xbf16, #tpu.memory_space<vmem>>, %arg3: memref<8x1xf32, #tpu.memory_space<vmem>>, %arg4: memref<8x128xf32, #tpu.memory_space<vmem>>) attributes {dimension_semantics = [#tpu.dimension_semantics<parallel>], iteration_bounds = array<i64: 1>, scalar_prefetch = 0 : i64, scratch_operands = 0 : i64, tpu.core_type = #tpu.core_type<tc>, window_params = [{pipeline_mode = #tpu.pipeline_mode<synchronous>, transform_indices = @transform_0, window_bounds = array<i64: 8, 216>}, {transform_indices = @transform_1, window_bounds = array<i64: 216, 128>}, {pipeline_mode = #tpu.pipeline_mode<synchronous>, transform_indices = @transform_2, window_bounds = array<i64: 8, 1>}, {transform_indices = @transform_3, window_bounds = array<i64: 8, 128>}]} {
    %c0 = arith.constant 0 : index
    %c0_0 = arith.constant 0 : index
    %0 = vector.load %arg1[%c0, %c0_0] : memref<8x216xbf16, #tpu.memory_space<vmem>>, vector<8x216xbf16>
    %c0_1 = arith.constant 0 : index
    %c0_2 = arith.constant 0 : index
    %1 = vector.load %arg2[%c0_1, %c0_2] : memref<216x128xbf16, #tpu.memory_space<vmem>>, vector<216x128xbf16>
    %cst = arith.constant dense<0.000000e+00> : vector<8x128xf32>
    %2 = tpu.matmul %0, %1, %cst {dimension_numbers = #tpu.dot_dimension_numbers<[1], [0], [0], [1], [0, 0, 1, 1], [], []>} : vector<8x216xbf16>, vector<216x128xbf16>, vector<8x128xf32> -> vector<8x128xf32>
    %c0_3 = arith.constant 0 : index
    %c0_4 = arith.constant 0 : index
    %3 = vector.load %arg3[%c0_3, %c0_4] : memref<8x1xf32, #tpu.memory_space<vmem>>, vector<8x1xf32>
    %4 = vector.broadcast %3 : vector<8x1xf32> to vector<8x128xf32>
    %5 = arith.addf %2, %4 : vector<8x128xf32>
    %cst_5 = arith.constant 0.000000e+00 : f32
    %6 = vector.broadcast %cst_5 : f32 to vector<8x128xf32>
    %7 = arith.cmpf oge, %5, %6 : vector<8x128xf32>
    %cst_6 = arith.constant 2.000000e-01 : f32
    %8 = vector.broadcast %cst_6 : f32 to vector<8x128xf32>
    %9 = arith.mulf %8, %5 : vector<8x128xf32>
    %10 = arith.select %7, %5, %9 : vector<8x128xi1>, vector<8x128xf32>
    %c0_7 = arith.constant 0 : index
    %c0_8 = arith.constant 0 : index
    %11 = vector.load %arg4[%c0_7, %c0_8] : memref<8x128xf32, #tpu.memory_space<vmem>>, vector<8x128xf32>
    tpu.vector_store %arg4[%c0_7, %c0_8], %10 {strides = array<i32>} : memref<8x128xf32, #tpu.memory_space<vmem>>, vector<8x128xf32>,
    return
  }
  func.func @transform_0(%arg0: i32) -> (i32, i32) {
    %c0_i32 = arith.constant 0 : i32
    %c0_i32_0 = arith.constant 0 : i32
    %c0_i32_1 = arith.constant 0 : i32
    return %c0_i32, %c0_i32_0 : i32, i32
  }
  func.func @transform_1(%arg0: i32) -> (i32, i32) {
    %c0_i32 = arith.constant 0 : i32
    %c0_i32_0 = arith.constant 0 : i32
    return %c0_i32, %arg0 : i32, i32
  }
  func.func @transform_2(%arg0: i32) -> (i32, i32) {
    %c0_i32 = arith.constant 0 : i32
    %c0_i32_0 = arith.constant 0 : i32
    %c0_i32_1 = arith.constant 0 : i32
    return %c0_i32, %c0_i32_0 : i32, i32
  }
  func.func @transform_3(%arg0: i32) -> (i32, i32) {
    %c0_i32 = arith.constant 0 : i32
    %c0_i32_0 = arith.constant 0 : i32
    return %c0_i32, %arg0 : i32, i32
  }
}

module attributes {stable_mosaic.version = 11 : i64} {
  func.func @_conv_mm_kernel(%arg0: i32, %arg1: memref<8x216xbf16, #tpu.memory_space<vmem>>, %arg2: memref<216x128xbf16, #tpu.memory_space<vmem>>, %arg3: memref<8x1xf32, #tpu.memory_space<vmem>>, %arg4: memref<8x128xf32, #tpu.memory_space<vmem>>, %arg5: memref<8x128xf32, #tpu.memory_space<vmem>>) attributes {dimension_semantics = [#tpu.dimension_semantics<parallel>], iteration_bounds = array<i64: 1>, scalar_prefetch = 0 : i64, scratch_operands = 0 : i64, tpu.core_type = #tpu.core_type<tc>, window_params = [{pipeline_mode = #tpu.pipeline_mode<synchronous>, transform_indices = @transform_0, window_bounds = array<i64: 8, 216>}, {transform_indices = @transform_1, window_bounds = array<i64: 216, 128>}, {pipeline_mode = #tpu.pipeline_mode<synchronous>, transform_indices = @transform_2, window_bounds = array<i64: 8, 1>}, {transform_indices = @transform_3, window_bounds = array<i64: 8, 128>}, {transform_indices = @transform_4, window_bounds = array<i64: 8, 128>}]} {
    %c0 = arith.constant 0 : index
    %c0_0 = arith.constant 0 : index
    %0 = vector.load %arg1[%c0, %c0_0] : memref<8x216xbf16, #tpu.memory_space<vmem>>, vector<8x216xbf16>
    %c0_1 = arith.constant 0 : index
    %c0_2 = arith.constant 0 : index
    %1 = vector.load %arg2[%c0_1, %c0_2] : memref<216x128xbf16, #tpu.memory_space<vmem>>, vector<216x128xbf16>
    %cst = arith.constant dense<0.000000e+00> : vector<8x128xf32>
    %2 = tpu.matmul %0, %1, %cst {dimension_numbers = #tpu.dot_dimension_numbers<[1], [0], [0], [1], [0, 0, 1, 1], [], []>} : vector<8x216xbf16>, vector<216x128xbf16>, vector<8x128xf32> -> vector<8x128xf32>
    %c0_3 = arith.constant 0 : index
    %c0_4 = arith.constant 0 : index
    %3 = vector.load %arg3[%c0_3, %c0_4] : memref<8x1xf32, #tpu.memory_space<vmem>>, vector<8x1xf32>
    %4 = vector.broadcast %3 : vector<8x1xf32> to vector<8x128xf32>
    %5 = arith.addf %2, %4 : vector<8x128xf32>
    %c0_5 = arith.constant 0 : index
    %c0_6 = arith.constant 0 : index
    %6 = vector.load %arg4[%c0_5, %c0_6] : memref<8x128xf32, #tpu.memory_space<vmem>>, vector<8x128xf32>
    %7 = arith.addf %5, %6 : vector<8x128xf32>
    %c0_7 = arith.constant 0 : index
    %c0_8 = arith.constant 0 : index
    %8 = vector.load %arg5[%c0_7, %c0_8] : memref<8x128xf32, #tpu.memory_space<vmem>>, vector<8x128xf32>
    tpu.vector_store %arg5[%c0_7, %c0_8], %7 {strides = array<i32>} : memref<8x128xf32, #tpu.memory_space<vmem>>, vector<8x128xf32>,
    return
  }
  func.func @transform_0(%arg0: i32) -> (i32, i32) {
    %c0_i32 = arith.constant 0 : i32
    %c0_i32_0 = arith.constant 0 : i32
    %c0_i32_1 = arith.constant 0 : i32
    return %c0_i32, %c0_i32_0 : i32, i32
  }
  func.func @transform_1(%arg0: i32) -> (i32, i32) {
    %c0_i32 = arith.constant 0 : i32
    %c0_i32_0 = arith.constant 0 : i32
    return %c0_i32, %arg0 : i32, i32
  }
  func.func @transform_2(%arg0: i32) -> (i32, i32) {
    %c0_i32 = arith.constant 0 : i32
    %c0_i32_0 = arith.constant 0 : i32
    %c0_i32_1 = arith.constant 0 : i32
    return %c0_i32, %c0_i32_0 : i32, i32
  }
  func.func @transform_3(%arg0: i32) -> (i32, i32) {
    %c0_i32 = arith.constant 0 : i32
    %c0_i32_0 = arith.constant 0 : i32
    return %c0_i32, %arg0 : i32, i32
  }
  func.func @transform_4(%arg0: i32) -> (i32, i32) {
    %c0_i32 = arith.constant 0 : i32
    %c0_i32_0 = arith.constant 0 : i32
    return %c0_i32, %arg0 : i32, i32
  }
}

module attributes {stable_mosaic.version = 11 : i64} {
  func.func @_conv_mm_kernel(%arg0: i32, %arg1: memref<8x216xbf16, #tpu.memory_space<vmem>>, %arg2: memref<216x128xbf16, #tpu.memory_space<vmem>>, %arg3: memref<8x1xf32, #tpu.memory_space<vmem>>, %arg4: memref<8x128xf32, #tpu.memory_space<vmem>>) attributes {dimension_semantics = [#tpu.dimension_semantics<parallel>], iteration_bounds = array<i64: 1>, scalar_prefetch = 0 : i64, scratch_operands = 0 : i64, tpu.core_type = #tpu.core_type<tc>, window_params = [{pipeline_mode = #tpu.pipeline_mode<synchronous>, transform_indices = @transform_0, window_bounds = array<i64: 8, 216>}, {transform_indices = @transform_1, window_bounds = array<i64: 216, 128>}, {pipeline_mode = #tpu.pipeline_mode<synchronous>, transform_indices = @transform_2, window_bounds = array<i64: 8, 1>}, {transform_indices = @transform_3, window_bounds = array<i64: 8, 128>}]} {
    %c0 = arith.constant 0 : index
    %c0_0 = arith.constant 0 : index
    %0 = vector.load %arg1[%c0, %c0_0] : memref<8x216xbf16, #tpu.memory_space<vmem>>, vector<8x216xbf16>
    %c0_1 = arith.constant 0 : index
    %c0_2 = arith.constant 0 : index
    %1 = vector.load %arg2[%c0_1, %c0_2] : memref<216x128xbf16, #tpu.memory_space<vmem>>, vector<216x128xbf16>
    %cst = arith.constant dense<0.000000e+00> : vector<8x128xf32>
    %2 = tpu.matmul %0, %1, %cst {dimension_numbers = #tpu.dot_dimension_numbers<[1], [0], [0], [1], [0, 0, 1, 1], [], []>} : vector<8x216xbf16>, vector<216x128xbf16>, vector<8x128xf32> -> vector<8x128xf32>
    %c0_3 = arith.constant 0 : index
    %c0_4 = arith.constant 0 : index
    %3 = vector.load %arg3[%c0_3, %c0_4] : memref<8x1xf32, #tpu.memory_space<vmem>>, vector<8x1xf32>
    %4 = vector.broadcast %3 : vector<8x1xf32> to vector<8x128xf32>
    %5 = arith.addf %2, %4 : vector<8x128xf32>
    %c0_5 = arith.constant 0 : index
    %c0_6 = arith.constant 0 : index
    %6 = vector.load %arg4[%c0_5, %c0_6] : memref<8x128xf32, #tpu.memory_space<vmem>>, vector<8x128xf32>
    tpu.vector_store %arg4[%c0_5, %c0_6], %5 {strides = array<i32>} : memref<8x128xf32, #tpu.memory_space<vmem>>, vector<8x128xf32>,
    return
  }
  func.func @transform_0(%arg0: i32) -> (i32, i32) {
    %c0_i32 = arith.constant 0 : i32
    %c0_i32_0 = arith.constant 0 : i32
    %c0_i32_1 = arith.constant 0 : i32
    return %c0_i32, %c0_i32_0 : i32, i32
  }
  func.func @transform_1(%arg0: i32) -> (i32, i32) {
    %c0_i32 = arith.constant 0 : i32
    %c0_i32_0 = arith.constant 0 : i32
    return %c0_i32, %arg0 : i32, i32
  }
  func.func @transform_2(%arg0: i32) -> (i32, i32) {
    %c0_i32 = arith.constant 0 : i32
    %c0_i32_0 = arith.constant 0 : i32
    %c0_i32_1 = arith.constant 0 : i32
    return %c0_i32, %c0_i32_0 : i32, i32
  }
  func.func @transform_3(%arg0: i32) -> (i32, i32) {
    %c0_i32 = arith.constant 0 : i32
    %c0_i32_0 = arith.constant 0 : i32
    return %c0_i32, %arg0 : i32, i32
  }
}

module attributes {stable_mosaic.version = 11 : i64} {
  func.func @_adain_lrelu_kernel(%arg0: i32, %arg1: memref<16x64xf32, #tpu.memory_space<vmem>>, %arg2: memref<16x1xf32, #tpu.memory_space<vmem>>, %arg3: memref<16x1xf32, #tpu.memory_space<vmem>>, %arg4: memref<16x64xf32, #tpu.memory_space<vmem>>) attributes {dimension_semantics = [#tpu.dimension_semantics<parallel>], iteration_bounds = array<i64: 1>, scalar_prefetch = 0 : i64, scratch_operands = 0 : i64, tpu.core_type = #tpu.core_type<tc>, window_params = [{transform_indices = @transform_0, window_bounds = array<i64: 16, 64>}, {transform_indices = @transform_1, window_bounds = array<i64: 16, 1>}, {transform_indices = @transform_2, window_bounds = array<i64: 16, 1>}, {transform_indices = @transform_3, window_bounds = array<i64: 16, 64>}]} {
    %c0 = arith.constant 0 : index
    %c0_0 = arith.constant 0 : index
    %0 = vector.load %arg1[%c0, %c0_0] : memref<16x64xf32, #tpu.memory_space<vmem>>, vector<16x64xf32>
    %cst = arith.constant dense<0.000000e+00> : vector<16xf32>
    %1 = vector.multi_reduction <add>, %0, %cst [1] : vector<16x64xf32> to vector<16xf32>
    %2 = vector.shape_cast %1 : vector<16xf32> to vector<16x1xf32>
    %cst_1 = arith.constant 6.400000e+01 : f32
    %3 = vector.broadcast %cst_1 : f32 to vector<16x1xf32>
    %4 = arith.divf %2, %3 : vector<16x1xf32>
    %5 = vector.broadcast %4 : vector<16x1xf32> to vector<16x64xf32>
    %6 = arith.subf %0, %5 : vector<16x64xf32>
    %7 = arith.mulf %6, %6 : vector<16x64xf32>
    %cst_2 = arith.constant dense<0.000000e+00> : vector<16xf32>
    %8 = vector.multi_reduction <add>, %7, %cst_2 [1] : vector<16x64xf32> to vector<16xf32>
    %9 = vector.shape_cast %8 : vector<16xf32> to vector<16x1xf32>
    %cst_3 = arith.constant 6.400000e+01 : f32
    %10 = vector.broadcast %cst_3 : f32 to vector<16x1xf32>
    %11 = arith.divf %9, %10 : vector<16x1xf32>
    %12 = vector.broadcast %4 : vector<16x1xf32> to vector<16x64xf32>
    %13 = arith.subf %0, %12 : vector<16x64xf32>
    %cst_4 = arith.constant 9.99999974E-6 : f32
    %14 = vector.broadcast %cst_4 : f32 to vector<16x1xf32>
    %15 = arith.addf %11, %14 : vector<16x1xf32>
    %16 = math.rsqrt %15 : vector<16x1xf32>
    %17 = vector.broadcast %16 : vector<16x1xf32> to vector<16x64xf32>
    %18 = arith.mulf %13, %17 : vector<16x64xf32>
    %c0_5 = arith.constant 0 : index
    %c0_6 = arith.constant 0 : index
    %19 = vector.load %arg2[%c0_5, %c0_6] : memref<16x1xf32, #tpu.memory_space<vmem>>, vector<16x1xf32>
    %20 = vector.broadcast %19 : vector<16x1xf32> to vector<16x64xf32>
    %21 = arith.mulf %20, %18 : vector<16x64xf32>
    %c0_7 = arith.constant 0 : index
    %c0_8 = arith.constant 0 : index
    %22 = vector.load %arg3[%c0_7, %c0_8] : memref<16x1xf32, #tpu.memory_space<vmem>>, vector<16x1xf32>
    %23 = vector.broadcast %22 : vector<16x1xf32> to vector<16x64xf32>
    %24 = arith.addf %21, %23 : vector<16x64xf32>
    %cst_9 = arith.constant 0.000000e+00 : f32
    %25 = vector.broadcast %cst_9 : f32 to vector<16x64xf32>
    %26 = arith.cmpf oge, %24, %25 : vector<16x64xf32>
    %cst_10 = arith.constant 2.000000e-01 : f32
    %27 = vector.broadcast %cst_10 : f32 to vector<16x64xf32>
    %28 = arith.mulf %27, %24 : vector<16x64xf32>
    %29 = arith.select %26, %24, %28 : vector<16x64xi1>, vector<16x64xf32>
    %c0_11 = arith.constant 0 : index
    %c0_12 = arith.constant 0 : index
    %30 = vector.load %arg4[%c0_11, %c0_12] : memref<16x64xf32, #tpu.memory_space<vmem>>, vector<16x64xf32>
    tpu.vector_store %arg4[%c0_11, %c0_12], %29 {strides = array<i32>} : memref<16x64xf32, #tpu.memory_space<vmem>>, vector<16x64xf32>,
    return
  }
  func.func @transform_0(%arg0: i32) -> (i32, i32) {
    %c0_i32 = arith.constant 0 : i32
    %c0_i32_0 = arith.constant 0 : i32
    return %arg0, %c0_i32 : i32, i32
  }
  func.func @transform_1(%arg0: i32) -> (i32, i32) {
    %c0_i32 = arith.constant 0 : i32
    %c0_i32_0 = arith.constant 0 : i32
    return %arg0, %c0_i32 : i32, i32
  }
  func.func @transform_2(%arg0: i32) -> (i32, i32) {
    %c0_i32 = arith.constant 0 : i32
    %c0_i32_0 = arith.constant 0 : i32
    return %arg0, %c0_i32 : i32, i32
  }
  func.func @transform_3(%arg0: i32) -> (i32, i32) {
    %c0_i32 = arith.constant 0 : i32
    %c0_i32_0 = arith.constant 0 : i32
    return %arg0, %c0_i32 : i32, i32
  }
}

module attributes {stable_mosaic.version = 11 : i64} {
  func.func @_conv_mm_kernel(%arg0: i32, %arg1: memref<8x216xbf16, #tpu.memory_space<vmem>>, %arg2: memref<216x512xbf16, #tpu.memory_space<vmem>>, %arg3: memref<8x1xf32, #tpu.memory_space<vmem>>, %arg4: memref<8x512xf32, #tpu.memory_space<vmem>>) attributes {dimension_semantics = [#tpu.dimension_semantics<parallel>], iteration_bounds = array<i64: 2>, scalar_prefetch = 0 : i64, scratch_operands = 0 : i64, tpu.core_type = #tpu.core_type<tc>, window_params = [{pipeline_mode = #tpu.pipeline_mode<synchronous>, transform_indices = @transform_0, window_bounds = array<i64: 8, 216>}, {transform_indices = @transform_1, window_bounds = array<i64: 216, 512>}, {pipeline_mode = #tpu.pipeline_mode<synchronous>, transform_indices = @transform_2, window_bounds = array<i64: 8, 1>}, {transform_indices = @transform_3, window_bounds = array<i64: 8, 512>}]} {
    %c0 = arith.constant 0 : index
    %c0_0 = arith.constant 0 : index
    %0 = vector.load %arg1[%c0, %c0_0] : memref<8x216xbf16, #tpu.memory_space<vmem>>, vector<8x216xbf16>
    %c0_1 = arith.constant 0 : index
    %c0_2 = arith.constant 0 : index
    %1 = vector.load %arg2[%c0_1, %c0_2] : memref<216x512xbf16, #tpu.memory_space<vmem>>, vector<216x512xbf16>
    %cst = arith.constant dense<0.000000e+00> : vector<8x512xf32>
    %2 = tpu.matmul %0, %1, %cst {dimension_numbers = #tpu.dot_dimension_numbers<[1], [0], [0], [1], [0, 0, 1, 1], [], []>} : vector<8x216xbf16>, vector<216x512xbf16>, vector<8x512xf32> -> vector<8x512xf32>
    %c0_3 = arith.constant 0 : index
    %c0_4 = arith.constant 0 : index
    %3 = vector.load %arg3[%c0_3, %c0_4] : memref<8x1xf32, #tpu.memory_space<vmem>>, vector<8x1xf32>
    %4 = vector.broadcast %3 : vector<8x1xf32> to vector<8x512xf32>
    %5 = arith.addf %2, %4 : vector<8x512xf32>
    %c0_5 = arith.constant 0 : index
    %c0_6 = arith.constant 0 : index
    %6 = vector.load %arg4[%c0_5, %c0_6] : memref<8x512xf32, #tpu.memory_space<vmem>>, vector<8x512xf32>
    tpu.vector_store %arg4[%c0_5, %c0_6], %5 {strides = array<i32>} : memref<8x512xf32, #tpu.memory_space<vmem>>, vector<8x512xf32>,
    return
  }
  func.func @transform_0(%arg0: i32) -> (i32, i32) {
    %c0_i32 = arith.constant 0 : i32
    %c0_i32_0 = arith.constant 0 : i32
    %c0_i32_1 = arith.constant 0 : i32
    return %c0_i32, %c0_i32_0 : i32, i32
  }
  func.func @transform_1(%arg0: i32) -> (i32, i32) {
    %c0_i32 = arith.constant 0 : i32
    %c0_i32_0 = arith.constant 0 : i32
    return %c0_i32, %arg0 : i32, i32
  }
  func.func @transform_2(%arg0: i32) -> (i32, i32) {
    %c0_i32 = arith.constant 0 : i32
    %c0_i32_0 = arith.constant 0 : i32
    %c0_i32_1 = arith.constant 0 : i32
    return %c0_i32, %c0_i32_0 : i32, i32
  }
  func.func @transform_3(%arg0: i32) -> (i32, i32) {
    %c0_i32 = arith.constant 0 : i32
    %c0_i32_0 = arith.constant 0 : i32
    return %c0_i32, %arg0 : i32, i32
  }
}

module attributes {stable_mosaic.version = 11 : i64} {
  func.func @_adain_lrelu_kernel(%arg0: i32, %arg1: memref<16x512xf32, #tpu.memory_space<vmem>>, %arg2: memref<16x1xf32, #tpu.memory_space<vmem>>, %arg3: memref<16x1xf32, #tpu.memory_space<vmem>>, %arg4: memref<16x512xf32, #tpu.memory_space<vmem>>) attributes {dimension_semantics = [#tpu.dimension_semantics<parallel>], iteration_bounds = array<i64: 1>, scalar_prefetch = 0 : i64, scratch_operands = 0 : i64, tpu.core_type = #tpu.core_type<tc>, window_params = [{transform_indices = @transform_0, window_bounds = array<i64: 16, 512>}, {transform_indices = @transform_1, window_bounds = array<i64: 16, 1>}, {transform_indices = @transform_2, window_bounds = array<i64: 16, 1>}, {transform_indices = @transform_3, window_bounds = array<i64: 16, 512>}]} {
    %c0 = arith.constant 0 : index
    %c0_0 = arith.constant 0 : index
    %0 = vector.load %arg1[%c0, %c0_0] : memref<16x512xf32, #tpu.memory_space<vmem>>, vector<16x512xf32>
    %cst = arith.constant dense<0.000000e+00> : vector<16xf32>
    %1 = vector.multi_reduction <add>, %0, %cst [1] : vector<16x512xf32> to vector<16xf32>
    %2 = vector.shape_cast %1 : vector<16xf32> to vector<16x1xf32>
    %cst_1 = arith.constant 5.120000e+02 : f32
    %3 = vector.broadcast %cst_1 : f32 to vector<16x1xf32>
    %4 = arith.divf %2, %3 : vector<16x1xf32>
    %5 = vector.broadcast %4 : vector<16x1xf32> to vector<16x512xf32>
    %6 = arith.subf %0, %5 : vector<16x512xf32>
    %7 = arith.mulf %6, %6 : vector<16x512xf32>
    %cst_2 = arith.constant dense<0.000000e+00> : vector<16xf32>
    %8 = vector.multi_reduction <add>, %7, %cst_2 [1] : vector<16x512xf32> to vector<16xf32>
    %9 = vector.shape_cast %8 : vector<16xf32> to vector<16x1xf32>
    %cst_3 = arith.constant 5.120000e+02 : f32
    %10 = vector.broadcast %cst_3 : f32 to vector<16x1xf32>
    %11 = arith.divf %9, %10 : vector<16x1xf32>
    %12 = vector.broadcast %4 : vector<16x1xf32> to vector<16x512xf32>
    %13 = arith.subf %0, %12 : vector<16x512xf32>
    %cst_4 = arith.constant 9.99999974E-6 : f32
    %14 = vector.broadcast %cst_4 : f32 to vector<16x1xf32>
    %15 = arith.addf %11, %14 : vector<16x1xf32>
    %16 = math.rsqrt %15 : vector<16x1xf32>
    %17 = vector.broadcast %16 : vector<16x1xf32> to vector<16x512xf32>
    %18 = arith.mulf %13, %17 : vector<16x512xf32>
    %c0_5 = arith.constant 0 : index
    %c0_6 = arith.constant 0 : index
    %19 = vector.load %arg2[%c0_5, %c0_6] : memref<16x1xf32, #tpu.memory_space<vmem>>, vector<16x1xf32>
    %20 = vector.broadcast %19 : vector<16x1xf32> to vector<16x512xf32>
    %21 = arith.mulf %20, %18 : vector<16x512xf32>
    %c0_7 = arith.constant 0 : index
    %c0_8 = arith.constant 0 : index
    %22 = vector.load %arg3[%c0_7, %c0_8] : memref<16x1xf32, #tpu.memory_space<vmem>>, vector<16x1xf32>
    %23 = vector.broadcast %22 : vector<16x1xf32> to vector<16x512xf32>
    %24 = arith.addf %21, %23 : vector<16x512xf32>
    %cst_9 = arith.constant 0.000000e+00 : f32
    %25 = vector.broadcast %cst_9 : f32 to vector<16x512xf32>
    %26 = arith.cmpf oge, %24, %25 : vector<16x512xf32>
    %cst_10 = arith.constant 2.000000e-01 : f32
    %27 = vector.broadcast %cst_10 : f32 to vector<16x512xf32>
    %28 = arith.mulf %27, %24 : vector<16x512xf32>
    %29 = arith.select %26, %24, %28 : vector<16x512xi1>, vector<16x512xf32>
    %c0_11 = arith.constant 0 : index
    %c0_12 = arith.constant 0 : index
    %30 = vector.load %arg4[%c0_11, %c0_12] : memref<16x512xf32, #tpu.memory_space<vmem>>, vector<16x512xf32>
    tpu.vector_store %arg4[%c0_11, %c0_12], %29 {strides = array<i32>} : memref<16x512xf32, #tpu.memory_space<vmem>>, vector<16x512xf32>,
    return
  }
  func.func @transform_0(%arg0: i32) -> (i32, i32) {
    %c0_i32 = arith.constant 0 : i32
    %c0_i32_0 = arith.constant 0 : i32
    return %arg0, %c0_i32 : i32, i32
  }
  func.func @transform_1(%arg0: i32) -> (i32, i32) {
    %c0_i32 = arith.constant 0 : i32
    %c0_i32_0 = arith.constant 0 : i32
    return %arg0, %c0_i32 : i32, i32
  }
  func.func @transform_2(%arg0: i32) -> (i32, i32) {
    %c0_i32 = arith.constant 0 : i32
    %c0_i32_0 = arith.constant 0 : i32
    return %arg0, %c0_i32 : i32, i32
  }
  func.func @transform_3(%arg0: i32) -> (i32, i32) {
    %c0_i32 = arith.constant 0 : i32
    %c0_i32_0 = arith.constant 0 : i32
    return %arg0, %c0_i32 : i32, i32
  }
}

module attributes {stable_mosaic.version = 11 : i64} {
  func.func @_conv_mm_kernel(%arg0: i32, %arg1: memref<8x216xbf16, #tpu.memory_space<vmem>>, %arg2: memref<216x512xbf16, #tpu.memory_space<vmem>>, %arg3: memref<8x1xf32, #tpu.memory_space<vmem>>, %arg4: memref<8x512xf32, #tpu.memory_space<vmem>>) attributes {dimension_semantics = [#tpu.dimension_semantics<parallel>], iteration_bounds = array<i64: 16>, scalar_prefetch = 0 : i64, scratch_operands = 0 : i64, tpu.core_type = #tpu.core_type<tc>, window_params = [{pipeline_mode = #tpu.pipeline_mode<synchronous>, transform_indices = @transform_0, window_bounds = array<i64: 8, 216>}, {transform_indices = @transform_1, window_bounds = array<i64: 216, 512>}, {pipeline_mode = #tpu.pipeline_mode<synchronous>, transform_indices = @transform_2, window_bounds = array<i64: 8, 1>}, {transform_indices = @transform_3, window_bounds = array<i64: 8, 512>}]} {
    %c0 = arith.constant 0 : index
    %c0_0 = arith.constant 0 : index
    %0 = vector.load %arg1[%c0, %c0_0] : memref<8x216xbf16, #tpu.memory_space<vmem>>, vector<8x216xbf16>
    %c0_1 = arith.constant 0 : index
    %c0_2 = arith.constant 0 : index
    %1 = vector.load %arg2[%c0_1, %c0_2] : memref<216x512xbf16, #tpu.memory_space<vmem>>, vector<216x512xbf16>
    %cst = arith.constant dense<0.000000e+00> : vector<8x512xf32>
    %2 = tpu.matmul %0, %1, %cst {dimension_numbers = #tpu.dot_dimension_numbers<[1], [0], [0], [1], [0, 0, 1, 1], [], []>} : vector<8x216xbf16>, vector<216x512xbf16>, vector<8x512xf32> -> vector<8x512xf32>
    %c0_3 = arith.constant 0 : index
    %c0_4 = arith.constant 0 : index
    %3 = vector.load %arg3[%c0_3, %c0_4] : memref<8x1xf32, #tpu.memory_space<vmem>>, vector<8x1xf32>
    %4 = vector.broadcast %3 : vector<8x1xf32> to vector<8x512xf32>
    %5 = arith.addf %2, %4 : vector<8x512xf32>
    %c0_5 = arith.constant 0 : index
    %c0_6 = arith.constant 0 : index
    %6 = vector.load %arg4[%c0_5, %c0_6] : memref<8x512xf32, #tpu.memory_space<vmem>>, vector<8x512xf32>
    tpu.vector_store %arg4[%c0_5, %c0_6], %5 {strides = array<i32>} : memref<8x512xf32, #tpu.memory_space<vmem>>, vector<8x512xf32>,
    return
  }
  func.func @transform_0(%arg0: i32) -> (i32, i32) {
    %c0_i32 = arith.constant 0 : i32
    %c0_i32_0 = arith.constant 0 : i32
    %c0_i32_1 = arith.constant 0 : i32
    return %c0_i32, %c0_i32_0 : i32, i32
  }
  func.func @transform_1(%arg0: i32) -> (i32, i32) {
    %c0_i32 = arith.constant 0 : i32
    %c0_i32_0 = arith.constant 0 : i32
    return %c0_i32, %arg0 : i32, i32
  }
  func.func @transform_2(%arg0: i32) -> (i32, i32) {
    %c0_i32 = arith.constant 0 : i32
    %c0_i32_0 = arith.constant 0 : i32
    %c0_i32_1 = arith.constant 0 : i32
    return %c0_i32, %c0_i32_0 : i32, i32
  }
  func.func @transform_3(%arg0: i32) -> (i32, i32) {
    %c0_i32 = arith.constant 0 : i32
    %c0_i32_0 = arith.constant 0 : i32
    return %c0_i32, %arg0 : i32, i32
  }
}

module attributes {stable_mosaic.version = 11 : i64} {
  func.func @_adain_lrelu_kernel(%arg0: i32, %arg1: memref<8x4096xf32, #tpu.memory_space<vmem>>, %arg2: memref<8x1xf32, #tpu.memory_space<vmem>>, %arg3: memref<8x1xf32, #tpu.memory_space<vmem>>, %arg4: memref<8x4096xf32, #tpu.memory_space<vmem>>) attributes {dimension_semantics = [#tpu.dimension_semantics<parallel>], iteration_bounds = array<i64: 1>, scalar_prefetch = 0 : i64, scratch_operands = 0 : i64, tpu.core_type = #tpu.core_type<tc>, window_params = [{transform_indices = @transform_0, window_bounds = array<i64: 8, 4096>}, {transform_indices = @transform_1, window_bounds = array<i64: 8, 1>}, {transform_indices = @transform_2, window_bounds = array<i64: 8, 1>}, {transform_indices = @transform_3, window_bounds = array<i64: 8, 4096>}]} {
    %c0 = arith.constant 0 : index
    %c0_0 = arith.constant 0 : index
    %0 = vector.load %arg1[%c0, %c0_0] : memref<8x4096xf32, #tpu.memory_space<vmem>>, vector<8x4096xf32>
    %cst = arith.constant dense<0.000000e+00> : vector<8xf32>
    %1 = vector.multi_reduction <add>, %0, %cst [1] : vector<8x4096xf32> to vector<8xf32>
    %2 = vector.shape_cast %1 : vector<8xf32> to vector<8x1xf32>
    %cst_1 = arith.constant 4.096000e+03 : f32
    %3 = vector.broadcast %cst_1 : f32 to vector<8x1xf32>
    %4 = arith.divf %2, %3 : vector<8x1xf32>
    %5 = vector.broadcast %4 : vector<8x1xf32> to vector<8x4096xf32>
    %6 = arith.subf %0, %5 : vector<8x4096xf32>
    %7 = arith.mulf %6, %6 : vector<8x4096xf32>
    %cst_2 = arith.constant dense<0.000000e+00> : vector<8xf32>
    %8 = vector.multi_reduction <add>, %7, %cst_2 [1] : vector<8x4096xf32> to vector<8xf32>
    %9 = vector.shape_cast %8 : vector<8xf32> to vector<8x1xf32>
    %cst_3 = arith.constant 4.096000e+03 : f32
    %10 = vector.broadcast %cst_3 : f32 to vector<8x1xf32>
    %11 = arith.divf %9, %10 : vector<8x1xf32>
    %12 = vector.broadcast %4 : vector<8x1xf32> to vector<8x4096xf32>
    %13 = arith.subf %0, %12 : vector<8x4096xf32>
    %cst_4 = arith.constant 9.99999974E-6 : f32
    %14 = vector.broadcast %cst_4 : f32 to vector<8x1xf32>
    %15 = arith.addf %11, %14 : vector<8x1xf32>
    %16 = math.rsqrt %15 : vector<8x1xf32>
    %17 = vector.broadcast %16 : vector<8x1xf32> to vector<8x4096xf32>
    %18 = arith.mulf %13, %17 : vector<8x4096xf32>
    %c0_5 = arith.constant 0 : index
    %c0_6 = arith.constant 0 : index
    %19 = vector.load %arg2[%c0_5, %c0_6] : memref<8x1xf32, #tpu.memory_space<vmem>>, vector<8x1xf32>
    %20 = vector.broadcast %19 : vector<8x1xf32> to vector<8x4096xf32>
    %21 = arith.mulf %20, %18 : vector<8x4096xf32>
    %c0_7 = arith.constant 0 : index
    %c0_8 = arith.constant 0 : index
    %22 = vector.load %arg3[%c0_7, %c0_8] : memref<8x1xf32, #tpu.memory_space<vmem>>, vector<8x1xf32>
    %23 = vector.broadcast %22 : vector<8x1xf32> to vector<8x4096xf32>
    %24 = arith.addf %21, %23 : vector<8x4096xf32>
    %cst_9 = arith.constant 0.000000e+00 : f32
    %25 = vector.broadcast %cst_9 : f32 to vector<8x4096xf32>
    %26 = arith.cmpf oge, %24, %25 : vector<8x4096xf32>
    %cst_10 = arith.constant 2.000000e-01 : f32
    %27 = vector.broadcast %cst_10 : f32 to vector<8x4096xf32>
    %28 = arith.mulf %27, %24 : vector<8x4096xf32>
    %29 = arith.select %26, %24, %28 : vector<8x4096xi1>, vector<8x4096xf32>
    %c0_11 = arith.constant 0 : index
    %c0_12 = arith.constant 0 : index
    %30 = vector.load %arg4[%c0_11, %c0_12] : memref<8x4096xf32, #tpu.memory_space<vmem>>, vector<8x4096xf32>
    tpu.vector_store %arg4[%c0_11, %c0_12], %29 {strides = array<i32>} : memref<8x4096xf32, #tpu.memory_space<vmem>>, vector<8x4096xf32>,
    return
  }
  func.func @transform_0(%arg0: i32) -> (i32, i32) {
    %c0_i32 = arith.constant 0 : i32
    %c0_i32_0 = arith.constant 0 : i32
    return %arg0, %c0_i32 : i32, i32
  }
  func.func @transform_1(%arg0: i32) -> (i32, i32) {
    %c0_i32 = arith.constant 0 : i32
    %c0_i32_0 = arith.constant 0 : i32
    return %arg0, %c0_i32 : i32, i32
  }
  func.func @transform_2(%arg0: i32) -> (i32, i32) {
    %c0_i32 = arith.constant 0 : i32
    %c0_i32_0 = arith.constant 0 : i32
    return %arg0, %c0_i32 : i32, i32
  }
  func.func @transform_3(%arg0: i32) -> (i32, i32) {
    %c0_i32 = arith.constant 0 : i32
    %c0_i32_0 = arith.constant 0 : i32
    return %arg0, %c0_i32 : i32, i32
  }
}

module attributes {stable_mosaic.version = 11 : i64} {
  func.func @_conv_mm_kernel(%arg0: i32, %arg1: memref<8x108xbf16, #tpu.memory_space<vmem>>, %arg2: memref<108x512xbf16, #tpu.memory_space<vmem>>, %arg3: memref<8x1xf32, #tpu.memory_space<vmem>>, %arg4: memref<8x512xf32, #tpu.memory_space<vmem>>) attributes {dimension_semantics = [#tpu.dimension_semantics<parallel>], iteration_bounds = array<i64: 16>, scalar_prefetch = 0 : i64, scratch_operands = 0 : i64, tpu.core_type = #tpu.core_type<tc>, window_params = [{pipeline_mode = #tpu.pipeline_mode<synchronous>, transform_indices = @transform_0, window_bounds = array<i64: 8, 108>}, {transform_indices = @transform_1, window_bounds = array<i64: 108, 512>}, {pipeline_mode = #tpu.pipeline_mode<synchronous>, transform_indices = @transform_2, window_bounds = array<i64: 8, 1>}, {transform_indices = @transform_3, window_bounds = array<i64: 8, 512>}]} {
    %c0 = arith.constant 0 : index
    %c0_0 = arith.constant 0 : index
    %0 = vector.load %arg1[%c0, %c0_0] : memref<8x108xbf16, #tpu.memory_space<vmem>>, vector<8x108xbf16>
    %c0_1 = arith.constant 0 : index
    %c0_2 = arith.constant 0 : index
    %1 = vector.load %arg2[%c0_1, %c0_2] : memref<108x512xbf16, #tpu.memory_space<vmem>>, vector<108x512xbf16>
    %cst = arith.constant dense<0.000000e+00> : vector<8x512xf32>
    %2 = tpu.matmul %0, %1, %cst {dimension_numbers = #tpu.dot_dimension_numbers<[1], [0], [0], [1], [0, 0, 1, 1], [], []>} : vector<8x108xbf16>, vector<108x512xbf16>, vector<8x512xf32> -> vector<8x512xf32>
    %c0_3 = arith.constant 0 : index
    %c0_4 = arith.constant 0 : index
    %3 = vector.load %arg3[%c0_3, %c0_4] : memref<8x1xf32, #tpu.memory_space<vmem>>, vector<8x1xf32>
    %4 = vector.broadcast %3 : vector<8x1xf32> to vector<8x512xf32>
    %5 = arith.addf %2, %4 : vector<8x512xf32>
    %6 = math.tanh %5 : vector<8x512xf32>
    %c0_5 = arith.constant 0 : index
    %c0_6 = arith.constant 0 : index
    %7 = vector.load %arg4[%c0_5, %c0_6] : memref<8x512xf32, #tpu.memory_space<vmem>>, vector<8x512xf32>
    tpu.vector_store %arg4[%c0_5, %c0_6], %6 {strides = array<i32>} : memref<8x512xf32, #tpu.memory_space<vmem>>, vector<8x512xf32>,
    return
  }
  func.func @transform_0(%arg0: i32) -> (i32, i32) {
    %c0_i32 = arith.constant 0 : i32
    %c0_i32_0 = arith.constant 0 : i32
    %c0_i32_1 = arith.constant 0 : i32
    return %c0_i32, %c0_i32_0 : i32, i32
  }
  func.func @transform_1(%arg0: i32) -> (i32, i32) {
    %c0_i32 = arith.constant 0 : i32
    %c0_i32_0 = arith.constant 0 : i32
    return %c0_i32, %arg0 : i32, i32
  }
  func.func @transform_2(%arg0: i32) -> (i32, i32) {
    %c0_i32 = arith.constant 0 : i32
    %c0_i32_0 = arith.constant 0 : i32
    %c0_i32_1 = arith.constant 0 : i32
    return %c0_i32, %c0_i32_0 : i32, i32
  }
  func.func @transform_3(%arg0: i32) -> (i32, i32) {
    %c0_i32 = arith.constant 0 : i32
    %c0_i32_0 = arith.constant 0 : i32
    return %c0_i32, %arg0 : i32, i32
  }
}

</mosaic_0001>

<bundles_post_ra>
// kernel: appearance_model_style_forward.14
= control target key start
LH: loop header
LB: loop body
LE: loop exit
PB: predicated region body
PF: predicated region fallthrough
CT: control target
= control target key end

     0   :  { %s1485_s12 = smov 0   ;;  %s1487_s13 = smov 0   ;;  %s1819_s0 = inlined_call_operand.vmem [shape: bf16[8,343], index: 0, kind: input, shape index: {}]   ;;  %s1820_s1 = inlined_call_operand.vmem [shape: bf16[343,8192], index: 1, kind: input, shape index: {}]   ;;  %s1821_s2 = inlined_call_operand.vmem [shape: f32[8,1], index: 2, kind: input, shape index: {}]   ;;  %s1822_s3 = inlined_call_operand.vmem [shape: f32[8,8192], index: 3, kind: output, shape index: {}]  }
   0x1   :  { %s1489_s14 = smov 0  }
   0x2 LB: > { %s1160_s15 = sadd.s32 4294967295, %s1461_s14   ;;  %s1502_s16 = sadd.s32 1, %s1461_s14   ;;  %s1461_s14 = sphi %s1489_s14, %s1825_s14   ;;  %s1457_s13 = sphi %s1487_s13, %s1824_s13   ;;  %s1453_s12 = sphi %s1485_s12, %s1823_s12  }
   0x3   : > { %s38_s17 = ssub.s32 %s1461_s14, %s1502_s16  ;;  %s41_s18 = sadd.s32 1, %s1457_s13 }
   0x4   : > { %p39_p0 = scmp.eq.s32.totalorder %s38_s17, 0  ;;  %p48_p1 = scmp.ne.s32.totalorder %s1457_s13, %s1453_s12 }
   0x5   : > { %p49_p2 = scmp.eq.s32.totalorder %s1461_s14, 0  ;;  %p1163_p4 = scmp.ge.s32.totalorder %s1461_s14, 16 }
   0x6   : > { %s1511_s19 = scalar_select %p39_p0, %s1457_s13, %s41_s18  }
   0x7   : > { %p50_p3 = por %p49_p2, %p48_p1  ;;  %127 = sbr.rel (%p1163_p4) target bundleno = 61 (0x3d), region = 24 }
   0xe   : > { %130 = sbr.rel (!%p50_p3) target bundleno = 61 (0x3d), region = 28  ;;  %s132_s20 = sand.u32 (%p50_p3), 1, %s1457_s13  }
   0xf   : > { %s1264_s21 = sshll.u32 (%p50_p3), %s1461_s14, 4  ;;  %s1277_s22 = smul.u32 (%p50_p3), 688, %s132_s20 }
  0x10   : > { %s1519_s25 = scalar_lea.vmem (%p50_p3), %s1820_s1, %s1264_s21 }
  0x11   : > { %v150_v0 = vld [vmem:[%s1519_s25] sm:$0xff] (%p50_p3)  ;;  %v152_v1 = vld [vmem:[%s1519_s25 + $0x8] sm:$0xff] (%p50_p3)  ;;  %s1527_s26 = scalar_lea.vmem (%p50_p3), [#allocation2], %s1277_s22 }
  0x12   : > { %v154_v2 = vld [vmem:[%s1519_s25 + $0x100] sm:$0xff] (%p50_p3)  ;;  %v156_v3 = vld [vmem:[%s1519_s25 + $0x108] sm:$0xff] (%p50_p3)  ;;  %151 = vst [vmem:[%s1527_s26] sm:$0xff] (%p50_p3), %v150_v0  ;;  %153 = vst [vmem:[%s1527_s26 + $0x8] sm:$0xff] (%p50_p3), %v152_v1 }
  0x13   : > { %v158_v4 = vld [vmem:[%s1519_s25 + $0x200] sm:$0xff] (%p50_p3)  ;;  %v160_v5 = vld [vmem:[%s1519_s25 + $0x208] sm:$0xff] (%p50_p3)  ;;  %155 = vst [vmem:[%s1527_s26 + $0x10] sm:$0xff] (%p50_p3), %v154_v2  ;;  %157 = vst [vmem:[%s1527_s26 + $0x18] sm:$0xff] (%p50_p3), %v156_v3 }
  0x14   : > { %159 = vst [vmem:[%s1527_s26 + $0x20] sm:$0xff] (%p50_p3), %v158_v4  ;;  %161 = vst [vmem:[%s1527_s26 + $0x28] sm:$0xff] (%p50_p3), %v160_v5  ;;  %v162_v6 = vld [vmem:[%s1519_s25 + $0x300] sm:$0xff] (%p50_p3)  ;;  %v164_v7 = vld [vmem:[%s1519_s25 + $0x308] sm:$0xff] (%p50_p3) }
  0x15   : > { %v166_v8 = vld [vmem:[%s1519_s25 + $0x400] sm:$0xff]  ;;  %163 = vst [vmem:[%s1527_s26 + $0x30] sm:$0xff] %v162_v6  ;;  %165 = vst [vmem:[%s1527_s26 + $0x38] sm:$0xff] %v164_v7  ;;  %v168_v9 = vld [vmem:[%s1519_s25 + $0x408] sm:$0xff] }
  0x16   : > { %167 = vst [vmem:[%s1527_s26 + $0x40] sm:$0xff] %v166_v8  ;;  %v170_v10 = vld [vmem:[%s1519_s25 + $0x500] sm:$0xff]  ;;  %v172_v11 = vld [vmem:[%s1519_s25 + $0x508] sm:$0xff]  ;;  %169 = vst [vmem:[%s1527_s26 + $0x48] sm:$0xff] %v168_v9 }
  0x17   : > { %171 = vst [vmem:[%s1527_s26 + $0x50] sm:$0xff] %v170_v10  ;;  %173 = vst [vmem:[%s1527_s26 + $0x58] sm:$0xff] %v172_v11  ;;  %v174_v12 = vld [vmem:[%s1519_s25 + $0x600] sm:$0xff]  ;;  %v176_v13 = vld [vmem:[%s1519_s25 + $0x608] sm:$0xff] }
  0x18   : > { %v178_v14 = vld [vmem:[%s1519_s25 + $0x700] sm:$0xff]  ;;  %175 = vst [vmem:[%s1527_s26 + $0x60] sm:$0xff] %v174_v12  ;;  %177 = vst [vmem:[%s1527_s26 + $0x68] sm:$0xff] %v176_v13  ;;  %v180_v15 = vld [vmem:[%s1519_s25 + $0x708] sm:$0xff] }
  0x19   : > { %179 = vst [vmem:[%s1527_s26 + $0x70] sm:$0xff] %v178_v14  ;;  %v182_v16 = vld [vmem:[%s1519_s25 + $0x800] sm:$0xff]  ;;  %v184_v17 = vld [vmem:[%s1519_s25 + $0x808] sm:$0xff]  ;;  %181 = vst [vmem:[%s1527_s26 + $0x78] sm:$0xff] %v180_v15 }
  0x1a   : > { %183 = vst [vmem:[%s1527_s26 + $0x80] sm:$0xff] %v182_v16  ;;  %185 = vst [vmem:[%s1527_s26 + $0x88] sm:$0xff] %v184_v17  ;;  %v186_v18 = vld [vmem:[%s1519_s25 + $0x900] sm:$0xff]  ;;  %v188_v19 = vld [vmem:[%s1519_s25 + $0x908] sm:$0xff] }
  0x1b   : > { %v190_v20 = vld [vmem:[%s1519_s25 + $0xa00] sm:$0xff]  ;;  %187 = vst [vmem:[%s1527_s26 + $0x90] sm:$0xff] %v186_v18  ;;  %189 = vst [vmem:[%s1527_s26 + $0x98] sm:$0xff] %v188_v19  ;;  %v192_v21 = vld [vmem:[%s1519_s25 + $0xa08] sm:$0xff] }
  0x1c   : > { %191 = vst [vmem:[%s1527_s26 + $0xa0] sm:$0xff] %v190_v20  ;;  %v194_v22 = vld [vmem:[%s1519_s25 + $0xb00] sm:$0xff]  ;;  %v196_v23 = vld [vmem:[%s1519_s25 + $0xb08] sm:$0xff]  ;;  %193 = vst [vmem:[%s1527_s26 + $0xa8] sm:$0xff] %v192_v21 }
  0x1d   : > { %195 = vst [vmem:[%s1527_s26 + $0xb0] sm:$0xff] %v194_v22  ;;  %197 = vst [vmem:[%s1527_s26 + $0xb8] sm:$0xff] %v196_v23  ;;  %v198_v24 = vld [vmem:[%s1519_s25 + $0xc00] sm:$0xff]  ;;  %v200_v25 = vld [vmem:[%s1519_s25 + $0xc08] sm:$0xff] }
  0x1e   : > { %v202_v26 = vld [vmem:[%s1519_s25 + $0xd00] sm:$0xff]  ;;  %199 = vst [vmem:[%s1527_s26 + $0xc0] sm:$0xff] %v198_v24  ;;  %201 = vst [vmem:[%s1527_s26 + $0xc8] sm:$0xff] %v200_v25  ;;  %v204_v27 = vld [vmem:[%s1519_s25 + $0xd08] sm:$0xff] }
  0x1f   : > { %203 = vst [vmem:[%s1527_s26 + $0xd0] sm:$0xff] %v202_v26  ;;  %v206_v28 = vld [vmem:[%s1519_s25 + $0xe00] sm:$0xff]  ;;  %v208_v29 = vld [vmem:[%s1519_s25 + $0xe08] sm:$0xff]  ;;  %205 = vst [vmem:[%s1527_s26 + $0xd8] sm:$0xff] %v204_v27 }
  0x20   : > { %207 = vst [vmem:[%s1527_s26 + $0xe0] sm:$0xff] %v206_v28  ;;  %209 = vst [vmem:[%s1527_s26 + $0xe8] sm:$0xff] %v208_v29  ;;  %v210_v30 = vld [vmem:[%s1519_s25 + $0xf00] sm:$0xff]  ;;  %v212_v31 = vld [vmem:[%s1519_s25 + $0xf08] sm:$0xff] }
  0x21   : > { %v214_v32 = vld [vmem:[%s1519_s25 + $0x1000] sm:$0xff]  ;;  %211 = vst [vmem:[%s1527_s26 + $0xf0] sm:$0xff] %v210_v30  ;;  %213 = vst [vmem:[%s1527_s26 + $0xf8] sm:$0xff] %v212_v31  ;;  %v216_v33 = vld [vmem:[%s1519_s25 + $0x1008] sm:$0xff] }
  0x22   : > { %215 = vst [vmem:[%s1527_s26 + $0x100] sm:$0xff] %v214_v32  ;;  %v218_v34 = vld [vmem:[%s1519_s25 + $0x1100] sm:$0xff]  ;;  %v220_v35 = vld [vmem:[%s1519_s25 + $0x1108] sm:$0xff]  ;;  %217 = vst [vmem:[%s1527_s26 + $0x108] sm:$0xff] %v216_v33 }
  0x23   : > { %219 = vst [vmem:[%s1527_s26 + $0x110] sm:$0xff] %v218_v34  ;;  %221 = vst [vmem:[%s1527_s26 + $0x118] sm:$0xff] %v220_v35  ;;  %v222_v36 = vld [vmem:[%s1519_s25 + $0x1200] sm:$0xff]  ;;  %v224_v37 = vld [vmem:[%s1519_s25 + $0x1208] sm:$0xff] }
  0x24   : > { %v226_v38 = vld [vmem:[%s1519_s25 + $0x1300] sm:$0xff]  ;;  %223 = vst [vmem:[%s1527_s26 + $0x120] sm:$0xff] %v222_v36  ;;  %225 = vst [vmem:[%s1527_s26 + $0x128] sm:$0xff] %v224_v37  ;;  %v228_v39 = vld [vmem:[%s1519_s25 + $0x1308] sm:$0xff] }
  0x25   : > { %227 = vst [vmem:[%s1527_s26 + $0x130] sm:$0xff] %v226_v38  ;;  %v230_v40 = vld [vmem:[%s1519_s25 + $0x1400] sm:$0xff]  ;;  %v232_v41 = vld [vmem:[%s1519_s25 + $0x1408] sm:$0xff]  ;;  %229 = vst [vmem:[%s1527_s26 + $0x138] sm:$0xff] %v228_v39 }
  0x26   : > { %231 = vst [vmem:[%s1527_s26 + $0x140] sm:$0xff] %v230_v40  ;;  %233 = vst [vmem:[%s1527_s26 + $0x148] sm:$0xff] %v232_v41  ;;  %v234_v42 = vld [vmem:[%s1519_s25 + $0x1500] sm:$0xff]  ;;  %v236_v43 = vld [vmem:[%s1519_s25 + $0x1508] sm:$0xff] }
  0x27   : > { %v238_v44 = vld [vmem:[%s1519_s25 + $0x1600] sm:$0xff]  ;;  %235 = vst [vmem:[%s1527_s26 + $0x150] sm:$0xff] %v234_v42  ;;  %237 = vst [vmem:[%s1527_s26 + $0x158] sm:$0xff] %v236_v43  ;;  %v240_v45 = vld [vmem:[%s1519_s25 + $0x1608] sm:$0xff] }
  0x28   : > { %239 = vst [vmem:[%s1527_s26 + $0x160] sm:$0xff] %v238_v44  ;;  %v242_v46 = vld [vmem:[%s1519_s25 + $0x1700] sm:$0xff]  ;;  %v244_v47 = vld [vmem:[%s1519_s25 + $0x1708] sm:$0xff]  ;;  %241 = vst [vmem:[%s1527_s26 + $0x168] sm:$0xff] %v240_v45 }
  0x29   : > { %243 = vst [vmem:[%s1527_s26 + $0x170] sm:$0xff] %v242_v46  ;;  %245 = vst [vmem:[%s1527_s26 + $0x178] sm:$0xff] %v244_v47  ;;  %v246_v48 = vld [vmem:[%s1519_s25 + $0x1800] sm:$0xff]  ;;  %v248_v49 = vld [vmem:[%s1519_s25 + $0x1808] sm:$0xff] }
  0x2a   : > { %v250_v50 = vld [vmem:[%s1519_s25 + $0x1900] sm:$0xff]  ;;  %247 = vst [vmem:[%s1527_s26 + $0x180] sm:$0xff] %v246_v48  ;;  %249 = vst [vmem:[%s1527_s26 + $0x188] sm:$0xff] %v248_v49  ;;  %v252_v51 = vld [vmem:[%s1519_s25 + $0x1908] sm:$0xff] }
  0x2b   : > { %251 = vst [vmem:[%s1527_s26 + $0x190] sm:$0xff] %v250_v50  ;;  %v254_v52 = vld [vmem:[%s1519_s25 + $0x1a00] sm:$0xff]  ;;  %v256_v53 = vld [vmem:[%s1519_s25 + $0x1a08] sm:$0xff]  ;;  %253 = vst [vmem:[%s1527_s26 + $0x198] sm:$0xff] %v252_v51 }
  0x2c   : > { %255 = vst [vmem:[%s1527_s26 + $0x1a0] sm:$0xff] %v254_v52  ;;  %257 = vst [vmem:[%s1527_s26 + $0x1a8] sm:$0xff] %v256_v53  ;;  %v258_v54 = vld [vmem:[%s1519_s25 + $0x1b00] sm:$0xff]  ;;  %v260_v55 = vld [vmem:[%s1519_s25 + $0x1b08] sm:$0xff] }
  0x2d   : > { %v262_v56 = vld [vmem:[%s1519_s25 + $0x1c00] sm:$0xff]  ;;  %259 = vst [vmem:[%s1527_s26 + $0x1b0] sm:$0xff] %v258_v54  ;;  %261 = vst [vmem:[%s1527_s26 + $0x1b8] sm:$0xff] %v260_v55  ;;  %v264_v57 = vld [vmem:[%s1519_s25 + $0x1c08] sm:$0xff] }
  0x2e   : > { %263 = vst [vmem:[%s1527_s26 + $0x1c0] sm:$0xff] %v262_v56  ;;  %v266_v58 = vld [vmem:[%s1519_s25 + $0x1d00] sm:$0xff]  ;;  %v268_v59 = vld [vmem:[%s1519_s25 + $0x1d08] sm:$0xff]  ;;  %265 = vst [vmem:[%s1527_s26 + $0x1c8] sm:$0xff] %v264_v57 }
  0x2f   : > { %267 = vst [vmem:[%s1527_s26 + $0x1d0] sm:$0xff] %v266_v58  ;;  %269 = vst [vmem:[%s1527_s26 + $0x1d8] sm:$0xff] %v268_v59  ;;  %v270_v60 = vld [vmem:[%s1519_s25 + $0x1e00] sm:$0xff]  ;;  %v272_v61 = vld [vmem:[%s1519_s25 + $0x1e08] sm:$0xff] }
  0x30   : > { %v274_v62 = vld [vmem:[%s1519_s25 + $0x1f00] sm:$0xff]  ;;  %271 = vst [vmem:[%s1527_s26 + $0x1e0] sm:$0xff] %v270_v60  ;;  %273 = vst [vmem:[%s1527_s26 + $0x1e8] sm:$0xff] %v272_v61  ;;  %v276_v63 = vld [vmem:[%s1519_s25 + $0x1f08] sm:$0xff] }
  0x31   : > { %275 = vst [vmem:[%s1527_s26 + $0x1f0] sm:$0xff] %v274_v62  ;;  %v278_v0 = vld [vmem:[%s1519_s25 + $0x2000] sm:$0xff]  ;;  %v280_v1 = vld [vmem:[%s1519_s25 + $0x2008] sm:$0xff]  ;;  %277 = vst [vmem:[%s1527_s26 + $0x1f8] sm:$0xff] %v276_v63 }
  0x32   : > { %279 = vst [vmem:[%s1527_s26 + $0x200] sm:$0xff] %v278_v0  ;;  %281 = vst [vmem:[%s1527_s26 + $0x208] sm:$0xff] %v280_v1  ;;  %v282_v2 = vld [vmem:[%s1519_s25 + $0x2100] sm:$0xff]  ;;  %v284_v3 = vld [vmem:[%s1519_s25 + $0x2108] sm:$0xff] }
  0x33   : > { %v286_v4 = vld [vmem:[%s1519_s25 + $0x2200] sm:$0xff]  ;;  %283 = vst [vmem:[%s1527_s26 + $0x210] sm:$0xff] %v282_v2  ;;  %285 = vst [vmem:[%s1527_s26 + $0x218] sm:$0xff] %v284_v3  ;;  %v288_v5 = vld [vmem:[%s1519_s25 + $0x2208] sm:$0xff] }
  0x34   : > { %287 = vst [vmem:[%s1527_s26 + $0x220] sm:$0xff] %v286_v4  ;;  %v290_v6 = vld [vmem:[%s1519_s25 + $0x2300] sm:$0xff]  ;;  %v292_v7 = vld [vmem:[%s1519_s25 + $0x2308] sm:$0xff]  ;;  %289 = vst [vmem:[%s1527_s26 + $0x228] sm:$0xff] %v288_v5 }
  0x35   : > { %291 = vst [vmem:[%s1527_s26 + $0x230] sm:$0xff] %v290_v6  ;;  %293 = vst [vmem:[%s1527_s26 + $0x238] sm:$0xff] %v292_v7  ;;  %v294_v8 = vld [vmem:[%s1519_s25 + $0x2400] sm:$0xff]  ;;  %v296_v9 = vld [vmem:[%s1519_s25 + $0x2408] sm:$0xff] }
  0x36   : > { %v298_v10 = vld [vmem:[%s1519_s25 + $0x2500] sm:$0xff]  ;;  %295 = vst [vmem:[%s1527_s26 + $0x240] sm:$0xff] %v294_v8  ;;  %297 = vst [vmem:[%s1527_s26 + $0x248] sm:$0xff] %v296_v9  ;;  %v300_v11 = vld [vmem:[%s1519_s25 + $0x2508] sm:$0xff] }
  0x37   : > { %299 = vst [vmem:[%s1527_s26 + $0x250] sm:$0xff] %v298_v10  ;;  %v302_v12 = vld [vmem:[%s1519_s25 + $0x2600] sm:$0xff]  ;;  %v304_v13 = vld [vmem:[%s1519_s25 + $0x2608] sm:$0xff]  ;;  %301 = vst [vmem:[%s1527_s26 + $0x258] sm:$0xff] %v300_v11 }
  0x38   : > { %303 = vst [vmem:[%s1527_s26 + $0x260] sm:$0xff] %v302_v12  ;;  %305 = vst [vmem:[%s1527_s26 + $0x268] sm:$0xff] %v304_v13  ;;  %v306_v14 = vld [vmem:[%s1519_s25 + $0x2700] sm:$0xff]  ;;  %v308_v15 = vld [vmem:[%s1519_s25 + $0x2708] sm:$0xff] }
  0x39   : > { %v310_v16 = vld [vmem:[%s1519_s25 + $0x2800] sm:$0xff]  ;;  %307 = vst [vmem:[%s1527_s26 + $0x270] sm:$0xff] %v306_v14  ;;  %309 = vst [vmem:[%s1527_s26 + $0x278] sm:$0xff] %v308_v15  ;;  %v312_v17 = vld [vmem:[%s1519_s25 + $0x2808] sm:$0xff] }
  0x3a   : > { %311 = vst [vmem:[%s1527_s26 + $0x280] sm:$0xff] %v310_v16  ;;  %v314_v18 = vld [vmem:[%s1519_s25 + $0x2900] sm:$0xff]  ;;  %v316_v19 = vld [vmem:[%s1519_s25 + $0x2908] sm:$0xff]  ;;  %313 = vst [vmem:[%s1527_s26 + $0x288] sm:$0xff] %v312_v17 }
  0x3b   : > { %315 = vst [vmem:[%s1527_s26 + $0x290] sm:$0xff] %v314_v18  ;;  %317 = vst [vmem:[%s1527_s26 + $0x298] sm:$0xff] %v316_v19  ;;  %v318_v20 = vld [vmem:[%s1519_s25 + $0x2a00] sm:$0xff]  ;;  %v320_v21 = vld [vmem:[%s1519_s25 + $0x2a08] sm:$0xff] }
  0x3c   : > { %319 = vst [vmem:[%s1527_s26 + $0x2a0] sm:$0xff] %v318_v20  ;;  %321 = vst [vmem:[%s1527_s26 + $0x2a8] sm:$0xff] %v320_v21 }
  0x3d PF: > { %p1166_p5 = scmp.ge.s32.totalorder %s1461_s14, 1  ;;  %p326_p6 = scmp.lt.s32.totalorder %s1461_s14, 17 }
  0x3f   : > { %p327_p7 = pnand %p1166_p5, %p326_p6 }
  0x40   : > { %s333_s27 = sand.u32 (!%p327_p7), 1, %s1453_s12   ;;  %v1701_v22 = vld [vmem:[%s1819_s0] sm:$0xff] (!%p327_p7)  ;;  %v1463_v24 = vmov (!%p327_p7), 0   ;;  %vm902_vm0 = vcmask (!%p327_p7), 1042432   ;;  %vm903_vm1 = vcmask (!%p327_p7), 1043456   ;;  %vm898_vm2 = vcmask (!%p327_p7), 711680  }
  0x41   : > { %330 = sbr.rel (%p327_p7) target bundleno = 377 (0x179), region = 51  ;;  %v1170_v23 = vcombine.high (!%p327_p7), %v1701_v22, %v1701_v22  ;;  %1305 = vset.pattern.permute.xlu0 (!%p327_p7), %v1463_v24  ;;  %v452_v25 = vld [vmem:[%s1821_s2] sm:$0xff] (!%p327_p7)  ;;  %s1167_s9 = sshll.u32 (!%p327_p7), %s1160_s15, 2 }
  0x42   : > { %s1278_s30 = smul.u32 (!%p327_p7), 688, %s333_s27  ;;  %455 = vperm.xlu0 (!%p327_p7), %1305, %v452_v25   ;;  %p358_p8 = scmp.lt.s32.totalorder (!%p327_p7), %s1167_s9, 63 }
  0x43   : > { %950 = vmatprep.mubr.bf16.mxu0 (!%p327_p7), %v1170_v23  ;;  %1032 = vmatprep.mubr.bf16.mxu1 (!%p327_p7), %v1170_v23 }
  0x44   : > { %s1709_s6 = scalar_lea.vmem (!%p327_p7), [#allocation2], %s1278_s30 }
  0x45   : > { %v1306_v26 = vld [vmem:[%s1709_s6 + $0x4] ss:$16 sps:$4 sm:$0xff] (!%p327_p7)   ;;  %v1308_v27 = vld [vmem:[%s1709_s6 + $0xc] ss:$16 sps:$4 sm:$0xff] (!%p327_p7)   ;;  %v1310_v28 = vld [vmem:[%s1709_s6] ss:$16 sps:$4 sm:$0xff] (!%p327_p7)  }
  0x46   : > { %918 = vmatprep.subr.bf16.mxu0 (!%p327_p7), %v1306_v26  ;;  %v1311_v29 = vld [vmem:[%s1709_s6 + $0x8] ss:$16 sps:$4 sm:$0xff] (!%p327_p7)   ;;  %1000 = vmatprep.subr.bf16.mxu1 (!%p327_p7), %v1308_v27  ;;  %v1312_v30 = vld [vmem:[%s1709_s6 + $0x24] ss:$16 sps:$4 sm:$0xff] (!%p327_p7)   ;;  %v1314_v31 = vld [vmem:[%s1709_s6 + $0x2c] ss:$16 sps:$4 sm:$0xff] (!%p327_p7)  }
  0x47   : > { %919 = vmatpush1.bf16.msra.mxu0 (!%p327_p7), %v1310_v28  ;;  %1001 = vmatpush1.bf16.msra.mxu1 (!%p327_p7), %v1311_v29  ;;  %v1316_v32 = vld [vmem:[%s1709_s6 + $0x20] ss:$16 sps:$4 sm:$0xff] (!%p327_p7)   ;;  %v1317_v33 = vld [vmem:[%s1709_s6 + $0x28] ss:$16 sps:$4 sm:$0xff] (!%p327_p7)   ;;  %v1318_v34 = vld [vmem:[%s1709_s6 + $0x44] ss:$16 sps:$4 sm:$0xff] (!%p327_p7)  }
  0x48   : > { %920 = vmatprep.subr.bf16.mxu0 %v1312_v30  ;;  %1002 = vmatprep.subr.bf16.mxu1 %v1314_v31  ;;  %v1320_v35 = vld [vmem:[%s1709_s6 + $0x4c] ss:$16 sps:$4 sm:$0xff]   ;;  %v1322_v36 = vld [vmem:[%s1709_s6 + $0x40] ss:$16 sps:$4 sm:$0xff]   ;;  %v1323_v37 = vld [vmem:[%s1709_s6 + $0x48] ss:$16 sps:$4 sm:$0xff]   ;;  %v1169_v30 = vcombine.low %v1701_v22, %v1701_v22 }
  0x49   : > { %v1324_v38 = vld [vmem:[%s1709_s6 + $0x64] ss:$16 sps:$4 sm:$0xff]   ;;  %v1326_v39 = vld [vmem:[%s1709_s6 + $0x6c] ss:$16 sps:$4 sm:$0xff]   ;;  %v1328_v40 = vld [vmem:[%s1709_s6 + $0x60] ss:$16 sps:$4 sm:$0xff]  }
  0x4a   : > { %v1329_v41 = vld [vmem:[%s1709_s6 + $0x68] ss:$16 sps:$4 sm:$0xff]   ;;  %v1330_v42 = vld [vmem:[%s1709_s6 + $0x84] ss:$16 sps:$4 sm:$0xff]   ;;  %v1332_v43 = vld [vmem:[%s1709_s6 + $0x8c] ss:$16 sps:$4 sm:$0xff]  }
  0x4b   : > { %921 = vmatpush1.bf16.msra.mxu0 %v1316_v32  ;;  %1003 = vmatpush1.bf16.msra.mxu1 %v1317_v33  ;;  %v1334_v44 = vld [vmem:[%s1709_s6 + $0x80] ss:$16 sps:$4 sm:$0xff]   ;;  %v1335_v45 = vld [vmem:[%s1709_s6 + $0x88] ss:$16 sps:$4 sm:$0xff]   ;;  %v1336_v46 = vld [vmem:[%s1709_s6 + $0xa4] ss:$16 sps:$4 sm:$0xff]  }
  0x4c   : > { %922 = vmatprep.subr.bf16.mxu0 %v1318_v34  ;;  %1004 = vmatprep.subr.bf16.mxu1 %v1320_v35  ;;  %v1338_v47 = vld [vmem:[%s1709_s6 + $0xac] ss:$16 sps:$4 sm:$0xff]   ;;  %v1340_v48 = vld [vmem:[%s1709_s6 + $0xa0] ss:$16 sps:$4 sm:$0xff]   ;;  %v1341_v49 = vld [vmem:[%s1709_s6 + $0xa8] ss:$16 sps:$4 sm:$0xff]  }
  0x4d   : > { %v1342_v50 = vld [vmem:[%s1709_s6 + $0xc4] ss:$16 sps:$4 sm:$0xff]   ;;  %v1344_v51 = vld [vmem:[%s1709_s6 + $0xcc] ss:$16 sps:$4 sm:$0xff]   ;;  %v1346_v52 = vld [vmem:[%s1709_s6 + $0xc0] ss:$16 sps:$4 sm:$0xff]  }
  0x4e   : > { %v1347_v53 = vld [vmem:[%s1709_s6 + $0xc8] ss:$16 sps:$4 sm:$0xff]   ;;  %v1348_v54 = vld [vmem:[%s1709_s6 + $0xe4] ss:$16 sps:$4 sm:$0xff]   ;;  %v1350_v55 = vld [vmem:[%s1709_s6 + $0xec] ss:$16 sps:$4 sm:$0xff]  }
  0x4f   : > { %923 = vmatpush1.bf16.msra.mxu0 %v1322_v36  ;;  %1005 = vmatpush1.bf16.msra.mxu1 %v1323_v37  ;;  %v1352_v56 = vld [vmem:[%s1709_s6 + $0xe0] ss:$16 sps:$4 sm:$0xff]   ;;  %v1353_v57 = vld [vmem:[%s1709_s6 + $0xe8] ss:$16 sps:$4 sm:$0xff]   ;;  %v1354_v58 = vld [vmem:[%s1709_s6 + $0x104] ss:$16 sps:$4 sm:$0xff]  }
  0x50   : > { %924 = vmatprep.subr.bf16.mxu0 %v1324_v38  ;;  %1006 = vmatprep.subr.bf16.mxu1 %v1326_v39  ;;  %v1356_v59 = vld [vmem:[%s1709_s6 + $0x10c] ss:$16 sps:$4 sm:$0xff]   ;;  %v1358_v60 = vld [vmem:[%s1709_s6 + $0x100] ss:$16 sps:$4 sm:$0xff]   ;;  %v1359_v61 = vld [vmem:[%s1709_s6 + $0x108] ss:$16 sps:$4 sm:$0xff]  }
  0x51   : > { %v1360_v62 = vld [vmem:[%s1709_s6 + $0x124] ss:$16 sps:$4 sm:$0xff]   ;;  %v1362_v63 = vld [vmem:[%s1709_s6 + $0x12c] ss:$16 sps:$4 sm:$0xff]   ;;  %v1364_v0 = vld [vmem:[%s1709_s6 + $0x120] ss:$16 sps:$4 sm:$0xff]  }
  0x52   : > { %v1365_v1 = vld [vmem:[%s1709_s6 + $0x128] ss:$16 sps:$4 sm:$0xff]   ;;  %v1366_v2 = vld [vmem:[%s1709_s6 + $0x144] ss:$16 sps:$4 sm:$0xff]   ;;  %v1368_v3 = vld [vmem:[%s1709_s6 + $0x14c] ss:$16 sps:$4 sm:$0xff]  }
  0x53   : > { %925 = vmatpush1.bf16.msra.mxu0 %v1328_v40  ;;  %1007 = vmatpush1.bf16.msra.mxu1 %v1329_v41  ;;  %v1370_v4 = vld [vmem:[%s1709_s6 + $0x140] ss:$16 sps:$4 sm:$0xff]   ;;  %v1371_v5 = vld [vmem:[%s1709_s6 + $0x148] ss:$16 sps:$4 sm:$0xff]   ;;  %v1372_v6 = vld [vmem:[%s1709_s6 + $0x164] ss:$16 sps:$4 sm:$0xff]  }
  0x54   : > { %926 = vmatprep.subr.bf16.mxu0 %v1330_v42  ;;  %1008 = vmatprep.subr.bf16.mxu1 %v1332_v43  ;;  %v1374_v7 = vld [vmem:[%s1709_s6 + $0x16c] ss:$16 sps:$4 sm:$0xff]   ;;  %v1376_v8 = vld [vmem:[%s1709_s6 + $0x160] ss:$16 sps:$4 sm:$0xff]   ;;  %v1377_v9 = vld [vmem:[%s1709_s6 + $0x168] ss:$16 sps:$4 sm:$0xff]  }
  0x55   : > { %v1378_v10 = vld [vmem:[%s1709_s6 + $0x184] ss:$16 sps:$4 sm:$0xff]   ;;  %v1380_v11 = vld [vmem:[%s1709_s6 + $0x18c] ss:$16 sps:$4 sm:$0xff]   ;;  %v1382_v12 = vld [vmem:[%s1709_s6 + $0x180] ss:$16 sps:$4 sm:$0xff]  }
  0x56   : > { %v1383_v13 = vld [vmem:[%s1709_s6 + $0x188] ss:$16 sps:$4 sm:$0xff]   ;;  %v1384_v14 = vld [vmem:[%s1709_s6 + $0x1a4] ss:$16 sps:$4 sm:$0xff]   ;;  %v1386_v15 = vld [vmem:[%s1709_s6 + $0x1ac] ss:$16 sps:$4 sm:$0xff]  }
  0x57   : > { %927 = vmatpush1.bf16.msra.mxu0 %v1334_v44  ;;  %1009 = vmatpush1.bf16.msra.mxu1 %v1335_v45  ;;  %v1388_v16 = vld [vmem:[%s1709_s6 + $0x1a0] ss:$16 sps:$4 sm:$0xff]   ;;  %v1389_v17 = vld [vmem:[%s1709_s6 + $0x1a8] ss:$16 sps:$4 sm:$0xff]   ;;  %v1390_v18 = vld [vmem:[%s1709_s6 + $0x1c4] ss:$16 sps:$4 sm:$0xff]  }
  0x58   : > { %928 = vmatprep.subr.bf16.mxu0 %v1336_v46  ;;  %1010 = vmatprep.subr.bf16.mxu1 %v1338_v47  ;;  %v1392_v19 = vld [vmem:[%s1709_s6 + $0x1cc] ss:$16 sps:$4 sm:$0xff]   ;;  %v1394_v20 = vld [vmem:[%s1709_s6 + $0x1c0] ss:$16 sps:$4 sm:$0xff]   ;;  %v1395_v21 = vld [vmem:[%s1709_s6 + $0x1c8] ss:$16 sps:$4 sm:$0xff]  }
  0x59   : > { %v1396_v23 = vld [vmem:[%s1709_s6 + $0x1e4] ss:$16 sps:$4 sm:$0xff]   ;;  %v1398_v25 = vld [vmem:[%s1709_s6 + $0x1ec] ss:$16 sps:$4 sm:$0xff]   ;;  %v1400_v26 = vld [vmem:[%s1709_s6 + $0x1e0] ss:$16 sps:$4 sm:$0xff]  }
  0x5a   : > { %v1401_v27 = vld [vmem:[%s1709_s6 + $0x1e8] ss:$16 sps:$4 sm:$0xff]   ;;  %v1406_v28 = vld [vmem:[%s1709_s6 + $0x204] ss:$16 sps:$4 sm:$0xff]   ;;  %v1409_v29 = vld [vmem:[%s1709_s6 + $0x20c] ss:$16 sps:$4 sm:$0xff]  }
  0x5b   : > { %929 = vmatpush1.bf16.msra.mxu0 %v1340_v48  ;;  %1011 = vmatpush1.bf16.msra.mxu1 %v1341_v49  ;;  %v1404_v31 = vld [vmem:[%s1709_s6 + $0x200] ss:$16 sps:$4 sm:$0xff]   ;;  %v1407_v32 = vld [vmem:[%s1709_s6 + $0x208] ss:$16 sps:$4 sm:$0xff]   ;;  %v1412_v33 = vld [vmem:[%s1709_s6 + $0x224] ss:$16 sps:$4 sm:$0xff]  }
  0x5c   : > { %930 = vmatprep.subr.bf16.mxu0 %v1342_v50  ;;  %1012 = vmatprep.subr.bf16.mxu1 %v1344_v51  ;;  %v1415_v34 = vld [vmem:[%s1709_s6 + $0x22c] ss:$16 sps:$4 sm:$0xff]   ;;  %v1410_v35 = vld [vmem:[%s1709_s6 + $0x220] ss:$16 sps:$4 sm:$0xff]   ;;  %v1413_v22 = vld [vmem:[%s1709_s6 + $0x228] ss:$16 sps:$4 sm:$0xff]  }
  0x5d   : > { %v1418_v36 = vld [vmem:[%s1709_s6 + $0x244] ss:$16 sps:$4 sm:$0xff]   ;;  %v1421_v37 = vld [vmem:[%s1709_s6 + $0x24c] ss:$16 sps:$4 sm:$0xff]   ;;  %v1416_v38 = vld [vmem:[%s1709_s6 + $0x240] ss:$16 sps:$4 sm:$0xff]  }
  0x5e   : > { %v1419_v39 = vld [vmem:[%s1709_s6 + $0x248] ss:$16 sps:$4 sm:$0xff]   ;;  %v1424_v40 = vld [vmem:[%s1709_s6 + $0x264] ss:$16 sps:$4 sm:$0xff]   ;;  %v1427_v41 = vld [vmem:[%s1709_s6 + $0x26c] ss:$16 sps:$4 sm:$0xff]  }
  0x5f   : > { %931 = vmatpush1.bf16.msra.mxu0 %v1346_v52  ;;  %1013 = vmatpush1.bf16.msra.mxu1 %v1347_v53  ;;  %v450_v42 = vld [vmem:[%s1709_s6 + $0x2a0] sm:$0xff]  ;;  %v451_v43 = vld [vmem:[%s1709_s6 + $0x2a8] sm:$0xff]  ;;  %v1464_v44 = vmov 65535   ;;  %s1827_s9 = smov (!%p358_p8, %s1167_s9), 63 }
  0x60   : > { %932 = vmatprep.subr.bf16.mxu0 %v1348_v54  ;;  %1014 = vmatprep.subr.bf16.mxu1 %v1350_v55  ;;  %v1422_v45 = vld [vmem:[%s1709_s6 + $0x260] ss:$16 sps:$4 sm:$0xff]   ;;  %v1425_v46 = vld [vmem:[%s1709_s6 + $0x268] ss:$16 sps:$4 sm:$0xff]   ;;  %v1430_v47 = vld [vmem:[%s1709_s6 + $0x284] ss:$16 sps:$4 sm:$0xff]   ;;  %v1257_v49 = vcombine.high %v450_v42, %v450_v42  ;;  %v1259_v50 = vcombine.high %v451_v43, %v451_v43  ;;  %v1256_v54 = vcombine.low %v450_v42, %v450_v42 }
  0x61   : > { %v1433_v48 = vld [vmem:[%s1709_s6 + $0x28c] ss:$16 sps:$4 sm:$0xff]   ;;  %v1428_v52 = vld [vmem:[%s1709_s6 + $0x280] ss:$16 sps:$4 sm:$0xff]   ;;  %v1431_v53 = vld [vmem:[%s1709_s6 + $0x288] ss:$16 sps:$4 sm:$0xff]   ;;  %v1258_v55 = vcombine.low %v451_v43, %v451_v43 }
  0x62   : > { %s1168_s10 = sshll.u32 %s1827_s9, 3 }
  0x63   : > { %933 = vmatpush1.bf16.msra.mxu0 %v1352_v56  ;;  %1015 = vmatpush1.bf16.msra.mxu1 %v1353_v57  ;;  %s361_s17 = scalar_lea.vmem %s1822_s3, %s1168_s10 }
  0x64   : > { %934 = vmatprep.subr.bf16.mxu0 %v1354_v58  ;;  %1016 = vmatprep.subr.bf16.mxu1 %v1356_v59 }
  0x67   : > { %935 = vmatpush1.bf16.msra.mxu0 %v1358_v60  ;;  %1017 = vmatpush1.bf16.msra.mxu1 %v1359_v61  ;;  %v1438_v60 = vld [vmem:[%s1819_s0 + $0x8] ss:$0 sps:$4 sm:$0xff]  }
  0x68   : > { %936 = vmatprep.subr.bf16.mxu0 %v1360_v62  ;;  %1018 = vmatprep.subr.bf16.mxu1 %v1362_v63 }
  0x6b   : > { %937 = vmatpush1.bf16.msra.mxu0 %v1364_v0  ;;  %1019 = vmatpush1.bf16.msra.mxu1 %v1365_v1 }
  0x6c   : > { %938 = vmatprep.subr.bf16.mxu0 %v1366_v2  ;;  %1020 = vmatprep.subr.bf16.mxu1 %v1368_v3 }
  0x6f   : > { %939 = vmatpush1.bf16.msra.mxu0 %v1370_v4  ;;  %1021 = vmatpush1.bf16.msra.mxu1 %v1371_v5 }
  0x70   : > { %940 = vmatprep.subr.bf16.mxu0 %v1372_v6  ;;  %1022 = vmatprep.subr.bf16.mxu1 %v1374_v7 }
  0x73   : > { %941 = vmatpush1.bf16.msra.mxu0 %v1376_v8  ;;  %1023 = vmatpush1.bf16.msra.mxu1 %v1377_v9 }
  0x74   : > { %942 = vmatprep.subr.bf16.mxu0 %v1378_v10  ;;  %1024 = vmatprep.subr.bf16.mxu1 %v1380_v11 }
  0x77   : > { %943 = vmatpush1.bf16.msra.mxu0 %v1382_v12  ;;  %1025 = vmatpush1.bf16.msra.mxu1 %v1383_v13 }
  0x78   : > { %944 = vmatprep.subr.bf16.mxu0 %v1384_v14  ;;  %1026 = vmatprep.subr.bf16.mxu1 %v1386_v15 }
  0x7b   : > { %945 = vmatpush1.bf16.msra.mxu0 %v1388_v16  ;;  %1027 = vmatpush1.bf16.msra.mxu1 %v1389_v17 }
  0x7c   : > { %946 = vmatprep.subr.bf16.mxu0 %v1390_v18  ;;  %1028 = vmatprep.subr.bf16.mxu1 %v1392_v19 }
  0x7f   : > { %947 = vmatpush1.bf16.msra.mxu0 %v1394_v20  ;;  %1029 = vmatpush1.bf16.msra.mxu1 %v1395_v21 }
  0x80   : > { %948 = vmatprep.subr.bf16.mxu0 %v1396_v23  ;;  %1030 = vmatprep.subr.bf16.mxu1 %v1398_v25 }
  0x83   : > { %949 = vmatpush1.bf16.msra.mxu0 %v1400_v26  ;;  %1031 = vmatpush1.bf16.msra.mxu1 %v1401_v27 }
  0x84   : > { %959 = vmatprep.subr.bf16.mxu0 %v1406_v28  ;;  %1041 = vmatprep.subr.bf16.mxu1 %v1409_v29 }
  0x86   : > { %951 = vmatmul.mubr.bf16.vlgmr.msra.gmra.mrb[0].mxu0 %v1169_v30  ;;  %1033 = vmatmul.mubr.bf16.vlgmr.msra.gmra.mrb[0].mxu1 %v1169_v30 }
  0x87   : > { %960 = vmatpush1.bf16.msra.mxu0 %v1404_v31  ;;  %1042 = vmatpush1.bf16.msra.mxu1 %v1407_v32 }
  0x88   : > { %961 = vmatprep.subr.bf16.mxu0 %v1412_v33  ;;  %1043 = vmatprep.subr.bf16.mxu1 %v1415_v34 }
  0x89   : > { %991 = vmatprep.mubr.bf16.mxu0 %v1463_v24  ;;  %1073 = vmatprep.mubr.bf16.mxu1 %v1463_v24  ;;  %v904_v24 = vsel %vm902_vm0, 4294967295, %v1464_v44 }
  0x8a   : > { %v905_v51 = vsel %vm903_vm1, %v904_v24, 0 }
  0x8b   : > { %962 = vmatpush1.bf16.msra.mxu0 %v1410_v35  ;;  %1044 = vmatpush1.bf16.msra.mxu1 %v1413_v22  ;;  %v910_v56 = vand.u32 %v1257_v49, %v905_v51  ;;  %v916_v57 = vand.u32 %v1259_v50, %v905_v51  ;;  %v907_v58 = vand.u32 %v1256_v54, %v905_v51 }
  0x8c   : > { %963 = vmatprep.subr.bf16.mxu0 %v1418_v36  ;;  %1045 = vmatprep.subr.bf16.mxu1 %v1421_v37  ;;  %v913_v59 = vand.u32 %v1258_v55, %v905_v51 }
  0x8f   : > { %964 = vmatpush1.bf16.msra.mxu0 %v1416_v38  ;;  %1046 = vmatpush1.bf16.msra.mxu1 %v1419_v39 }
  0x90   : > { %965 = vmatprep.subr.bf16.mxu0 %v1424_v40  ;;  %1047 = vmatprep.subr.bf16.mxu1 %v1427_v41 }
  0x93   : > { %966 = vmatpush1.bf16.msra.mxu0 %v1422_v45  ;;  %1048 = vmatpush1.bf16.msra.mxu1 %v1425_v46 }
  0x94   : > { %967 = vmatprep.subr.bf16.mxu0 %v1430_v47  ;;  %1049 = vmatprep.subr.bf16.mxu1 %v1433_v48 }
  0x97   : > { %968 = vmatpush1.bf16.msra.mxu0 %v1428_v52  ;;  %1050 = vmatpush1.bf16.msra.mxu1 %v1431_v53 }
  0x98   : > { %969 = vmatprep.subr.bf16.mxu0 %v910_v56  ;;  %1051 = vmatprep.subr.bf16.mxu1 %v916_v57 }
  0x9b   : > { %970 = vmatpush1.bf16.msra.mxu0 %v907_v58  ;;  %1052 = vmatpush1.bf16.msra.mxu1 %v913_v59 }
  0x9e   : > { %1260 = vmatmul.mubr.msk.bf16.vlgmr.msra.gmra.mrb[0].mxu0 %vm898_vm2, %v1438_v60  ;;  %1261 = vmatmul.mubr.msk.bf16.vlgmr.msra.gmra.mrb[0].mxu1 %vm898_vm2, %v1438_v60 }
  0xc1   : > { %v456_v61 = vpop.permute.xlu0 %455 }
 0x171   : > { %v993_v62 = vpop.f32.mrb[0].mxu0  ;;  %v1075_v63 = vpop.f32.mrb[0].mxu1 }
 0x172   : > { %v1265_v0 = vadd.f32 %v993_v62, %v456_v61  ;;  %v1267_v1 = vadd.f32 %v1075_v63, %v456_v61  ;;  %v995_v2 = vpop.f32.mrb[1].mxu0  ;;  %v1077_v3 = vpop.f32.mrb[1].mxu1 }
 0x173   : > { %v1266_v4 = vadd.f32 %v995_v2, %v456_v61  ;;  %v1268_v5 = vadd.f32 %v1077_v3, %v456_v61  ;;  %v997_v6 = vpop.f32.mrb[2].mxu0  ;;  %v1079_v7 = vpop.f32.mrb[2].mxu1 }
 0x174   : > { %vm1082_vm3 = vcmp.ge.f32.partialorder %v1265_v0, 0.0  ;;  %v1086_v8 = vmul.f32 0.2, %v1265_v0  ;;  %vm1084_vm4 = vcmp.ge.f32.partialorder %v1267_v1, 0.0  ;;  %v1088_v9 = vmul.f32 0.2, %v1267_v1 }
 0x175   : > { %vm1083_vm5 = vcmp.ge.f32.partialorder %v1266_v4, 0.0  ;;  %v1087_v10 = vmul.f32 0.2, %v1266_v4  ;;  %vm1085_vm6 = vcmp.ge.f32.partialorder %v1268_v5, 0.0  ;;  %v1089_v11 = vmul.f32 0.2, %v1268_v5 }
 0x176   : > { %v1090_v12 = vsel %vm1082_vm3, %v1265_v0, %v1086_v8  ;;  %v1092_v13 = vsel %vm1084_vm4, %v1267_v1, %v1088_v9  ;;  %v998_v14 = vpop.f32.mrb[3].mxu0  ;;  %v1080_v15 = vpop.f32.mrb[3].mxu1 }
 0x177   : > { %1094 = vst [vmem:[%s361_s17] sm:$0xff] %v1090_v12  ;;  %1096 = vst [vmem:[%s361_s17 + $0x10] sm:$0xff] %v1092_v13  ;;  %v1091_v16 = vsel %vm1083_vm5, %v1266_v4, %v1087_v10  ;;  %v1093_v17 = vsel %vm1085_vm6, %v1268_v5, %v1089_v11 }
 0x178   : > { %1095 = vst [vmem:[%s361_s17 + $0x8] sm:$0xff] %v1091_v16  ;;  %1097 = vst [vmem:[%s361_s17 + $0x18] sm:$0xff] %v1093_v17 }
 0x179 PF: > { %p10_p9 = scmp.ge.s32.totalorder %s1502_s16, 18   ;;  %s1823_s12 = smov %s1457_s13 }
 0x17a   : > { %s1824_s13 = smov %s1511_s19  ;;  %s1825_s14 = smov %s1502_s16 }
 0x17b   :  { %12 = sbr.rel (!%p10_p9) target bundleno = 2 (0x2), region = 90 }

// kernel: appearance_model_style_forward.15
= control target key start
LH: loop header
LB: loop body
LE: loop exit
PB: predicated region body
PF: predicated region fallthrough
CT: control target
= control target key end

     0   :  { %s755_s12 = smov 0   ;;  %s757_s13 = smov 0   ;;  %s903_s0 = inlined_call_operand.vmem [shape: bf16[8,108], index: 0, kind: input, shape index: {}]   ;;  %s904_s1 = inlined_call_operand.vmem [shape: bf16[108,1024], index: 1, kind: input, shape index: {}]   ;;  %s905_s2 = inlined_call_operand.vmem [shape: f32[8,1], index: 2, kind: input, shape index: {}]   ;;  %s906_s3 = inlined_call_operand.vmem [shape: f32[8,1024], index: 3, kind: output, shape index: {}]  }
   0x1   :  { %s759_s14 = smov 0  }
   0x2 LB: > { %s596_s15 = sadd.s32 4294967295, %s732_s14   ;;  %s772_s16 = sadd.s32 1, %s732_s14   ;;  %s732_s14 = sphi %s759_s14, %s909_s14   ;;  %s728_s13 = sphi %s757_s13, %s908_s13   ;;  %s724_s12 = sphi %s755_s12, %s907_s12  }
   0x3   : > { %s38_s17 = ssub.s32 %s732_s14, %s772_s16  ;;  %s41_s18 = sadd.s32 1, %s728_s13 }
   0x4   : > { %p39_p0 = scmp.eq.s32.totalorder %s38_s17, 0  ;;  %p48_p1 = scmp.ne.s32.totalorder %s728_s13, %s724_s12 }
   0x5   : > { %p49_p2 = scmp.eq.s32.totalorder %s732_s14, 0  ;;  %p599_p4 = scmp.ge.s32.totalorder %s732_s14, 2 }
   0x6   : > { %s781_s19 = scalar_select %p39_p0, %s728_s13, %s41_s18  }
   0x7   : > { %p50_p3 = por %p49_p2, %p48_p1  ;;  %127 = sbr.rel (%p599_p4) target bundleno = 32 (0x20), region = 24 }
   0xe   : > { %130 = sbr.rel (!%p50_p3) target bundleno = 32 (0x20), region = 28  ;;  %s132_s20 = sand.u32 (%p50_p3), 1, %s728_s13  }
   0xf   : > { %s639_s21 = sshll.u32 (%p50_p3), %s732_s14, 4  ;;  %s640_s22 = smul.u32 (%p50_p3), 224, %s132_s20 }
  0x10   : > { %s789_s25 = scalar_lea.vmem (%p50_p3), %s904_s1, %s639_s21 }
  0x11   : > { %v150_v0 = vld [vmem:[%s789_s25] sm:$0xff] (%p50_p3)  ;;  %v152_v1 = vld [vmem:[%s789_s25 + $0x8] sm:$0xff] (%p50_p3)  ;;  %s797_s26 = scalar_lea.vmem (%p50_p3), [#allocation2], %s640_s22 }
  0x12   : > { %v154_v2 = vld [vmem:[%s789_s25 + $0x20] sm:$0xff] (%p50_p3)  ;;  %v156_v3 = vld [vmem:[%s789_s25 + $0x28] sm:$0xff] (%p50_p3)  ;;  %151 = vst [vmem:[%s797_s26] sm:$0xff] (%p50_p3), %v150_v0  ;;  %153 = vst [vmem:[%s797_s26 + $0x8] sm:$0xff] (%p50_p3), %v152_v1 }
  0x13   : > { %v158_v4 = vld [vmem:[%s789_s25 + $0x40] sm:$0xff] (%p50_p3)  ;;  %v160_v5 = vld [vmem:[%s789_s25 + $0x48] sm:$0xff] (%p50_p3)  ;;  %155 = vst [vmem:[%s797_s26 + $0x10] sm:$0xff] (%p50_p3), %v154_v2  ;;  %157 = vst [vmem:[%s797_s26 + $0x18] sm:$0xff] (%p50_p3), %v156_v3 }
  0x14   : > { %159 = vst [vmem:[%s797_s26 + $0x20] sm:$0xff] (%p50_p3), %v158_v4  ;;  %161 = vst [vmem:[%s797_s26 + $0x28] sm:$0xff] (%p50_p3), %v160_v5  ;;  %v162_v6 = vld [vmem:[%s789_s25 + $0x60] sm:$0xff] (%p50_p3)  ;;  %v164_v7 = vld [vmem:[%s789_s25 + $0x68] sm:$0xff] (%p50_p3) }
  0x15   : > { %v166_v8 = vld [vmem:[%s789_s25 + $0x80] sm:$0xff]  ;;  %163 = vst [vmem:[%s797_s26 + $0x30] sm:$0xff] %v162_v6  ;;  %165 = vst [vmem:[%s797_s26 + $0x38] sm:$0xff] %v164_v7  ;;  %v168_v9 = vld [vmem:[%s789_s25 + $0x88] sm:$0xff] }
  0x16   : > { %167 = vst [vmem:[%s797_s26 + $0x40] sm:$0xff] %v166_v8  ;;  %v170_v10 = vld [vmem:[%s789_s25 + $0xa0] sm:$0xff]  ;;  %v172_v11 = vld [vmem:[%s789_s25 + $0xa8] sm:$0xff]  ;;  %169 = vst [vmem:[%s797_s26 + $0x48] sm:$0xff] %v168_v9 }
  0x17   : > { %171 = vst [vmem:[%s797_s26 + $0x50] sm:$0xff] %v170_v10  ;;  %173 = vst [vmem:[%s797_s26 + $0x58] sm:$0xff] %v172_v11  ;;  %v174_v12 = vld [vmem:[%s789_s25 + $0xc0] sm:$0xff]  ;;  %v176_v13 = vld [vmem:[%s789_s25 + $0xc8] sm:$0xff] }
  0x18   : > { %v178_v14 = vld [vmem:[%s789_s25 + $0xe0] sm:$0xff]  ;;  %175 = vst [vmem:[%s797_s26 + $0x60] sm:$0xff] %v174_v12  ;;  %177 = vst [vmem:[%s797_s26 + $0x68] sm:$0xff] %v176_v13  ;;  %v180_v15 = vld [vmem:[%s789_s25 + $0xe8] sm:$0xff] }
  0x19   : > { %179 = vst [vmem:[%s797_s26 + $0x70] sm:$0xff] %v178_v14  ;;  %v182_v16 = vld [vmem:[%s789_s25 + $0x100] sm:$0xff]  ;;  %v184_v17 = vld [vmem:[%s789_s25 + $0x108] sm:$0xff]  ;;  %181 = vst [vmem:[%s797_s26 + $0x78] sm:$0xff] %v180_v15 }
  0x1a   : > { %183 = vst [vmem:[%s797_s26 + $0x80] sm:$0xff] %v182_v16  ;;  %185 = vst [vmem:[%s797_s26 + $0x88] sm:$0xff] %v184_v17  ;;  %v186_v18 = vld [vmem:[%s789_s25 + $0x120] sm:$0xff]  ;;  %v188_v19 = vld [vmem:[%s789_s25 + $0x128] sm:$0xff] }
  0x1b   : > { %v190_v20 = vld [vmem:[%s789_s25 + $0x140] sm:$0xff]  ;;  %187 = vst [vmem:[%s797_s26 + $0x90] sm:$0xff] %v186_v18  ;;  %189 = vst [vmem:[%s797_s26 + $0x98] sm:$0xff] %v188_v19  ;;  %v192_v21 = vld [vmem:[%s789_s25 + $0x148] sm:$0xff] }
  0x1c   : > { %191 = vst [vmem:[%s797_s26 + $0xa0] sm:$0xff] %v190_v20  ;;  %v194_v22 = vld [vmem:[%s789_s25 + $0x160] sm:$0xff]  ;;  %v196_v23 = vld [vmem:[%s789_s25 + $0x168] sm:$0xff]  ;;  %193 = vst [vmem:[%s797_s26 + $0xa8] sm:$0xff] %v192_v21 }
  0x1d   : > { %195 = vst [vmem:[%s797_s26 + $0xb0] sm:$0xff] %v194_v22  ;;  %197 = vst [vmem:[%s797_s26 + $0xb8] sm:$0xff] %v196_v23  ;;  %v198_v24 = vld [vmem:[%s789_s25 + $0x180] sm:$0xff]  ;;  %v200_v25 = vld [vmem:[%s789_s25 + $0x188] sm:$0xff] }
  0x1e   : > { %v202_v26 = vld [vmem:[%s789_s25 + $0x1a0] sm:$0xff]  ;;  %199 = vst [vmem:[%s797_s26 + $0xc0] sm:$0xff] %v198_v24  ;;  %201 = vst [vmem:[%s797_s26 + $0xc8] sm:$0xff] %v200_v25  ;;  %v204_v27 = vld [vmem:[%s789_s25 + $0x1a8] sm:$0xff] }
  0x1f   : > { %203 = vst [vmem:[%s797_s26 + $0xd0] sm:$0xff] %v202_v26  ;;  %205 = vst [vmem:[%s797_s26 + $0xd8] sm:$0xff] %v204_v27 }
  0x20 PF: > { %p602_p5 = scmp.ge.s32.totalorder %s732_s14, 1  ;;  %p210_p6 = scmp.lt.s32.totalorder %s732_s14, 3 }
  0x22   : > { %p211_p7 = pnand %p602_p5, %p210_p6 }
  0x23   : > { %s217_s27 = sand.u32 (!%p211_p7), 1, %s724_s12   ;;  %v734_v28 = vmov (!%p211_p7), 0   ;;  %v277_v29 = vld [vmem:[%s905_s2] sm:$0xff] (!%p211_p7)  ;;  %vm423_vm0 = vcmask (!%p211_p7), 1045504   ;;  %vm419_vm1 = vcmask (!%p211_p7), 883712   ;;  %s603_s7 = sshll.u32 (!%p211_p7), %s596_s15, 2 }
  0x24   : > { %214 = sbr.rel (%p211_p7) target bundleno = 288 (0x120), region = 51  ;;  %468 = vmatprep.mubr.bf16.mxu0 (!%p211_p7), %v734_v28  ;;  %509 = vmatprep.mubr.bf16.mxu1 (!%p211_p7), %v734_v28  ;;  %v248_v60 = vld [vmem:[%s903_s0] sm:$0xf] (!%p211_p7)  ;;  %p242_p8 = scmp.lt.s32.totalorder (!%p211_p7), %s603_s7, 7 }
  0x25   : > { %s641_s28 = smul.u32 (!%p211_p7), 224, %s217_s27  ;;  %667 = vset.pattern.permute.xlu0 (!%p211_p7), %v734_v28 }
  0x26   : > { %280 = vperm.xlu0 (!%p211_p7), %667, %v277_v29  }
  0x27   : > { %s855_s4 = scalar_lea.vmem (!%p211_p7), [#allocation2], %s641_s28 }
  0x28   : > { %v668_v30 = vld [vmem:[%s855_s4 + $0x4] ss:$16 sps:$4 sm:$0xff] (!%p211_p7)   ;;  %v670_v31 = vld [vmem:[%s855_s4 + $0xc] ss:$16 sps:$4 sm:$0xff] (!%p211_p7)   ;;  %v672_v32 = vld [vmem:[%s855_s4] ss:$16 sps:$4 sm:$0xff] (!%p211_p7)  }
  0x29   : > { %436 = vmatprep.subr.bf16.mxu0 (!%p211_p7), %v668_v30  ;;  %v673_v33 = vld [vmem:[%s855_s4 + $0x8] ss:$16 sps:$4 sm:$0xff] (!%p211_p7)   ;;  %477 = vmatprep.subr.bf16.mxu1 (!%p211_p7), %v670_v31  ;;  %v674_v34 = vld [vmem:[%s855_s4 + $0x24] ss:$16 sps:$4 sm:$0xff] (!%p211_p7)   ;;  %v676_v35 = vld [vmem:[%s855_s4 + $0x2c] ss:$16 sps:$4 sm:$0xff] (!%p211_p7)  }
  0x2a   : > { %437 = vmatpush1.bf16.msra.mxu0 (!%p211_p7), %v672_v32  ;;  %478 = vmatpush1.bf16.msra.mxu1 (!%p211_p7), %v673_v33  ;;  %v678_v36 = vld [vmem:[%s855_s4 + $0x20] ss:$16 sps:$4 sm:$0xff] (!%p211_p7)   ;;  %v679_v37 = vld [vmem:[%s855_s4 + $0x28] ss:$16 sps:$4 sm:$0xff] (!%p211_p7)   ;;  %v680_v38 = vld [vmem:[%s855_s4 + $0x44] ss:$16 sps:$4 sm:$0xff] (!%p211_p7)  }
  0x2b   : > { %438 = vmatprep.subr.bf16.mxu0 %v674_v34  ;;  %479 = vmatprep.subr.bf16.mxu1 %v676_v35  ;;  %v682_v39 = vld [vmem:[%s855_s4 + $0x4c] ss:$16 sps:$4 sm:$0xff]   ;;  %v684_v40 = vld [vmem:[%s855_s4 + $0x40] ss:$16 sps:$4 sm:$0xff]   ;;  %v685_v41 = vld [vmem:[%s855_s4 + $0x48] ss:$16 sps:$4 sm:$0xff]  }
  0x2c   : > { %v686_v42 = vld [vmem:[%s855_s4 + $0x64] ss:$16 sps:$4 sm:$0xff]   ;;  %v688_v43 = vld [vmem:[%s855_s4 + $0x6c] ss:$16 sps:$4 sm:$0xff]   ;;  %v690_v44 = vld [vmem:[%s855_s4 + $0x60] ss:$16 sps:$4 sm:$0xff]  }
  0x2d   : > { %v691_v45 = vld [vmem:[%s855_s4 + $0x68] ss:$16 sps:$4 sm:$0xff]   ;;  %v692_v46 = vld [vmem:[%s855_s4 + $0x84] ss:$16 sps:$4 sm:$0xff]   ;;  %v694_v47 = vld [vmem:[%s855_s4 + $0x8c] ss:$16 sps:$4 sm:$0xff]  }
  0x2e   : > { %439 = vmatpush1.bf16.msra.mxu0 %v678_v36  ;;  %480 = vmatpush1.bf16.msra.mxu1 %v679_v37  ;;  %v696_v48 = vld [vmem:[%s855_s4 + $0x80] ss:$16 sps:$4 sm:$0xff]   ;;  %v697_v49 = vld [vmem:[%s855_s4 + $0x88] ss:$16 sps:$4 sm:$0xff]   ;;  %v698_v50 = vld [vmem:[%s855_s4 + $0xa4] ss:$16 sps:$4 sm:$0xff]  }
  0x2f   : > { %440 = vmatprep.subr.bf16.mxu0 %v680_v38  ;;  %481 = vmatprep.subr.bf16.mxu1 %v682_v39  ;;  %v700_v51 = vld [vmem:[%s855_s4 + $0xac] ss:$16 sps:$4 sm:$0xff]   ;;  %v702_v52 = vld [vmem:[%s855_s4 + $0xa0] ss:$16 sps:$4 sm:$0xff]   ;;  %v703_v53 = vld [vmem:[%s855_s4 + $0xa8] ss:$16 sps:$4 sm:$0xff]  }
  0x30   : > { %v704_v54 = vld [vmem:[%s855_s4 + $0xc4] ss:$16 sps:$4 sm:$0x3f]   ;;  %v706_v55 = vld [vmem:[%s855_s4 + $0xcc] ss:$16 sps:$4 sm:$0x3f]  }
  0x31   : > { %v708_v56 = vld [vmem:[%s855_s4 + $0xc0] ss:$16 sps:$4 sm:$0x3f]   ;;  %v709_v57 = vld [vmem:[%s855_s4 + $0xc8] ss:$16 sps:$4 sm:$0x3f]  }
  0x32   : > { %441 = vmatpush1.bf16.msra.mxu0 %v684_v40  ;;  %482 = vmatpush1.bf16.msra.mxu1 %v685_v41  ;;  %v425_v58 = vsel %vm423_vm0, %v708_v56, 0  ;;  %v431_v59 = vsel %vm423_vm0, %v709_v57, 0  ;;  %s911_s7 = smov (!%p242_p8, %s603_s7), 7 }
  0x33   : > { %442 = vmatprep.subr.bf16.mxu0 %v686_v42  ;;  %483 = vmatprep.subr.bf16.mxu1 %v688_v43  ;;  %s604_s8 = sshll.u32 %s911_s7, 3 }
  0x34   : > { %s245_s11 = scalar_lea.vmem %s906_s3, %s604_s8 }
  0x36   : > { %443 = vmatpush1.bf16.msra.mxu0 %v690_v44  ;;  %484 = vmatpush1.bf16.msra.mxu1 %v691_v45 }
  0x37   : > { %444 = vmatprep.subr.bf16.mxu0 %v692_v46  ;;  %485 = vmatprep.subr.bf16.mxu1 %v694_v47 }
  0x3a   : > { %445 = vmatpush1.bf16.msra.mxu0 %v696_v48  ;;  %486 = vmatpush1.bf16.msra.mxu1 %v697_v49 }
  0x3b   : > { %446 = vmatprep.subr.bf16.mxu0 %v698_v50  ;;  %487 = vmatprep.subr.bf16.mxu1 %v700_v51 }
  0x3e   : > { %447 = vmatpush1.bf16.msra.mxu0 %v702_v52  ;;  %488 = vmatpush1.bf16.msra.mxu1 %v703_v53 }
  0x3f   : > { %633 = vmatprep.subr.msk.bf16.mxu0 %vm423_vm0, %v704_v54  ;;  %635 = vmatprep.subr.msk.bf16.mxu1 %vm423_vm0, %v706_v55 }
  0x42   : > { %449 = vmatpush1.bf16.msra.mxu0 %v425_v58  ;;  %490 = vmatpush1.bf16.msra.mxu1 %v431_v59 }
  0x45   : > { %634 = vmatmul.mubr.msk.bf16.vlgmr.msra.gmra.mrb[0].mxu0 %vm419_vm1, %v248_v60  ;;  %636 = vmatmul.mubr.msk.bf16.vlgmr.msra.gmra.mrb[0].mxu1 %vm419_vm1, %v248_v60 }
  0xa5   : > { %v281_v61 = vpop.permute.xlu0 %280 }
 0x118   : > { %v470_v62 = vpop.f32.mrb[0].mxu0  ;;  %v511_v63 = vpop.f32.mrb[0].mxu1 }
 0x119   : > { %v471_v0 = vadd.f32 %v470_v62, %v281_v61  ;;  %v512_v1 = vadd.f32 %v511_v63, %v281_v61  ;;  %v472_v2 = vpop.f32.mrb[1].mxu0  ;;  %v513_v3 = vpop.f32.mrb[1].mxu1 }
 0x11a   : > { %v473_v4 = vadd.f32 %v472_v2, %v281_v61  ;;  %v514_v5 = vadd.f32 %v513_v3, %v281_v61  ;;  %v474_v6 = vpop.f32.mrb[2].mxu0  ;;  %v515_v7 = vpop.f32.mrb[2].mxu1 }
 0x11b   : > { %vm518_vm2 = vcmp.ge.f32.partialorder %v471_v0, 0.0  ;;  %v522_v8 = vmul.f32 0.2, %v471_v0  ;;  %v524_v9 = vmul.f32 0.2, %v512_v1  ;;  %vm520_vm3 = vcmp.ge.f32.partialorder %v512_v1, 0.0 }
 0x11c   : > { %vm519_vm4 = vcmp.ge.f32.partialorder %v473_v4, 0.0  ;;  %v523_v10 = vmul.f32 0.2, %v473_v4  ;;  %v525_v11 = vmul.f32 0.2, %v514_v5  ;;  %vm521_vm5 = vcmp.ge.f32.partialorder %v514_v5, 0.0 }
 0x11d   : > { %v526_v12 = vsel %vm518_vm2, %v471_v0, %v522_v8  ;;  %v475_v13 = vpop.f32.mrb[3].mxu0  ;;  %v516_v14 = vpop.f32.mrb[3].mxu1  ;;  %v528_v16 = vsel %vm520_vm3, %v512_v1, %v524_v9 }
 0x11e   : > { %530 = vst [vmem:[%s245_s11] sm:$0xff] %v526_v12  ;;  %v527_v15 = vsel %vm519_vm4, %v473_v4, %v523_v10  ;;  %532 = vst [vmem:[%s245_s11 + $0x10] sm:$0xff] %v528_v16  ;;  %v529_v17 = vsel %vm521_vm5, %v514_v5, %v525_v11 }
 0x11f   : > { %531 = vst [vmem:[%s245_s11 + $0x8] sm:$0xff] %v527_v15  ;;  %533 = vst [vmem:[%s245_s11 + $0x18] sm:$0xff] %v529_v17 }
 0x120 PF: > { %p10_p9 = scmp.ge.s32.totalorder %s772_s16, 4   ;;  %s907_s12 = smov %s728_s13 }
 0x121   : > { %s908_s13 = smov %s781_s19  ;;  %s909_s14 = smov %s772_s16 }
 0x122   :  { %12 = sbr.rel (!%p10_p9) target bundleno = 2 (0x2), region = 90 }

// kernel: appearance_model_style_forward.16
= control target key start
LH: loop header
LB: loop body
LE: loop exit
PB: predicated region body
PF: predicated region fallthrough
CT: control target
= control target key end

     0   :  { %v227_v0 = vmov 0   ;;  %vm136_vm0 = vcmask 719872   ;;  %vm140_vm1 = vcmask 1043456   ;;  %s299_s1 = inlined_call_operand.vmem [shape: bf16[216,128], index: 1, kind: input, shape index: {}]   ;;  %s300_s0 = inlined_call_operand.vmem [shape: bf16[8,216], index: 0, kind: input, shape index: {}]   ;;  %s301_s2 = inlined_call_operand.vmem [shape: f32[8,1], index: 2, kind: input, shape index: {}]   ;;  %s302_s3 = inlined_call_operand.vmem [shape: f32[8,128], index: 3, kind: output, shape index: {}]  }
   0x1   :  { %144 = vmatprep.subr.bf16.mxu0 %v227_v0  ;;  %v211_v1 = vld [vmem:[%s299_s1] sm:$0xff]   ;;  %210 = vset.pattern.permute.xlu0 %v227_v0  ;;  %v212_v2 = vld [vmem:[%s299_s1 + $0x8] sm:$0xff]   ;;  %v213_v3 = vld [vmem:[%s299_s1 + $0x10] sm:$0xff]  }
   0x2   :  { %145 = vmatpush1.bf16.msra.mxu0 %v211_v1  ;;  %v214_v4 = vld [vmem:[%s299_s1 + $0x18] sm:$0xff]   ;;  %v15_v5 = vld [vmem:[%s300_s0] sm:$0xff]  ;;  %v216_v9 = vld [vmem:[%s299_s1 + $0x28] sm:$0xff]  }
   0x3   :  { %146 = vmatprep.subr.bf16.mxu0 %v227_v0  ;;  %v215_v6 = vld [vmem:[%s299_s1 + $0x20] sm:$0xff]   ;;  %v193_v7 = vcombine.high %v15_v5, %v15_v5  ;;  %v217_v10 = vld [vmem:[%s299_s1 + $0x30] sm:$0xff]   ;;  %v218_v11 = vld [vmem:[%s299_s1 + $0x38] sm:$0xff]   ;;  %v192_v19 = vcombine.low %v15_v5, %v15_v5 }
   0x4   :  { %v43_v8 = vld [vmem:[%s301_s2] sm:$0xff]  ;;  %v220_v13 = vld [vmem:[%s299_s1 + $0x48] sm:$0xff]   ;;  %v221_v14 = vld [vmem:[%s299_s1 + $0x50] sm:$0xff]  }
   0x5   :  { %46 = vperm.xlu0 %210, %v43_v8   ;;  %208 = vmatprep.mubr.msk.bf16.mxu0 %vm136_vm0, %v193_v7  ;;  %v219_v12 = vld [vmem:[%s299_s1 + $0x40] sm:$0xff]   ;;  %v222_v15 = vld [vmem:[%s299_s1 + $0x58] sm:$0xff]   ;;  %v224_v17 = vld [vmem:[%s299_s1 + $0x68] ss:$0 sps:$4 sm:$0xff]  }
   0x6   :  { %147 = vmatpush1.bf16.msra.mxu0 %v212_v2  ;;  %v223_v16 = vld [vmem:[%s299_s1 + $0x60] sm:$0xff]   ;;  %v142_v18 = vsel %vm140_vm1, %v224_v17, 0 }
   0x7   :  { %148 = vmatprep.subr.bf16.mxu0 %v227_v0 }
   0xa   :  { %149 = vmatpush1.bf16.msra.mxu0 %v213_v3 }
   0xb   :  { %150 = vmatprep.subr.bf16.mxu0 %v227_v0 }
   0xe   :  { %151 = vmatpush1.bf16.msra.mxu0 %v214_v4 }
   0xf   :  { %152 = vmatprep.subr.bf16.mxu0 %v227_v0 }
  0x12   :  { %153 = vmatpush1.bf16.msra.mxu0 %v215_v6 }
  0x13   :  { %154 = vmatprep.subr.bf16.mxu0 %v227_v0 }
  0x16   :  { %155 = vmatpush1.bf16.msra.mxu0 %v216_v9 }
  0x17   :  { %156 = vmatprep.subr.bf16.mxu0 %v227_v0 }
  0x1a   :  { %157 = vmatpush1.bf16.msra.mxu0 %v217_v10 }
  0x1b   :  { %158 = vmatprep.subr.bf16.mxu0 %v227_v0 }
  0x1e   :  { %159 = vmatpush1.bf16.msra.mxu0 %v218_v11 }
  0x1f   :  { %160 = vmatprep.subr.bf16.mxu0 %v227_v0 }
  0x22   :  { %161 = vmatpush1.bf16.msra.mxu0 %v219_v12 }
  0x23   :  { %162 = vmatprep.subr.bf16.mxu0 %v227_v0 }
  0x26   :  { %163 = vmatpush1.bf16.msra.mxu0 %v220_v13 }
  0x27   :  { %164 = vmatprep.subr.bf16.mxu0 %v227_v0 }
  0x2a   :  { %165 = vmatpush1.bf16.msra.mxu0 %v221_v14 }
  0x2b   :  { %166 = vmatprep.subr.bf16.mxu0 %v227_v0 }
  0x2e   :  { %167 = vmatpush1.bf16.msra.mxu0 %v222_v15 }
  0x2f   :  { %168 = vmatprep.subr.bf16.mxu0 %v227_v0 }
  0x32   :  { %169 = vmatpush1.bf16.msra.mxu0 %v223_v16 }
  0x33   :  { %170 = vmatprep.subr.bf16.mxu0 %v227_v0 }
  0x36   :  { %171 = vmatpush1.bf16.msra.mxu0 %v142_v18 }
  0x39   :  { %177 = vmatmul.mubr.bf16.vlgmr.msra.gmra.mrb[0].mxu0 %v192_v19 }
  0x84   :  { %v47_v20 = vpop.permute.xlu0 %46 }
 0x10c   :  { %v178_v21 = vpop.f32.mrb[0].mxu0 }
 0x10d   :  { %v179_v22 = vadd.f32 %v178_v21, %v47_v20  ;;  %v180_v23 = vpop.f32.mrb[1].mxu0 }
 0x10e   :  { %v181_v24 = vpop.f32.mrb[2].mxu0 }
 0x10f   :  { %vm184_vm2 = vcmp.ge.f32.partialorder %v179_v22, 0.0  ;;  %v185_v25 = vmul.f32 0.2, %v179_v22  ;;  %v182_v26 = vpop.f32.mrb[3].mxu0 }
 0x111   :  { %v186_v27 = vsel %vm184_vm2, %v179_v22, %v185_v25 }
 0x112   :  { %187 = vst [vmem:[%s302_s3] sm:$0xff] %v186_v27 }

// kernel: appearance_model_style_forward.18
= control target key start
LH: loop header
LB: loop body
LE: loop exit
PB: predicated region body
PF: predicated region fallthrough
CT: control target
= control target key end

     0   :  { %v229_v0 = vmov 0   ;;  %vm139_vm0 = vcmask 719872   ;;  %vm143_vm1 = vcmask 1043456   ;;  %s309_s1 = inlined_call_operand.vmem [shape: bf16[216,128], index: 1, kind: input, shape index: {}]   ;;  %s310_s0 = inlined_call_operand.vmem [shape: bf16[8,216], index: 0, kind: input, shape index: {}]   ;;  %s311_s2 = inlined_call_operand.vmem [shape: f32[8,1], index: 2, kind: input, shape index: {}]   ;;  %s312_s3 = inlined_call_operand.vmem [shape: f32[8,128], index: 3, kind: input, shape index: {}]   ;;  %s313_s4 = inlined_call_operand.vmem [shape: f32[8,128], index: 4, kind: output, shape index: {}]  }
   0x1   :  { %147 = vmatprep.subr.bf16.mxu0 %v229_v0  ;;  %v213_v1 = vld [vmem:[%s309_s1] sm:$0xff]   ;;  %212 = vset.pattern.permute.xlu0 %v229_v0  ;;  %v214_v2 = vld [vmem:[%s309_s1 + $0x8] sm:$0xff]   ;;  %v215_v3 = vld [vmem:[%s309_s1 + $0x10] sm:$0xff]  }
   0x2   :  { %148 = vmatpush1.bf16.msra.mxu0 %v213_v1  ;;  %v216_v4 = vld [vmem:[%s309_s1 + $0x18] sm:$0xff]   ;;  %v18_v5 = vld [vmem:[%s310_s0] sm:$0xff]  ;;  %v218_v9 = vld [vmem:[%s309_s1 + $0x28] sm:$0xff]  }
   0x3   :  { %149 = vmatprep.subr.bf16.mxu0 %v229_v0  ;;  %v217_v6 = vld [vmem:[%s309_s1 + $0x20] sm:$0xff]   ;;  %v195_v7 = vcombine.high %v18_v5, %v18_v5  ;;  %v219_v10 = vld [vmem:[%s309_s1 + $0x30] sm:$0xff]   ;;  %v220_v11 = vld [vmem:[%s309_s1 + $0x38] sm:$0xff]   ;;  %v194_v19 = vcombine.low %v18_v5, %v18_v5 }
   0x4   :  { %v46_v8 = vld [vmem:[%s311_s2] sm:$0xff]  ;;  %v222_v13 = vld [vmem:[%s309_s1 + $0x48] sm:$0xff]   ;;  %v223_v14 = vld [vmem:[%s309_s1 + $0x50] sm:$0xff]  }
   0x5   :  { %49 = vperm.xlu0 %212, %v46_v8   ;;  %210 = vmatprep.mubr.msk.bf16.mxu0 %vm139_vm0, %v195_v7  ;;  %v221_v12 = vld [vmem:[%s309_s1 + $0x40] sm:$0xff]   ;;  %v224_v15 = vld [vmem:[%s309_s1 + $0x58] sm:$0xff]   ;;  %v226_v17 = vld [vmem:[%s309_s1 + $0x68] ss:$0 sps:$4 sm:$0xff]  }
   0x6   :  { %150 = vmatpush1.bf16.msra.mxu0 %v214_v2  ;;  %v225_v16 = vld [vmem:[%s309_s1 + $0x60] sm:$0xff]   ;;  %v145_v18 = vsel %vm143_vm1, %v226_v17, 0 }
   0x7   :  { %151 = vmatprep.subr.bf16.mxu0 %v229_v0  ;;  %v187_v22 = vld [vmem:[%s312_s3] sm:$0xff] }
   0xa   :  { %152 = vmatpush1.bf16.msra.mxu0 %v215_v3 }
   0xb   :  { %153 = vmatprep.subr.bf16.mxu0 %v229_v0 }
   0xe   :  { %154 = vmatpush1.bf16.msra.mxu0 %v216_v4 }
   0xf   :  { %155 = vmatprep.subr.bf16.mxu0 %v229_v0 }
  0x12   :  { %156 = vmatpush1.bf16.msra.mxu0 %v217_v6 }
  0x13   :  { %157 = vmatprep.subr.bf16.mxu0 %v229_v0 }
  0x16   :  { %158 = vmatpush1.bf16.msra.mxu0 %v218_v9 }
  0x17   :  { %159 = vmatprep.subr.bf16.mxu0 %v229_v0 }
  0x1a   :  { %160 = vmatpush1.bf16.msra.mxu0 %v219_v10 }
  0x1b   :  { %161 = vmatprep.subr.bf16.mxu0 %v229_v0 }
  0x1e   :  { %162 = vmatpush1.bf16.msra.mxu0 %v220_v11 }
  0x1f   :  { %163 = vmatprep.subr.bf16.mxu0 %v229_v0 }
  0x22   :  { %164 = vmatpush1.bf16.msra.mxu0 %v221_v12 }
  0x23   :  { %165 = vmatprep.subr.bf16.mxu0 %v229_v0 }
  0x26   :  { %166 = vmatpush1.bf16.msra.mxu0 %v222_v13 }
  0x27   :  { %167 = vmatprep.subr.bf16.mxu0 %v229_v0 }
  0x2a   :  { %168 = vmatpush1.bf16.msra.mxu0 %v223_v14 }
  0x2b   :  { %169 = vmatprep.subr.bf16.mxu0 %v229_v0 }
  0x2e   :  { %170 = vmatpush1.bf16.msra.mxu0 %v224_v15 }
  0x2f   :  { %171 = vmatprep.subr.bf16.mxu0 %v229_v0 }
  0x32   :  { %172 = vmatpush1.bf16.msra.mxu0 %v225_v16 }
  0x33   :  { %173 = vmatprep.subr.bf16.mxu0 %v229_v0 }
  0x36   :  { %174 = vmatpush1.bf16.msra.mxu0 %v145_v18 }
  0x39   :  { %180 = vmatmul.mubr.bf16.vlgmr.msra.gmra.mrb[0].mxu0 %v194_v19 }
  0x84   :  { %v50_v20 = vpop.permute.xlu0 %49 }
 0x10c   :  { %v181_v21 = vpop.f32.mrb[0].mxu0 }
 0x10d   :  { %v182_v23 = vadd.f32 %v181_v21, %v50_v20  ;;  %v183_v24 = vpop.f32.mrb[1].mxu0 }
 0x10e   :  { %v184_v25 = vpop.f32.mrb[2].mxu0 }
 0x10f   :  { %v188_v26 = vadd.f32 %v187_v22, %v182_v23  ;;  %v185_v27 = vpop.f32.mrb[3].mxu0 }
 0x111   :  { %189 = vst [vmem:[%s313_s4] sm:$0xff] %v188_v26 }

// kernel: appearance_model_style_forward.21
= control target key start
LH: loop header
LB: loop body
LE: loop exit
PB: predicated region body
PF: predicated region fallthrough
CT: control target
= control target key end

     0   :  { %v224_v0 = vmov 0   ;;  %vm136_vm0 = vcmask 719872   ;;  %vm140_vm1 = vcmask 1043456   ;;  %s296_s1 = inlined_call_operand.vmem [shape: bf16[216,128], index: 1, kind: input, shape index: {}]   ;;  %s297_s0 = inlined_call_operand.vmem [shape: bf16[8,216], index: 0, kind: input, shape index: {}]   ;;  %s298_s2 = inlined_call_operand.vmem [shape: f32[8,1], index: 2, kind: input, shape index: {}]   ;;  %s299_s3 = inlined_call_operand.vmem [shape: f32[8,128], index: 3, kind: output, shape index: {}]  }
   0x1   :  { %144 = vmatprep.subr.bf16.mxu0 %v224_v0  ;;  %v208_v1 = vld [vmem:[%s296_s1] sm:$0xff]   ;;  %207 = vset.pattern.permute.xlu0 %v224_v0  ;;  %v209_v2 = vld [vmem:[%s296_s1 + $0x8] sm:$0xff]   ;;  %v210_v3 = vld [vmem:[%s296_s1 + $0x10] sm:$0xff]  }
   0x2   :  { %145 = vmatpush1.bf16.msra.mxu0 %v208_v1  ;;  %v211_v4 = vld [vmem:[%s296_s1 + $0x18] sm:$0xff]   ;;  %v15_v5 = vld [vmem:[%s297_s0] sm:$0xff]  ;;  %v213_v9 = vld [vmem:[%s296_s1 + $0x28] sm:$0xff]  }
   0x3   :  { %146 = vmatprep.subr.bf16.mxu0 %v224_v0  ;;  %v212_v6 = vld [vmem:[%s296_s1 + $0x20] sm:$0xff]   ;;  %v190_v7 = vcombine.high %v15_v5, %v15_v5  ;;  %v214_v10 = vld [vmem:[%s296_s1 + $0x30] sm:$0xff]   ;;  %v215_v11 = vld [vmem:[%s296_s1 + $0x38] sm:$0xff]   ;;  %v189_v19 = vcombine.low %v15_v5, %v15_v5 }
   0x4   :  { %v43_v8 = vld [vmem:[%s298_s2] sm:$0xff]  ;;  %v217_v13 = vld [vmem:[%s296_s1 + $0x48] sm:$0xff]   ;;  %v218_v14 = vld [vmem:[%s296_s1 + $0x50] sm:$0xff]  }
   0x5   :  { %46 = vperm.xlu0 %207, %v43_v8   ;;  %205 = vmatprep.mubr.msk.bf16.mxu0 %vm136_vm0, %v190_v7  ;;  %v216_v12 = vld [vmem:[%s296_s1 + $0x40] sm:$0xff]   ;;  %v219_v15 = vld [vmem:[%s296_s1 + $0x58] sm:$0xff]   ;;  %v221_v17 = vld [vmem:[%s296_s1 + $0x68] ss:$0 sps:$4 sm:$0xff]  }
   0x6   :  { %147 = vmatpush1.bf16.msra.mxu0 %v209_v2  ;;  %v220_v16 = vld [vmem:[%s296_s1 + $0x60] sm:$0xff]   ;;  %v142_v18 = vsel %vm140_vm1, %v221_v17, 0 }
   0x7   :  { %148 = vmatprep.subr.bf16.mxu0 %v224_v0 }
   0xa   :  { %149 = vmatpush1.bf16.msra.mxu0 %v210_v3 }
   0xb   :  { %150 = vmatprep.subr.bf16.mxu0 %v224_v0 }
   0xe   :  { %151 = vmatpush1.bf16.msra.mxu0 %v211_v4 }
   0xf   :  { %152 = vmatprep.subr.bf16.mxu0 %v224_v0 }
  0x12   :  { %153 = vmatpush1.bf16.msra.mxu0 %v212_v6 }
  0x13   :  { %154 = vmatprep.subr.bf16.mxu0 %v224_v0 }
  0x16   :  { %155 = vmatpush1.bf16.msra.mxu0 %v213_v9 }
  0x17   :  { %156 = vmatprep.subr.bf16.mxu0 %v224_v0 }
  0x1a   :  { %157 = vmatpush1.bf16.msra.mxu0 %v214_v10 }
  0x1b   :  { %158 = vmatprep.subr.bf16.mxu0 %v224_v0 }
  0x1e   :  { %159 = vmatpush1.bf16.msra.mxu0 %v215_v11 }
  0x1f   :  { %160 = vmatprep.subr.bf16.mxu0 %v224_v0 }
  0x22   :  { %161 = vmatpush1.bf16.msra.mxu0 %v216_v12 }
  0x23   :  { %162 = vmatprep.subr.bf16.mxu0 %v224_v0 }
  0x26   :  { %163 = vmatpush1.bf16.msra.mxu0 %v217_v13 }
  0x27   :  { %164 = vmatprep.subr.bf16.mxu0 %v224_v0 }
  0x2a   :  { %165 = vmatpush1.bf16.msra.mxu0 %v218_v14 }
  0x2b   :  { %166 = vmatprep.subr.bf16.mxu0 %v224_v0 }
  0x2e   :  { %167 = vmatpush1.bf16.msra.mxu0 %v219_v15 }
  0x2f   :  { %168 = vmatprep.subr.bf16.mxu0 %v224_v0 }
  0x32   :  { %169 = vmatpush1.bf16.msra.mxu0 %v220_v16 }
  0x33   :  { %170 = vmatprep.subr.bf16.mxu0 %v224_v0 }
  0x36   :  { %171 = vmatpush1.bf16.msra.mxu0 %v142_v18 }
  0x39   :  { %177 = vmatmul.mubr.bf16.vlgmr.msra.gmra.mrb[0].mxu0 %v189_v19 }
  0x84   :  { %v47_v20 = vpop.permute.xlu0 %46 }
 0x10c   :  { %v178_v21 = vpop.f32.mrb[0].mxu0 }
 0x10d   :  { %v179_v22 = vadd.f32 %v178_v21, %v47_v20  ;;  %v180_v23 = vpop.f32.mrb[1].mxu0 }
 0x10e   :  { %v181_v24 = vpop.f32.mrb[2].mxu0 }
 0x10f   :  { %184 = vst [vmem:[%s299_s3] sm:$0xff] %v179_v22  ;;  %v182_v25 = vpop.f32.mrb[3].mxu0 }

// kernel: appearance_model_style_forward.22
= control target key start
LH: loop header
LB: loop body
LE: loop exit
PB: predicated region body
PF: predicated region fallthrough
CT: control target
= control target key end

     0   :  { %vm16_vm0 = vcmask 523264   ;;  %v91_v2 = vmov 0   ;;  %s142_s0 = inlined_call_operand.vmem [shape: f32[16,64], index: 0, kind: input, shape index: {}]   ;;  %s143_s1 = inlined_call_operand.vmem [shape: f32[16,1], index: 1, kind: input, shape index: {}]   ;;  %s144_s2 = inlined_call_operand.vmem [shape: f32[16,1], index: 2, kind: input, shape index: {}]   ;;  %s145_s3 = inlined_call_operand.vmem [shape: f32[16,64], index: 3, kind: output, shape index: {}]  }
   0x1   :  { %v14_v0 = vld [vmem:[%s142_s0] sm:$0xff]  ;;  %v15_v1 = vld [vmem:[%s142_s0 + $0x8] sm:$0xff]  ;;  %86 = vset.pattern.permute.xlu1 %v91_v2  ;;  %85 = vset.pattern.permute.xlu0 %v91_v2 }
   0x2   :  { %v45_v3 = vld [vmem:[%s143_s1 + $0x8] sm:$0xff]  ;;  %v17_v4 = vsel %vm16_vm0, %v14_v0, 0.0  ;;  %v58_v5 = vld [vmem:[%s144_s2] sm:$0xff]  ;;  %v20_v6 = vsel %vm16_vm0, %v15_v1, 0.0 }
   0x3   :  { %53 = vperm.xlu1 %86, %v45_v3   ;;  %18 = vadd.xlane.f32.xlu0 %v17_v4  ;;  %v44_v7 = vld [vmem:[%s143_s1] sm:$0xff]  ;;  %v59_v18 = vld [vmem:[%s144_s2 + $0x8] sm:$0xff] }
   0x7   :  { %62 = vperm.xlu1 %86, %v58_v5   ;;  %21 = vadd.xlane.f32.xlu0 %v20_v6 }
  0x1d   :  { %48 = vperm.xlu0 %85, %v44_v7  }
  0x82   :  { %v54_v19 = vpop.permute.xlu1 %53 }
  0x86   :  { %v63_v20 = vpop.permute.xlu1 %62 }
  0x90   :  { %v19_v8 = vpop.xlane.xlu0 %18 }
  0x91   :  { %v24_v9 = vmul.f32 0.015625, %v19_v8 }
  0x93   :  { %v26_v10 = vsub.f32 %v14_v0, %v24_v9 }
  0x94   :  { %v22_v11 = vpop.xlane.xlu0 %21 }
  0x95   :  { %v25_v12 = vmul.f32 0.015625, %v22_v11  ;;  %v28_v13 = vmul.f32 %v26_v10, %v26_v10 }
  0x97   :  { %v27_v14 = vsub.f32 %v15_v1, %v25_v12  ;;  %v30_v15 = vsel %vm16_vm0, %v28_v13, 0.0 }
  0x98   :  { %31 = vadd.xlane.f32.xlu1 %v30_v15 }
  0x99   :  { %v29_v16 = vmul.f32 %v27_v14, %v27_v14 }
  0x9b   :  { %v33_v17 = vsel %vm16_vm0, %v29_v16, 0.0 }
  0x9c   :  { %34 = vadd.xlane.f32.xlu1 %v33_v17  ;;  %v49_v28 = vpop.permute.xlu0 %48 }
  0xad   :  { %67 = vperm.xlu1 %86, %v59_v18  }
 0x125   :  { %v32_v21 = vpop.xlane.xlu1 %31 }
 0x126   :  { %v36_v22 = vmul.f32 0.015625, %v32_v21 }
 0x128   :  { %v38_v23 = vadd.f32 1e-05, %v36_v22 }
 0x129   :  { %v35_v24 = vpop.xlane.xlu1 %34 }
 0x12a   :  { %87 = vrsqrt.f32 %v38_v23  ;;  %v37_v25 = vmul.f32 0.015625, %v35_v24 }
 0x12c   :  { %v39_v26 = vadd.f32 1e-05, %v37_v25 }
 0x12d   :  { %v68_v36 = vpop.permute.xlu1 %67 }
 0x12e   :  { %89 = vrsqrt.f32 %v39_v26 }
 0x134   :  { %v88_v27 = vpop.eup %87 }
 0x135   :  { %v42_v29 = vmul.f32 %v88_v27, %v26_v10 }
 0x137   :  { %v56_v30 = vmul.f32 %v49_v28, %v42_v29 }
 0x138   :  { %v90_v31 = vpop.eup %89 }
 0x139   :  { %v43_v32 = vmul.f32 %v90_v31, %v27_v14  ;;  %v70_v33 = vadd.f32 %v63_v20, %v56_v30 }
 0x13b   :  { %v57_v34 = vmul.f32 %v54_v19, %v43_v32  ;;  %vm72_vm1 = vcmp.ge.f32.partialorder %v70_v33, 0.0  ;;  %v74_v35 = vmul.f32 0.2, %v70_v33 }
 0x13d   :  { %v71_v37 = vadd.f32 %v68_v36, %v57_v34  ;;  %v76_v38 = vsel %vm72_vm1, %v70_v33, %v74_v35 }
 0x13e   :  { %78 = vst.msk [vmem:[%s145_s3] sm:$0xff] %vm16_vm0, %v76_v38 }
 0x13f   :  { %vm73_vm2 = vcmp.ge.f32.partialorder %v71_v37, 0.0  ;;  %v75_v39 = vmul.f32 0.2, %v71_v37 }
 0x141   :  { %v77_v40 = vsel %vm73_vm2, %v71_v37, %v75_v39 }
 0x142   :  { %79 = vst.msk [vmem:[%s145_s3 + $0x8] sm:$0xff] %vm16_vm0, %v77_v40 }

// kernel: appearance_model_style_forward.24
= control target key start
LH: loop header
LB: loop body
LE: loop exit
PB: predicated region body
PF: predicated region fallthrough
CT: control target
= control target key end

     0   :  { %v158_v3 = vmov 0   ;;  %s243_s0 = inlined_call_operand.vmem [shape: f32[16,512], index: 0, kind: input, shape index: {}]   ;;  %s244_s1 = inlined_call_operand.vmem [shape: f32[16,1], index: 1, kind: input, shape index: {}]   ;;  %s245_s2 = inlined_call_operand.vmem [shape: f32[16,1], index: 2, kind: input, shape index: {}]   ;;  %s246_s3 = inlined_call_operand.vmem [shape: f32[16,512], index: 3, kind: output, shape index: {}]  }
   0x1   :  { %v14_v0 = vld [vmem:[%s243_s0] sm:$0xff]  ;;  %v15_v1 = vld [vmem:[%s243_s0 + $0x8] sm:$0xff]  ;;  %v16_v2 = vld [vmem:[%s243_s0 + $0x10] sm:$0xff]  ;;  %153 = vset.pattern.permute.xlu1 %v158_v3  ;;  %152 = vset.pattern.permute.xlu0 %v158_v3 }
   0x2   :  { %v22_v4 = vadd.f32 %v15_v1, %v14_v0  ;;  %v18_v5 = vld [vmem:[%s243_s0 + $0x20] sm:$0xff]  ;;  %v19_v6 = vld [vmem:[%s243_s0 + $0x28] sm:$0xff]  ;;  %v17_v7 = vld [vmem:[%s243_s0 + $0x18] sm:$0xff] }
   0x3   :  { %v20_v8 = vld [vmem:[%s243_s0 + $0x30] sm:$0xff]  ;;  %v27_v9 = vadd.f32 %v19_v6, %v18_v5  ;;  %v76_v10 = vld [vmem:[%s244_s1 + $0x8] sm:$0xff]  ;;  %v21_v12 = vld [vmem:[%s243_s0 + $0x38] sm:$0xff] }
   0x4   :  { %v23_v11 = vadd.f32 %v22_v4, %v16_v2  ;;  %84 = vperm.xlu1 %153, %v76_v10   ;;  %v95_v14 = vld [vmem:[%s245_s2] sm:$0xff]  ;;  %v96_v44 = vld [vmem:[%s245_s2 + $0x8] sm:$0xff] }
   0x5   :  { %v28_v13 = vadd.f32 %v27_v9, %v20_v8  ;;  %v75_v17 = vld [vmem:[%s244_s1] sm:$0xff] }
   0x6   :  { %v24_v15 = vadd.f32 %v23_v11, %v17_v7 }
   0x7   :  { %v29_v16 = vadd.f32 %v28_v13, %v21_v12 }
   0x8   :  { %25 = vadd.xlane.f32.xlu0 %v24_v15  ;;  %99 = vperm.xlu1 %153, %v95_v14  }
   0xc   :  { %30 = vadd.xlane.f32.xlu0 %v29_v16 }
  0x22   :  { %79 = vperm.xlu0 %152, %v75_v17  }
  0x83   :  { %v85_v45 = vpop.permute.xlu1 %84 }
  0x87   :  { %v100_v46 = vpop.permute.xlu1 %99 }
  0x95   :  { %v26_v18 = vpop.xlane.xlu0 %25 }
  0x96   :  { %v33_v19 = vmul.f32 0.001953125, %v26_v18 }
  0x98   :  { %v35_v20 = vsub.f32 %v14_v0, %v33_v19  ;;  %v36_v21 = vsub.f32 %v15_v1, %v33_v19  ;;  %v37_v22 = vsub.f32 %v16_v2, %v33_v19  ;;  %v38_v24 = vsub.f32 %v17_v7, %v33_v19 }
  0x99   :  { %v31_v23 = vpop.xlane.xlu0 %30 }
  0x9a   :  { %v34_v25 = vmul.f32 0.001953125, %v31_v23  ;;  %v43_v26 = vmul.f32 %v35_v20, %v35_v20  ;;  %v44_v27 = vmul.f32 %v36_v21, %v36_v21  ;;  %v45_v28 = vmul.f32 %v37_v22, %v37_v22 }
  0x9b   :  { %v46_v33 = vmul.f32 %v38_v24, %v38_v24 }
  0x9c   :  { %v39_v29 = vsub.f32 %v18_v5, %v34_v25  ;;  %v40_v30 = vsub.f32 %v19_v6, %v34_v25  ;;  %v51_v31 = vadd.f32 %v44_v27, %v43_v26  ;;  %v41_v32 = vsub.f32 %v20_v8, %v34_v25 }
  0x9d   :  { %v42_v35 = vsub.f32 %v21_v12, %v34_v25 }
  0x9e   :  { %v52_v34 = vadd.f32 %v51_v31, %v45_v28  ;;  %v47_v36 = vmul.f32 %v39_v29, %v39_v29  ;;  %v48_v37 = vmul.f32 %v40_v30, %v40_v30  ;;  %v49_v39 = vmul.f32 %v41_v32, %v41_v32 }
  0x9f   :  { %v50_v41 = vmul.f32 %v42_v35, %v42_v35 }
  0xa0   :  { %v53_v38 = vadd.f32 %v52_v34, %v46_v33  ;;  %v56_v40 = vadd.f32 %v48_v37, %v47_v36 }
  0xa1   :  { %v80_v54 = vpop.permute.xlu0 %79 }
  0xa2   :  { %54 = vadd.xlane.f32.xlu1 %v53_v38  ;;  %v57_v42 = vadd.f32 %v56_v40, %v49_v39 }
  0xa4   :  { %v58_v43 = vadd.f32 %v57_v42, %v50_v41 }
  0xa6   :  { %59 = vadd.xlane.f32.xlu1 %v58_v43 }
  0xb7   :  { %104 = vperm.xlu1 %153, %v96_v44  }
 0x12f   :  { %v55_v47 = vpop.xlane.xlu1 %54 }
 0x130   :  { %v61_v48 = vmul.f32 0.001953125, %v55_v47 }
 0x132   :  { %v63_v49 = vadd.f32 1e-05, %v61_v48 }
 0x133   :  { %v60_v50 = vpop.xlane.xlu1 %59 }
 0x134   :  { %154 = vrsqrt.f32 %v63_v49  ;;  %v62_v51 = vmul.f32 0.001953125, %v60_v50 }
 0x136   :  { %v64_v52 = vadd.f32 1e-05, %v62_v51 }
 0x137   :  { %v105_v12 = vpop.permute.xlu1 %104 }
 0x138   :  { %156 = vrsqrt.f32 %v64_v52 }
 0x13e   :  { %v155_v53 = vpop.eup %154 }
 0x13f   :  { %v67_v55 = vmul.f32 %v155_v53, %v35_v20  ;;  %v68_v56 = vmul.f32 %v155_v53, %v36_v21  ;;  %v69_v57 = vmul.f32 %v155_v53, %v37_v22  ;;  %v70_v58 = vmul.f32 %v155_v53, %v38_v24 }
 0x141   :  { %v87_v59 = vmul.f32 %v80_v54, %v67_v55  ;;  %v88_v60 = vmul.f32 %v80_v54, %v68_v56  ;;  %v89_v61 = vmul.f32 %v80_v54, %v69_v57  ;;  %v90_v62 = vmul.f32 %v80_v54, %v70_v58 }
 0x142   :  { %v157_v63 = vpop.eup %156 }
 0x143   :  { %v71_v0 = vmul.f32 %v157_v63, %v39_v29  ;;  %v72_v1 = vmul.f32 %v157_v63, %v40_v30  ;;  %v73_v2 = vmul.f32 %v157_v63, %v41_v32  ;;  %v74_v3 = vmul.f32 %v157_v63, %v42_v35 }
 0x144   :  { %v107_v4 = vadd.f32 %v100_v46, %v87_v59  ;;  %v108_v5 = vadd.f32 %v100_v46, %v88_v60  ;;  %v109_v6 = vadd.f32 %v100_v46, %v89_v61  ;;  %v110_v7 = vadd.f32 %v100_v46, %v90_v62 }
 0x145   :  { %v91_v8 = vmul.f32 %v85_v45, %v71_v0  ;;  %v92_v9 = vmul.f32 %v85_v45, %v72_v1  ;;  %v93_v10 = vmul.f32 %v85_v45, %v73_v2  ;;  %v94_v11 = vmul.f32 %v85_v45, %v74_v3 }
 0x146   :  { %vm115_vm0 = vcmp.ge.f32.partialorder %v107_v4, 0.0  ;;  %vm116_vm1 = vcmp.ge.f32.partialorder %v108_v5, 0.0  ;;  %vm117_vm2 = vcmp.ge.f32.partialorder %v109_v6, 0.0  ;;  %vm118_vm3 = vcmp.ge.f32.partialorder %v110_v7, 0.0 }
 0x147   :  { %v111_v13 = vadd.f32 %v105_v12, %v91_v8  ;;  %v112_v14 = vadd.f32 %v105_v12, %v92_v9  ;;  %v113_v15 = vadd.f32 %v105_v12, %v93_v10  ;;  %v114_v16 = vadd.f32 %v105_v12, %v94_v11 }
 0x148   :  { %v123_v17 = vmul.f32 0.2, %v107_v4  ;;  %v124_v18 = vmul.f32 0.2, %v108_v5  ;;  %v125_v19 = vmul.f32 0.2, %v109_v6 }
 0x149   :  { %vm119_vm4 = vcmp.ge.f32.partialorder %v111_v13, 0.0  ;;  %vm120_vm5 = vcmp.ge.f32.partialorder %v112_v14, 0.0  ;;  %vm121_vm6 = vcmp.ge.f32.partialorder %v113_v15, 0.0  ;;  %vm122_vm7 = vcmp.ge.f32.partialorder %v114_v16, 0.0 }
 0x14a   :  { %v127_v20 = vmul.f32 0.2, %v111_v13  ;;  %v128_v21 = vmul.f32 0.2, %v112_v14  ;;  %v129_v22 = vmul.f32 0.2, %v113_v15  ;;  %v131_v23 = vsel %vm115_vm0, %v107_v4, %v123_v17 }
 0x14b   :  { %v130_v24 = vmul.f32 0.2, %v114_v16  ;;  %v126_v25 = vmul.f32 0.2, %v110_v7  ;;  %v132_v26 = vsel %vm116_vm1, %v108_v5, %v124_v18  ;;  %v133_v27 = vsel %vm117_vm2, %v109_v6, %v125_v19  ;;  %139 = vst [vmem:[%s246_s3] sm:$0xff] %v131_v23 }
 0x14c   :  { %v135_v28 = vsel %vm119_vm4, %v111_v13, %v127_v20  ;;  %v136_v29 = vsel %vm120_vm5, %v112_v14, %v128_v21  ;;  %v137_v30 = vsel %vm121_vm6, %v113_v15, %v129_v22  ;;  %140 = vst [vmem:[%s246_s3 + $0x8] sm:$0xff] %v132_v26  ;;  %141 = vst [vmem:[%s246_s3 + $0x10] sm:$0xff] %v133_v27 }
 0x14d   :  { %v138_v31 = vsel %vm122_vm7, %v114_v16, %v130_v24  ;;  %143 = vst [vmem:[%s246_s3 + $0x20] sm:$0xff] %v135_v28  ;;  %144 = vst [vmem:[%s246_s3 + $0x28] sm:$0xff] %v136_v29  ;;  %v134_v32 = vsel %vm118_vm3, %v110_v7, %v126_v25 }
 0x14e   :  { %145 = vst [vmem:[%s246_s3 + $0x30] sm:$0xff] %v137_v30  ;;  %146 = vst [vmem:[%s246_s3 + $0x38] sm:$0xff] %v138_v31 }
 0x14f   :  { %142 = vst [vmem:[%s246_s3 + $0x18] sm:$0xff] %v134_v32 }

// kernel: appearance_model_style_forward.23
= control target key start
LH: loop header
LB: loop body
LE: loop exit
PB: predicated region body
PF: predicated region fallthrough
CT: control target
= control target key end

     0   :  { %s1033_s12 = smov 0   ;;  %s1035_s13 = smov 0   ;;  %s1265_s0 = inlined_call_operand.vmem [shape: bf16[8,216], index: 0, kind: input, shape index: {}]   ;;  %s1266_s1 = inlined_call_operand.vmem [shape: bf16[216,1024], index: 1, kind: input, shape index: {}]   ;;  %s1267_s2 = inlined_call_operand.vmem [shape: f32[8,1], index: 2, kind: input, shape index: {}]   ;;  %s1268_s3 = inlined_call_operand.vmem [shape: f32[8,1024], index: 3, kind: output, shape index: {}]  }
   0x1   :  { %s1037_s14 = smov 0  }
   0x2 LB: > { %s802_s15 = sadd.s32 4294967295, %s1010_s14   ;;  %s1050_s16 = sadd.s32 1, %s1010_s14   ;;  %s1010_s14 = sphi %s1037_s14, %s1271_s14   ;;  %s1006_s13 = sphi %s1035_s13, %s1270_s13   ;;  %s1002_s12 = sphi %s1033_s12, %s1269_s12  }
   0x3   : > { %s38_s17 = ssub.s32 %s1010_s14, %s1050_s16  ;;  %s41_s18 = sadd.s32 1, %s1006_s13 }
   0x4   : > { %p39_p0 = scmp.eq.s32.totalorder %s38_s17, 0  ;;  %p48_p1 = scmp.ne.s32.totalorder %s1006_s13, %s1002_s12 }
   0x5   : > { %p49_p2 = scmp.eq.s32.totalorder %s1010_s14, 0  ;;  %p805_p4 = scmp.ge.s32.totalorder %s1010_s14, 2 }
   0x6   : > { %s1059_s19 = scalar_select %p39_p0, %s1006_s13, %s41_s18  }
   0x7   : > { %p50_p3 = por %p49_p2, %p48_p1  ;;  %127 = sbr.rel (%p805_p4) target bundleno = 45 (0x2d), region = 24 }
   0xe   : > { %130 = sbr.rel (!%p50_p3) target bundleno = 45 (0x2d), region = 28  ;;  %s132_s20 = sand.u32 (%p50_p3), 1, %s1006_s13  }
   0xf   : > { %s875_s21 = sshll.u32 (%p50_p3), %s1010_s14, 4  ;;  %s876_s22 = smul.u32 (%p50_p3), 432, %s132_s20 }
  0x10   : > { %s1067_s25 = scalar_lea.vmem (%p50_p3), %s1266_s1, %s875_s21 }
  0x11   : > { %v150_v0 = vld [vmem:[%s1067_s25] sm:$0xff] (%p50_p3)  ;;  %v152_v1 = vld [vmem:[%s1067_s25 + $0x8] sm:$0xff] (%p50_p3)  ;;  %s1075_s26 = scalar_lea.vmem (%p50_p3), [#allocation2], %s876_s22 }
  0x12   : > { %v154_v2 = vld [vmem:[%s1067_s25 + $0x20] sm:$0xff] (%p50_p3)  ;;  %v156_v3 = vld [vmem:[%s1067_s25 + $0x28] sm:$0xff] (%p50_p3)  ;;  %151 = vst [vmem:[%s1075_s26] sm:$0xff] (%p50_p3), %v150_v0  ;;  %153 = vst [vmem:[%s1075_s26 + $0x8] sm:$0xff] (%p50_p3), %v152_v1 }
  0x13   : > { %v158_v4 = vld [vmem:[%s1067_s25 + $0x40] sm:$0xff] (%p50_p3)  ;;  %v160_v5 = vld [vmem:[%s1067_s25 + $0x48] sm:$0xff] (%p50_p3)  ;;  %155 = vst [vmem:[%s1075_s26 + $0x10] sm:$0xff] (%p50_p3), %v154_v2  ;;  %157 = vst [vmem:[%s1075_s26 + $0x18] sm:$0xff] (%p50_p3), %v156_v3 }
  0x14   : > { %159 = vst [vmem:[%s1075_s26 + $0x20] sm:$0xff] (%p50_p3), %v158_v4  ;;  %161 = vst [vmem:[%s1075_s26 + $0x28] sm:$0xff] (%p50_p3), %v160_v5  ;;  %v162_v6 = vld [vmem:[%s1067_s25 + $0x60] sm:$0xff] (%p50_p3)  ;;  %v164_v7 = vld [vmem:[%s1067_s25 + $0x68] sm:$0xff] (%p50_p3) }
  0x15   : > { %v166_v8 = vld [vmem:[%s1067_s25 + $0x80] sm:$0xff]  ;;  %163 = vst [vmem:[%s1075_s26 + $0x30] sm:$0xff] %v162_v6  ;;  %165 = vst [vmem:[%s1075_s26 + $0x38] sm:$0xff] %v164_v7  ;;  %v168_v9 = vld [vmem:[%s1067_s25 + $0x88] sm:$0xff] }
  0x16   : > { %167 = vst [vmem:[%s1075_s26 + $0x40] sm:$0xff] %v166_v8  ;;  %v170_v10 = vld [vmem:[%s1067_s25 + $0xa0] sm:$0xff]  ;;  %v172_v11 = vld [vmem:[%s1067_s25 + $0xa8] sm:$0xff]  ;;  %169 = vst [vmem:[%s1075_s26 + $0x48] sm:$0xff] %v168_v9 }
  0x17   : > { %171 = vst [vmem:[%s1075_s26 + $0x50] sm:$0xff] %v170_v10  ;;  %173 = vst [vmem:[%s1075_s26 + $0x58] sm:$0xff] %v172_v11  ;;  %v174_v12 = vld [vmem:[%s1067_s25 + $0xc0] sm:$0xff]  ;;  %v176_v13 = vld [vmem:[%s1067_s25 + $0xc8] sm:$0xff] }
  0x18   : > { %v178_v14 = vld [vmem:[%s1067_s25 + $0xe0] sm:$0xff]  ;;  %175 = vst [vmem:[%s1075_s26 + $0x60] sm:$0xff] %v174_v12  ;;  %177 = vst [vmem:[%s1075_s26 + $0x68] sm:$0xff] %v176_v13  ;;  %v180_v15 = vld [vmem:[%s1067_s25 + $0xe8] sm:$0xff] }
  0x19   : > { %179 = vst [vmem:[%s1075_s26 + $0x70] sm:$0xff] %v178_v14  ;;  %v182_v16 = vld [vmem:[%s1067_s25 + $0x100] sm:$0xff]  ;;  %v184_v17 = vld [vmem:[%s1067_s25 + $0x108] sm:$0xff]  ;;  %181 = vst [vmem:[%s1075_s26 + $0x78] sm:$0xff] %v180_v15 }
  0x1a   : > { %183 = vst [vmem:[%s1075_s26 + $0x80] sm:$0xff] %v182_v16  ;;  %185 = vst [vmem:[%s1075_s26 + $0x88] sm:$0xff] %v184_v17  ;;  %v186_v18 = vld [vmem:[%s1067_s25 + $0x120] sm:$0xff]  ;;  %v188_v19 = vld [vmem:[%s1067_s25 + $0x128] sm:$0xff] }
  0x1b   : > { %v190_v20 = vld [vmem:[%s1067_s25 + $0x140] sm:$0xff]  ;;  %187 = vst [vmem:[%s1075_s26 + $0x90] sm:$0xff] %v186_v18  ;;  %189 = vst [vmem:[%s1075_s26 + $0x98] sm:$0xff] %v188_v19  ;;  %v192_v21 = vld [vmem:[%s1067_s25 + $0x148] sm:$0xff] }
  0x1c   : > { %191 = vst [vmem:[%s1075_s26 + $0xa0] sm:$0xff] %v190_v20  ;;  %v194_v22 = vld [vmem:[%s1067_s25 + $0x160] sm:$0xff]  ;;  %v196_v23 = vld [vmem:[%s1067_s25 + $0x168] sm:$0xff]  ;;  %193 = vst [vmem:[%s1075_s26 + $0xa8] sm:$0xff] %v192_v21 }
  0x1d   : > { %195 = vst [vmem:[%s1075_s26 + $0xb0] sm:$0xff] %v194_v22  ;;  %197 = vst [vmem:[%s1075_s26 + $0xb8] sm:$0xff] %v196_v23  ;;  %v198_v24 = vld [vmem:[%s1067_s25 + $0x180] sm:$0xff]  ;;  %v200_v25 = vld [vmem:[%s1067_s25 + $0x188] sm:$0xff] }
  0x1e   : > { %v202_v26 = vld [vmem:[%s1067_s25 + $0x1a0] sm:$0xff]  ;;  %199 = vst [vmem:[%s1075_s26 + $0xc0] sm:$0xff] %v198_v24  ;;  %201 = vst [vmem:[%s1075_s26 + $0xc8] sm:$0xff] %v200_v25  ;;  %v204_v27 = vld [vmem:[%s1067_s25 + $0x1a8] sm:$0xff] }
  0x1f   : > { %203 = vst [vmem:[%s1075_s26 + $0xd0] sm:$0xff] %v202_v26  ;;  %v206_v28 = vld [vmem:[%s1067_s25 + $0x1c0] sm:$0xff]  ;;  %v208_v29 = vld [vmem:[%s1067_s25 + $0x1c8] sm:$0xff]  ;;  %205 = vst [vmem:[%s1075_s26 + $0xd8] sm:$0xff] %v204_v27 }
  0x20   : > { %207 = vst [vmem:[%s1075_s26 + $0xe0] sm:$0xff] %v206_v28  ;;  %209 = vst [vmem:[%s1075_s26 + $0xe8] sm:$0xff] %v208_v29  ;;  %v210_v30 = vld [vmem:[%s1067_s25 + $0x1e0] sm:$0xff]  ;;  %v212_v31 = vld [vmem:[%s1067_s25 + $0x1e8] sm:$0xff] }
  0x21   : > { %v214_v32 = vld [vmem:[%s1067_s25 + $0x200] sm:$0xff]  ;;  %211 = vst [vmem:[%s1075_s26 + $0xf0] sm:$0xff] %v210_v30  ;;  %213 = vst [vmem:[%s1075_s26 + $0xf8] sm:$0xff] %v212_v31  ;;  %v216_v33 = vld [vmem:[%s1067_s25 + $0x208] sm:$0xff] }
  0x22   : > { %215 = vst [vmem:[%s1075_s26 + $0x100] sm:$0xff] %v214_v32  ;;  %v218_v34 = vld [vmem:[%s1067_s25 + $0x220] sm:$0xff]  ;;  %v220_v35 = vld [vmem:[%s1067_s25 + $0x228] sm:$0xff]  ;;  %217 = vst [vmem:[%s1075_s26 + $0x108] sm:$0xff] %v216_v33 }
  0x23   : > { %219 = vst [vmem:[%s1075_s26 + $0x110] sm:$0xff] %v218_v34  ;;  %221 = vst [vmem:[%s1075_s26 + $0x118] sm:$0xff] %v220_v35  ;;  %v222_v36 = vld [vmem:[%s1067_s25 + $0x240] sm:$0xff]  ;;  %v224_v37 = vld [vmem:[%s1067_s25 + $0x248] sm:$0xff] }
  0x24   : > { %v226_v38 = vld [vmem:[%s1067_s25 + $0x260] sm:$0xff]  ;;  %223 = vst [vmem:[%s1075_s26 + $0x120] sm:$0xff] %v222_v36  ;;  %225 = vst [vmem:[%s1075_s26 + $0x128] sm:$0xff] %v224_v37  ;;  %v228_v39 = vld [vmem:[%s1067_s25 + $0x268] sm:$0xff] }
  0x25   : > { %227 = vst [vmem:[%s1075_s26 + $0x130] sm:$0xff] %v226_v38  ;;  %v230_v40 = vld [vmem:[%s1067_s25 + $0x280] sm:$0xff]  ;;  %v232_v41 = vld [vmem:[%s1067_s25 + $0x288] sm:$0xff]  ;;  %229 = vst [vmem:[%s1075_s26 + $0x138] sm:$0xff] %v228_v39 }
  0x26   : > { %231 = vst [vmem:[%s1075_s26 + $0x140] sm:$0xff] %v230_v40  ;;  %233 = vst [vmem:[%s1075_s26 + $0x148] sm:$0xff] %v232_v41  ;;  %v234_v42 = vld [vmem:[%s1067_s25 + $0x2a0] sm:$0xff]  ;;  %v236_v43 = vld [vmem:[%s1067_s25 + $0x2a8] sm:$0xff] }
  0x27   : > { %v238_v44 = vld [vmem:[%s1067_s25 + $0x2c0] sm:$0xff]  ;;  %235 = vst [vmem:[%s1075_s26 + $0x150] sm:$0xff] %v234_v42  ;;  %237 = vst [vmem:[%s1075_s26 + $0x158] sm:$0xff] %v236_v43  ;;  %v240_v45 = vld [vmem:[%s1067_s25 + $0x2c8] sm:$0xff] }
  0x28   : > { %239 = vst [vmem:[%s1075_s26 + $0x160] sm:$0xff] %v238_v44  ;;  %v242_v46 = vld [vmem:[%s1067_s25 + $0x2e0] sm:$0xff]  ;;  %v244_v47 = vld [vmem:[%s1067_s25 + $0x2e8] sm:$0xff]  ;;  %241 = vst [vmem:[%s1075_s26 + $0x168] sm:$0xff] %v240_v45 }
  0x29   : > { %243 = vst [vmem:[%s1075_s26 + $0x170] sm:$0xff] %v242_v46  ;;  %245 = vst [vmem:[%s1075_s26 + $0x178] sm:$0xff] %v244_v47  ;;  %v246_v48 = vld [vmem:[%s1067_s25 + $0x300] sm:$0xff]  ;;  %v248_v49 = vld [vmem:[%s1067_s25 + $0x308] sm:$0xff] }
  0x2a   : > { %v250_v50 = vld [vmem:[%s1067_s25 + $0x320] sm:$0xff]  ;;  %247 = vst [vmem:[%s1075_s26 + $0x180] sm:$0xff] %v246_v48  ;;  %249 = vst [vmem:[%s1075_s26 + $0x188] sm:$0xff] %v248_v49  ;;  %v252_v51 = vld [vmem:[%s1067_s25 + $0x328] sm:$0xff] }
  0x2b   : > { %251 = vst [vmem:[%s1075_s26 + $0x190] sm:$0xff] %v250_v50  ;;  %v254_v52 = vld [vmem:[%s1067_s25 + $0x340] sm:$0xff]  ;;  %v256_v53 = vld [vmem:[%s1067_s25 + $0x348] sm:$0xff]  ;;  %253 = vst [vmem:[%s1075_s26 + $0x198] sm:$0xff] %v252_v51 }
  0x2c   : > { %255 = vst [vmem:[%s1075_s26 + $0x1a0] sm:$0xff] %v254_v52  ;;  %257 = vst [vmem:[%s1075_s26 + $0x1a8] sm:$0xff] %v256_v53 }
  0x2d PF: > { %p808_p5 = scmp.ge.s32.totalorder %s1010_s14, 1  ;;  %p262_p6 = scmp.lt.s32.totalorder %s1010_s14, 3 }
  0x2f   : > { %p263_p7 = pnand %p808_p5, %p262_p6 }
  0x30   : > { %s269_s27 = sand.u32 (!%p263_p7), 1, %s1002_s12   ;;  %v1185_v54 = vld [vmem:[%s1265_s0] sm:$0xff] (!%p263_p7)  ;;  %vm637_vm0 = vcmask (!%p263_p7), 719872   ;;  %v1012_v57 = vmov (!%p263_p7), 0   ;;  %vm641_vm1 = vcmask (!%p263_p7), 1043456   ;;  %s809_s7 = sshll.u32 (!%p263_p7), %s802_s15, 2 }
  0x31   : > { %266 = sbr.rel (%p263_p7) target bundleno = 326 (0x146), region = 51  ;;  %v355_v55 = vld [vmem:[%s1267_s2] sm:$0xff] (!%p263_p7)  ;;  %v812_v56 = vcombine.high (!%p263_p7), %v1185_v54, %v1185_v54  ;;  %903 = vset.pattern.permute.xlu0 (!%p263_p7), %v1012_v57  ;;  %p294_p8 = scmp.lt.s32.totalorder (!%p263_p7), %s809_s7, 7 }
  0x32   : > { %s877_s5 = smul.u32 (!%p263_p7), 432, %s269_s27  ;;  %358 = vperm.xlu0 (!%p263_p7), %903, %v355_v55   ;;  %v811_v55 = vcombine.low (!%p263_p7), %v1185_v54, %v1185_v54 }
  0x33   : > { %870 = vmatprep.mubr.msk.bf16.mxu0 (!%p263_p7), %vm637_vm0, %v812_v56  ;;  %872 = vmatprep.mubr.msk.bf16.mxu1 (!%p263_p7), %vm637_vm0, %v812_v56 }
  0x34   : > { %s1192_s6 = scalar_lea.vmem (!%p263_p7), [#allocation2], %s877_s5 }
  0x35   : > { %v904_v58 = vld [vmem:[%s1192_s6 + $0x4] ss:$16 sps:$4 sm:$0xff] (!%p263_p7)   ;;  %v906_v59 = vld [vmem:[%s1192_s6 + $0xc] ss:$16 sps:$4 sm:$0xff] (!%p263_p7)   ;;  %v908_v60 = vld [vmem:[%s1192_s6] ss:$16 sps:$4 sm:$0xff] (!%p263_p7)  }
  0x36   : > { %654 = vmatprep.subr.bf16.mxu0 (!%p263_p7), %v904_v58  ;;  %v909_v61 = vld [vmem:[%s1192_s6 + $0x8] ss:$16 sps:$4 sm:$0xff] (!%p263_p7)   ;;  %695 = vmatprep.subr.bf16.mxu1 (!%p263_p7), %v906_v59  ;;  %v910_v62 = vld [vmem:[%s1192_s6 + $0x24] ss:$16 sps:$4 sm:$0xff] (!%p263_p7)   ;;  %v912_v63 = vld [vmem:[%s1192_s6 + $0x2c] ss:$16 sps:$4 sm:$0xff] (!%p263_p7)  }
  0x37   : > { %655 = vmatpush1.bf16.msra.mxu0 (!%p263_p7), %v908_v60  ;;  %696 = vmatpush1.bf16.msra.mxu1 (!%p263_p7), %v909_v61  ;;  %v914_v0 = vld [vmem:[%s1192_s6 + $0x20] ss:$16 sps:$4 sm:$0xff] (!%p263_p7)   ;;  %v915_v1 = vld [vmem:[%s1192_s6 + $0x28] ss:$16 sps:$4 sm:$0xff] (!%p263_p7)   ;;  %v916_v2 = vld [vmem:[%s1192_s6 + $0x44] ss:$16 sps:$4 sm:$0xff] (!%p263_p7)  }
  0x38   : > { %656 = vmatprep.subr.bf16.mxu0 %v910_v62  ;;  %697 = vmatprep.subr.bf16.mxu1 %v912_v63  ;;  %v918_v3 = vld [vmem:[%s1192_s6 + $0x4c] ss:$16 sps:$4 sm:$0xff]   ;;  %v920_v4 = vld [vmem:[%s1192_s6 + $0x40] ss:$16 sps:$4 sm:$0xff]   ;;  %v921_v5 = vld [vmem:[%s1192_s6 + $0x48] ss:$16 sps:$4 sm:$0xff]  }
  0x39   : > { %v922_v6 = vld [vmem:[%s1192_s6 + $0x64] ss:$16 sps:$4 sm:$0xff]   ;;  %v924_v7 = vld [vmem:[%s1192_s6 + $0x6c] ss:$16 sps:$4 sm:$0xff]   ;;  %v926_v8 = vld [vmem:[%s1192_s6 + $0x60] ss:$16 sps:$4 sm:$0xff]  }
  0x3a   : > { %v927_v9 = vld [vmem:[%s1192_s6 + $0x68] ss:$16 sps:$4 sm:$0xff]   ;;  %v928_v10 = vld [vmem:[%s1192_s6 + $0x84] ss:$16 sps:$4 sm:$0xff]   ;;  %v930_v11 = vld [vmem:[%s1192_s6 + $0x8c] ss:$16 sps:$4 sm:$0xff]  }
  0x3b   : > { %657 = vmatpush1.bf16.msra.mxu0 %v914_v0  ;;  %698 = vmatpush1.bf16.msra.mxu1 %v915_v1  ;;  %v932_v12 = vld [vmem:[%s1192_s6 + $0x80] ss:$16 sps:$4 sm:$0xff]   ;;  %v933_v13 = vld [vmem:[%s1192_s6 + $0x88] ss:$16 sps:$4 sm:$0xff]   ;;  %v934_v14 = vld [vmem:[%s1192_s6 + $0xa4] ss:$16 sps:$4 sm:$0xff]  }
  0x3c   : > { %658 = vmatprep.subr.bf16.mxu0 %v916_v2  ;;  %699 = vmatprep.subr.bf16.mxu1 %v918_v3  ;;  %v936_v15 = vld [vmem:[%s1192_s6 + $0xac] ss:$16 sps:$4 sm:$0xff]   ;;  %v938_v16 = vld [vmem:[%s1192_s6 + $0xa0] ss:$16 sps:$4 sm:$0xff]   ;;  %v939_v17 = vld [vmem:[%s1192_s6 + $0xa8] ss:$16 sps:$4 sm:$0xff]  }
  0x3d   : > { %v940_v18 = vld [vmem:[%s1192_s6 + $0xc4] ss:$16 sps:$4 sm:$0xff]   ;;  %v942_v19 = vld [vmem:[%s1192_s6 + $0xcc] ss:$16 sps:$4 sm:$0xff]   ;;  %v944_v20 = vld [vmem:[%s1192_s6 + $0xc0] ss:$16 sps:$4 sm:$0xff]  }
  0x3e   : > { %v945_v21 = vld [vmem:[%s1192_s6 + $0xc8] ss:$16 sps:$4 sm:$0xff]   ;;  %v946_v22 = vld [vmem:[%s1192_s6 + $0xe4] ss:$16 sps:$4 sm:$0xff]   ;;  %v948_v23 = vld [vmem:[%s1192_s6 + $0xec] ss:$16 sps:$4 sm:$0xff]  }
  0x3f   : > { %659 = vmatpush1.bf16.msra.mxu0 %v920_v4  ;;  %700 = vmatpush1.bf16.msra.mxu1 %v921_v5  ;;  %v950_v24 = vld [vmem:[%s1192_s6 + $0xe0] ss:$16 sps:$4 sm:$0xff]   ;;  %v951_v25 = vld [vmem:[%s1192_s6 + $0xe8] ss:$16 sps:$4 sm:$0xff]   ;;  %v952_v26 = vld [vmem:[%s1192_s6 + $0x104] ss:$16 sps:$4 sm:$0xff]  }
  0x40   : > { %660 = vmatprep.subr.bf16.mxu0 %v922_v6  ;;  %701 = vmatprep.subr.bf16.mxu1 %v924_v7  ;;  %v954_v27 = vld [vmem:[%s1192_s6 + $0x10c] ss:$16 sps:$4 sm:$0xff]   ;;  %v956_v28 = vld [vmem:[%s1192_s6 + $0x100] ss:$16 sps:$4 sm:$0xff]   ;;  %v957_v29 = vld [vmem:[%s1192_s6 + $0x108] ss:$16 sps:$4 sm:$0xff]  }
  0x41   : > { %v958_v30 = vld [vmem:[%s1192_s6 + $0x124] ss:$16 sps:$4 sm:$0xff]   ;;  %v960_v31 = vld [vmem:[%s1192_s6 + $0x12c] ss:$16 sps:$4 sm:$0xff]   ;;  %v962_v32 = vld [vmem:[%s1192_s6 + $0x120] ss:$16 sps:$4 sm:$0xff]  }
  0x42   : > { %v963_v33 = vld [vmem:[%s1192_s6 + $0x128] ss:$16 sps:$4 sm:$0xff]   ;;  %v964_v34 = vld [vmem:[%s1192_s6 + $0x144] ss:$16 sps:$4 sm:$0xff]   ;;  %v966_v35 = vld [vmem:[%s1192_s6 + $0x14c] ss:$16 sps:$4 sm:$0xff]  }
  0x43   : > { %661 = vmatpush1.bf16.msra.mxu0 %v926_v8  ;;  %702 = vmatpush1.bf16.msra.mxu1 %v927_v9  ;;  %v968_v36 = vld [vmem:[%s1192_s6 + $0x140] ss:$16 sps:$4 sm:$0xff]   ;;  %v969_v37 = vld [vmem:[%s1192_s6 + $0x148] ss:$16 sps:$4 sm:$0xff]   ;;  %v970_v38 = vld [vmem:[%s1192_s6 + $0x164] ss:$16 sps:$4 sm:$0xff]  }
  0x44   : > { %662 = vmatprep.subr.bf16.mxu0 %v928_v10  ;;  %703 = vmatprep.subr.bf16.mxu1 %v930_v11  ;;  %v972_v39 = vld [vmem:[%s1192_s6 + $0x16c] ss:$16 sps:$4 sm:$0xff]   ;;  %v974_v40 = vld [vmem:[%s1192_s6 + $0x160] ss:$16 sps:$4 sm:$0xff]   ;;  %v975_v41 = vld [vmem:[%s1192_s6 + $0x168] ss:$16 sps:$4 sm:$0xff]  }
  0x45   : > { %v976_v42 = vld [vmem:[%s1192_s6 + $0x184] ss:$16 sps:$4 sm:$0xff]   ;;  %v978_v43 = vld [vmem:[%s1192_s6 + $0x18c] ss:$16 sps:$4 sm:$0xff]   ;;  %v980_v46 = vld [vmem:[%s1192_s6 + $0x180] ss:$16 sps:$4 sm:$0xff]  }
  0x46   : > { %v353_v44 = vld [vmem:[%s1192_s6 + $0x1a0] sm:$0xff]  ;;  %v354_v45 = vld [vmem:[%s1192_s6 + $0x1a8] sm:$0xff]  ;;  %s1273_s7 = smov (!%p294_p8, %s809_s7), 7 }
  0x47   : > { %663 = vmatpush1.bf16.msra.mxu0 %v932_v12  ;;  %704 = vmatpush1.bf16.msra.mxu1 %v933_v13  ;;  %v981_v47 = vld [vmem:[%s1192_s6 + $0x188] ss:$16 sps:$4 sm:$0xff]   ;;  %v866_v48 = vcombine.high %v353_v44, %v353_v44  ;;  %v868_v49 = vcombine.high %v354_v45, %v354_v45  ;;  %v865_v50 = vcombine.low %v353_v44, %v353_v44  ;;  %s810_s8 = sshll.u32 %s1273_s7, 3 }
  0x48   : > { %664 = vmatprep.subr.bf16.mxu0 %v934_v14  ;;  %705 = vmatprep.subr.bf16.mxu1 %v936_v15  ;;  %v867_v51 = vcombine.low %v354_v45, %v354_v45  ;;  %s297_s11 = scalar_lea.vmem %s1268_s3, %s810_s8 }
  0x49   : > { %v643_v52 = vsel %vm641_vm1, %v865_v50, 0 }
  0x4a   : > { %v649_v53 = vsel %vm641_vm1, %v867_v51, 0 }
  0x4b   : > { %665 = vmatpush1.bf16.msra.mxu0 %v938_v16  ;;  %706 = vmatpush1.bf16.msra.mxu1 %v939_v17 }
  0x4c   : > { %666 = vmatprep.subr.bf16.mxu0 %v940_v18  ;;  %707 = vmatprep.subr.bf16.mxu1 %v942_v19 }
  0x4f   : > { %667 = vmatpush1.bf16.msra.mxu0 %v944_v20  ;;  %708 = vmatpush1.bf16.msra.mxu1 %v945_v21 }
  0x50   : > { %668 = vmatprep.subr.bf16.mxu0 %v946_v22  ;;  %709 = vmatprep.subr.bf16.mxu1 %v948_v23 }
  0x53   : > { %669 = vmatpush1.bf16.msra.mxu0 %v950_v24  ;;  %710 = vmatpush1.bf16.msra.mxu1 %v951_v25 }
  0x54   : > { %670 = vmatprep.subr.bf16.mxu0 %v952_v26  ;;  %711 = vmatprep.subr.bf16.mxu1 %v954_v27 }
  0x57   : > { %671 = vmatpush1.bf16.msra.mxu0 %v956_v28  ;;  %712 = vmatpush1.bf16.msra.mxu1 %v957_v29 }
  0x58   : > { %672 = vmatprep.subr.bf16.mxu0 %v958_v30  ;;  %713 = vmatprep.subr.bf16.mxu1 %v960_v31 }
  0x5b   : > { %673 = vmatpush1.bf16.msra.mxu0 %v962_v32  ;;  %714 = vmatpush1.bf16.msra.mxu1 %v963_v33 }
  0x5c   : > { %674 = vmatprep.subr.bf16.mxu0 %v964_v34  ;;  %715 = vmatprep.subr.bf16.mxu1 %v966_v35 }
  0x5f   : > { %675 = vmatpush1.bf16.msra.mxu0 %v968_v36  ;;  %716 = vmatpush1.bf16.msra.mxu1 %v969_v37 }
  0x60   : > { %676 = vmatprep.subr.bf16.mxu0 %v970_v38  ;;  %717 = vmatprep.subr.bf16.mxu1 %v972_v39 }
  0x63   : > { %677 = vmatpush1.bf16.msra.mxu0 %v974_v40  ;;  %718 = vmatpush1.bf16.msra.mxu1 %v975_v41 }
  0x64   : > { %678 = vmatprep.subr.bf16.mxu0 %v976_v42  ;;  %719 = vmatprep.subr.bf16.mxu1 %v978_v43 }
  0x67   : > { %679 = vmatpush1.bf16.msra.mxu0 %v980_v46  ;;  %720 = vmatpush1.bf16.msra.mxu1 %v981_v47 }
  0x68   : > { %869 = vmatprep.subr.msk.bf16.mxu0 %vm641_vm1, %v866_v48  ;;  %871 = vmatprep.subr.msk.bf16.mxu1 %vm641_vm1, %v868_v49 }
  0x6b   : > { %681 = vmatpush1.bf16.msra.mxu0 %v643_v52  ;;  %722 = vmatpush1.bf16.msra.mxu1 %v649_v53 }
  0x6e   : > { %687 = vmatmul.mubr.bf16.vlgmr.msra.gmra.mrb[0].mxu0 %v811_v55  ;;  %728 = vmatmul.mubr.bf16.vlgmr.msra.gmra.mrb[0].mxu1 %v811_v55 }
  0xb1   : > { %v359_v56 = vpop.permute.xlu0 %358 }
 0x141   : > { %v688_v57 = vpop.f32.mrb[0].mxu0  ;;  %v729_v58 = vpop.f32.mrb[0].mxu1 }
 0x142   : > { %v689_v59 = vadd.f32 %v688_v57, %v359_v56  ;;  %v690_v60 = vpop.f32.mrb[1].mxu0  ;;  %v731_v61 = vpop.f32.mrb[1].mxu1  ;;  %v730_v0 = vadd.f32 %v729_v58, %v359_v56 }
 0x143   : > { %v691_v54 = vadd.f32 %v690_v60, %v359_v56  ;;  %v692_v62 = vpop.f32.mrb[2].mxu0  ;;  %v733_v63 = vpop.f32.mrb[2].mxu1  ;;  %v732_v3 = vadd.f32 %v731_v61, %v359_v56 }
 0x144   : > { %736 = vst [vmem:[%s297_s11] sm:$0xff] %v689_v59  ;;  %v693_v1 = vpop.f32.mrb[3].mxu0  ;;  %v734_v2 = vpop.f32.mrb[3].mxu1  ;;  %738 = vst [vmem:[%s297_s11 + $0x10] sm:$0xff] %v730_v0 }
 0x145   : > { %737 = vst [vmem:[%s297_s11 + $0x8] sm:$0xff] %v691_v54  ;;  %739 = vst [vmem:[%s297_s11 + $0x18] sm:$0xff] %v732_v3 }
 0x146 PF: > { %p10_p9 = scmp.ge.s32.totalorder %s1050_s16, 4   ;;  %s1269_s12 = smov %s1006_s13 }
 0x147   : > { %s1270_s13 = smov %s1059_s19  ;;  %s1271_s14 = smov %s1050_s16 }
 0x148   :  { %12 = sbr.rel (!%p10_p9) target bundleno = 2 (0x2), region = 90 }

// kernel: appearance_model_style_forward.25
= control target key start
LH: loop header
LB: loop body
LE: loop exit
PB: predicated region body
PF: predicated region fallthrough
CT: control target
= control target key end

     0   :  { %s1033_s12 = smov 0   ;;  %s1035_s13 = smov 0   ;;  %s1265_s0 = inlined_call_operand.vmem [shape: bf16[8,216], index: 0, kind: input, shape index: {}]   ;;  %s1266_s1 = inlined_call_operand.vmem [shape: bf16[216,8192], index: 1, kind: input, shape index: {}]   ;;  %s1267_s2 = inlined_call_operand.vmem [shape: f32[8,1], index: 2, kind: input, shape index: {}]   ;;  %s1268_s3 = inlined_call_operand.vmem [shape: f32[8,8192], index: 3, kind: output, shape index: {}]  }
   0x1   :  { %s1037_s14 = smov 0  }
   0x2 LB: > { %s802_s15 = sadd.s32 4294967295, %s1010_s14   ;;  %s1050_s16 = sadd.s32 1, %s1010_s14   ;;  %s1010_s14 = sphi %s1037_s14, %s1271_s14   ;;  %s1006_s13 = sphi %s1035_s13, %s1270_s13   ;;  %s1002_s12 = sphi %s1033_s12, %s1269_s12  }
   0x3   : > { %s38_s17 = ssub.s32 %s1010_s14, %s1050_s16  ;;  %s41_s18 = sadd.s32 1, %s1006_s13 }
   0x4   : > { %p39_p0 = scmp.eq.s32.totalorder %s38_s17, 0  ;;  %p48_p1 = scmp.ne.s32.totalorder %s1006_s13, %s1002_s12 }
   0x5   : > { %p49_p2 = scmp.eq.s32.totalorder %s1010_s14, 0  ;;  %p805_p4 = scmp.ge.s32.totalorder %s1010_s14, 16 }
   0x6   : > { %s1059_s19 = scalar_select %p39_p0, %s1006_s13, %s41_s18  }
   0x7   : > { %p50_p3 = por %p49_p2, %p48_p1  ;;  %127 = sbr.rel (%p805_p4) target bundleno = 45 (0x2d), region = 24 }
   0xe   : > { %130 = sbr.rel (!%p50_p3) target bundleno = 45 (0x2d), region = 28  ;;  %s132_s20 = sand.u32 (%p50_p3), 1, %s1006_s13  }
   0xf   : > { %s875_s21 = sshll.u32 (%p50_p3), %s1010_s14, 4  ;;  %s876_s22 = smul.u32 (%p50_p3), 432, %s132_s20 }
  0x10   : > { %s1067_s25 = scalar_lea.vmem (%p50_p3), %s1266_s1, %s875_s21 }
  0x11   : > { %v150_v0 = vld [vmem:[%s1067_s25] sm:$0xff] (%p50_p3)  ;;  %v152_v1 = vld [vmem:[%s1067_s25 + $0x8] sm:$0xff] (%p50_p3)  ;;  %s1075_s26 = scalar_lea.vmem (%p50_p3), [#allocation2], %s876_s22 }
  0x12   : > { %v154_v2 = vld [vmem:[%s1067_s25 + $0x100] sm:$0xff] (%p50_p3)  ;;  %v156_v3 = vld [vmem:[%s1067_s25 + $0x108] sm:$0xff] (%p50_p3)  ;;  %151 = vst [vmem:[%s1075_s26] sm:$0xff] (%p50_p3), %v150_v0  ;;  %153 = vst [vmem:[%s1075_s26 + $0x8] sm:$0xff] (%p50_p3), %v152_v1 }
  0x13   : > { %v158_v4 = vld [vmem:[%s1067_s25 + $0x200] sm:$0xff] (%p50_p3)  ;;  %v160_v5 = vld [vmem:[%s1067_s25 + $0x208] sm:$0xff] (%p50_p3)  ;;  %155 = vst [vmem:[%s1075_s26 + $0x10] sm:$0xff] (%p50_p3), %v154_v2  ;;  %157 = vst [vmem:[%s1075_s26 + $0x18] sm:$0xff] (%p50_p3), %v156_v3 }
  0x14   : > { %159 = vst [vmem:[%s1075_s26 + $0x20] sm:$0xff] (%p50_p3), %v158_v4  ;;  %161 = vst [vmem:[%s1075_s26 + $0x28] sm:$0xff] (%p50_p3), %v160_v5  ;;  %v162_v6 = vld [vmem:[%s1067_s25 + $0x300] sm:$0xff] (%p50_p3)  ;;  %v164_v7 = vld [vmem:[%s1067_s25 + $0x308] sm:$0xff] (%p50_p3) }
  0x15   : > { %v166_v8 = vld [vmem:[%s1067_s25 + $0x400] sm:$0xff]  ;;  %163 = vst [vmem:[%s1075_s26 + $0x30] sm:$0xff] %v162_v6  ;;  %165 = vst [vmem:[%s1075_s26 + $0x38] sm:$0xff] %v164_v7  ;;  %v168_v9 = vld [vmem:[%s1067_s25 + $0x408] sm:$0xff] }
  0x16   : > { %167 = vst [vmem:[%s1075_s26 + $0x40] sm:$0xff] %v166_v8  ;;  %v170_v10 = vld [vmem:[%s1067_s25 + $0x500] sm:$0xff]  ;;  %v172_v11 = vld [vmem:[%s1067_s25 + $0x508] sm:$0xff]  ;;  %169 = vst [vmem:[%s1075_s26 + $0x48] sm:$0xff] %v168_v9 }
  0x17   : > { %171 = vst [vmem:[%s1075_s26 + $0x50] sm:$0xff] %v170_v10  ;;  %173 = vst [vmem:[%s1075_s26 + $0x58] sm:$0xff] %v172_v11  ;;  %v174_v12 = vld [vmem:[%s1067_s25 + $0x600] sm:$0xff]  ;;  %v176_v13 = vld [vmem:[%s1067_s25 + $0x608] sm:$0xff] }
  0x18   : > { %v178_v14 = vld [vmem:[%s1067_s25 + $0x700] sm:$0xff]  ;;  %175 = vst [vmem:[%s1075_s26 + $0x60] sm:$0xff] %v174_v12  ;;  %177 = vst [vmem:[%s1075_s26 + $0x68] sm:$0xff] %v176_v13  ;;  %v180_v15 = vld [vmem:[%s1067_s25 + $0x708] sm:$0xff] }
  0x19   : > { %179 = vst [vmem:[%s1075_s26 + $0x70] sm:$0xff] %v178_v14  ;;  %v182_v16 = vld [vmem:[%s1067_s25 + $0x800] sm:$0xff]  ;;  %v184_v17 = vld [vmem:[%s1067_s25 + $0x808] sm:$0xff]  ;;  %181 = vst [vmem:[%s1075_s26 + $0x78] sm:$0xff] %v180_v15 }
  0x1a   : > { %183 = vst [vmem:[%s1075_s26 + $0x80] sm:$0xff] %v182_v16  ;;  %185 = vst [vmem:[%s1075_s26 + $0x88] sm:$0xff] %v184_v17  ;;  %v186_v18 = vld [vmem:[%s1067_s25 + $0x900] sm:$0xff]  ;;  %v188_v19 = vld [vmem:[%s1067_s25 + $0x908] sm:$0xff] }
  0x1b   : > { %v190_v20 = vld [vmem:[%s1067_s25 + $0xa00] sm:$0xff]  ;;  %187 = vst [vmem:[%s1075_s26 + $0x90] sm:$0xff] %v186_v18  ;;  %189 = vst [vmem:[%s1075_s26 + $0x98] sm:$0xff] %v188_v19  ;;  %v192_v21 = vld [vmem:[%s1067_s25 + $0xa08] sm:$0xff] }
  0x1c   : > { %191 = vst [vmem:[%s1075_s26 + $0xa0] sm:$0xff] %v190_v20  ;;  %v194_v22 = vld [vmem:[%s1067_s25 + $0xb00] sm:$0xff]  ;;  %v196_v23 = vld [vmem:[%s1067_s25 + $0xb08] sm:$0xff]  ;;  %193 = vst [vmem:[%s1075_s26 + $0xa8] sm:$0xff] %v192_v21 }
  0x1d   : > { %195 = vst [vmem:[%s1075_s26 + $0xb0] sm:$0xff] %v194_v22  ;;  %197 = vst [vmem:[%s1075_s26 + $0xb8] sm:$0xff] %v196_v23  ;;  %v198_v24 = vld [vmem:[%s1067_s25 + $0xc00] sm:$0xff]  ;;  %v200_v25 = vld [vmem:[%s1067_s25 + $0xc08] sm:$0xff] }
  0x1e   : > { %v202_v26 = vld [vmem:[%s1067_s25 + $0xd00] sm:$0xff]  ;;  %199 = vst [vmem:[%s1075_s26 + $0xc0] sm:$0xff] %v198_v24  ;;  %201 = vst [vmem:[%s1075_s26 + $0xc8] sm:$0xff] %v200_v25  ;;  %v204_v27 = vld [vmem:[%s1067_s25 + $0xd08] sm:$0xff] }
  0x1f   : > { %203 = vst [vmem:[%s1075_s26 + $0xd0] sm:$0xff] %v202_v26  ;;  %v206_v28 = vld [vmem:[%s1067_s25 + $0xe00] sm:$0xff]  ;;  %v208_v29 = vld [vmem:[%s1067_s25 + $0xe08] sm:$0xff]  ;;  %205 = vst [vmem:[%s1075_s26 + $0xd8] sm:$0xff] %v204_v27 }
  0x20   : > { %207 = vst [vmem:[%s1075_s26 + $0xe0] sm:$0xff] %v206_v28  ;;  %209 = vst [vmem:[%s1075_s26 + $0xe8] sm:$0xff] %v208_v29  ;;  %v210_v30 = vld [vmem:[%s1067_s25 + $0xf00] sm:$0xff]  ;;  %v212_v31 = vld [vmem:[%s1067_s25 + $0xf08] sm:$0xff] }
  0x21   : > { %v214_v32 = vld [vmem:[%s1067_s25 + $0x1000] sm:$0xff]  ;;  %211 = vst [vmem:[%s1075_s26 + $0xf0] sm:$0xff] %v210_v30  ;;  %213 = vst [vmem:[%s1075_s26 + $0xf8] sm:$0xff] %v212_v31  ;;  %v216_v33 = vld [vmem:[%s1067_s25 + $0x1008] sm:$0xff] }
  0x22   : > { %215 = vst [vmem:[%s1075_s26 + $0x100] sm:$0xff] %v214_v32  ;;  %v218_v34 = vld [vmem:[%s1067_s25 + $0x1100] sm:$0xff]  ;;  %v220_v35 = vld [vmem:[%s1067_s25 + $0x1108] sm:$0xff]  ;;  %217 = vst [vmem:[%s1075_s26 + $0x108] sm:$0xff] %v216_v33 }
  0x23   : > { %219 = vst [vmem:[%s1075_s26 + $0x110] sm:$0xff] %v218_v34  ;;  %221 = vst [vmem:[%s1075_s26 + $0x118] sm:$0xff] %v220_v35  ;;  %v222_v36 = vld [vmem:[%s1067_s25 + $0x1200] sm:$0xff]  ;;  %v224_v37 = vld [vmem:[%s1067_s25 + $0x1208] sm:$0xff] }
  0x24   : > { %v226_v38 = vld [vmem:[%s1067_s25 + $0x1300] sm:$0xff]  ;;  %223 = vst [vmem:[%s1075_s26 + $0x120] sm:$0xff] %v222_v36  ;;  %225 = vst [vmem:[%s1075_s26 + $0x128] sm:$0xff] %v224_v37  ;;  %v228_v39 = vld [vmem:[%s1067_s25 + $0x1308] sm:$0xff] }
  0x25   : > { %227 = vst [vmem:[%s1075_s26 + $0x130] sm:$0xff] %v226_v38  ;;  %v230_v40 = vld [vmem:[%s1067_s25 + $0x1400] sm:$0xff]  ;;  %v232_v41 = vld [vmem:[%s1067_s25 + $0x1408] sm:$0xff]  ;;  %229 = vst [vmem:[%s1075_s26 + $0x138] sm:$0xff] %v228_v39 }
  0x26   : > { %231 = vst [vmem:[%s1075_s26 + $0x140] sm:$0xff] %v230_v40  ;;  %233 = vst [vmem:[%s1075_s26 + $0x148] sm:$0xff] %v232_v41  ;;  %v234_v42 = vld [vmem:[%s1067_s25 + $0x1500] sm:$0xff]  ;;  %v236_v43 = vld [vmem:[%s1067_s25 + $0x1508] sm:$0xff] }
  0x27   : > { %v238_v44 = vld [vmem:[%s1067_s25 + $0x1600] sm:$0xff]  ;;  %235 = vst [vmem:[%s1075_s26 + $0x150] sm:$0xff] %v234_v42  ;;  %237 = vst [vmem:[%s1075_s26 + $0x158] sm:$0xff] %v236_v43  ;;  %v240_v45 = vld [vmem:[%s1067_s25 + $0x1608] sm:$0xff] }
  0x28   : > { %239 = vst [vmem:[%s1075_s26 + $0x160] sm:$0xff] %v238_v44  ;;  %v242_v46 = vld [vmem:[%s1067_s25 + $0x1700] sm:$0xff]  ;;  %v244_v47 = vld [vmem:[%s1067_s25 + $0x1708] sm:$0xff]  ;;  %241 = vst [vmem:[%s1075_s26 + $0x168] sm:$0xff] %v240_v45 }
  0x29   : > { %243 = vst [vmem:[%s1075_s26 + $0x170] sm:$0xff] %v242_v46  ;;  %245 = vst [vmem:[%s1075_s26 + $0x178] sm:$0xff] %v244_v47  ;;  %v246_v48 = vld [vmem:[%s1067_s25 + $0x1800] sm:$0xff]  ;;  %v248_v49 = vld [vmem:[%s1067_s25 + $0x1808] sm:$0xff] }
  0x2a   : > { %v250_v50 = vld [vmem:[%s1067_s25 + $0x1900] sm:$0xff]  ;;  %247 = vst [vmem:[%s1075_s26 + $0x180] sm:$0xff] %v246_v48  ;;  %249 = vst [vmem:[%s1075_s26 + $0x188] sm:$0xff] %v248_v49  ;;  %v252_v51 = vld [vmem:[%s1067_s25 + $0x1908] sm:$0xff] }
  0x2b   : > { %251 = vst [vmem:[%s1075_s26 + $0x190] sm:$0xff] %v250_v50  ;;  %v254_v52 = vld [vmem:[%s1067_s25 + $0x1a00] sm:$0xff]  ;;  %v256_v53 = vld [vmem:[%s1067_s25 + $0x1a08] sm:$0xff]  ;;  %253 = vst [vmem:[%s1075_s26 + $0x198] sm:$0xff] %v252_v51 }
  0x2c   : > { %255 = vst [vmem:[%s1075_s26 + $0x1a0] sm:$0xff] %v254_v52  ;;  %257 = vst [vmem:[%s1075_s26 + $0x1a8] sm:$0xff] %v256_v53 }
  0x2d PF: > { %p808_p5 = scmp.ge.s32.totalorder %s1010_s14, 1  ;;  %p262_p6 = scmp.lt.s32.totalorder %s1010_s14, 17 }
  0x2f   : > { %p263_p7 = pnand %p808_p5, %p262_p6 }
  0x30   : > { %s269_s27 = sand.u32 (!%p263_p7), 1, %s1002_s12   ;;  %v1185_v54 = vld [vmem:[%s1265_s0] sm:$0xff] (!%p263_p7)  ;;  %vm637_vm0 = vcmask (!%p263_p7), 719872   ;;  %v1012_v57 = vmov (!%p263_p7), 0   ;;  %vm641_vm1 = vcmask (!%p263_p7), 1043456   ;;  %s809_s7 = sshll.u32 (!%p263_p7), %s802_s15, 2 }
  0x31   : > { %266 = sbr.rel (%p263_p7) target bundleno = 326 (0x146), region = 51  ;;  %v355_v55 = vld [vmem:[%s1267_s2] sm:$0xff] (!%p263_p7)  ;;  %v812_v56 = vcombine.high (!%p263_p7), %v1185_v54, %v1185_v54  ;;  %903 = vset.pattern.permute.xlu0 (!%p263_p7), %v1012_v57  ;;  %p294_p8 = scmp.lt.s32.totalorder (!%p263_p7), %s809_s7, 63 }
  0x32   : > { %s877_s5 = smul.u32 (!%p263_p7), 432, %s269_s27  ;;  %358 = vperm.xlu0 (!%p263_p7), %903, %v355_v55   ;;  %v811_v55 = vcombine.low (!%p263_p7), %v1185_v54, %v1185_v54 }
  0x33   : > { %870 = vmatprep.mubr.msk.bf16.mxu0 (!%p263_p7), %vm637_vm0, %v812_v56  ;;  %872 = vmatprep.mubr.msk.bf16.mxu1 (!%p263_p7), %vm637_vm0, %v812_v56 }
  0x34   : > { %s1192_s6 = scalar_lea.vmem (!%p263_p7), [#allocation2], %s877_s5 }
  0x35   : > { %v904_v58 = vld [vmem:[%s1192_s6 + $0x4] ss:$16 sps:$4 sm:$0xff] (!%p263_p7)   ;;  %v906_v59 = vld [vmem:[%s1192_s6 + $0xc] ss:$16 sps:$4 sm:$0xff] (!%p263_p7)   ;;  %v908_v60 = vld [vmem:[%s1192_s6] ss:$16 sps:$4 sm:$0xff] (!%p263_p7)  }
  0x36   : > { %654 = vmatprep.subr.bf16.mxu0 (!%p263_p7), %v904_v58  ;;  %v909_v61 = vld [vmem:[%s1192_s6 + $0x8] ss:$16 sps:$4 sm:$0xff] (!%p263_p7)   ;;  %695 = vmatprep.subr.bf16.mxu1 (!%p263_p7), %v906_v59  ;;  %v910_v62 = vld [vmem:[%s1192_s6 + $0x24] ss:$16 sps:$4 sm:$0xff] (!%p263_p7)   ;;  %v912_v63 = vld [vmem:[%s1192_s6 + $0x2c] ss:$16 sps:$4 sm:$0xff] (!%p263_p7)  }
  0x37   : > { %655 = vmatpush1.bf16.msra.mxu0 (!%p263_p7), %v908_v60  ;;  %696 = vmatpush1.bf16.msra.mxu1 (!%p263_p7), %v909_v61  ;;  %v914_v0 = vld [vmem:[%s1192_s6 + $0x20] ss:$16 sps:$4 sm:$0xff] (!%p263_p7)   ;;  %v915_v1 = vld [vmem:[%s1192_s6 + $0x28] ss:$16 sps:$4 sm:$0xff] (!%p263_p7)   ;;  %v916_v2 = vld [vmem:[%s1192_s6 + $0x44] ss:$16 sps:$4 sm:$0xff] (!%p263_p7)  }
  0x38   : > { %656 = vmatprep.subr.bf16.mxu0 %v910_v62  ;;  %697 = vmatprep.subr.bf16.mxu1 %v912_v63  ;;  %v918_v3 = vld [vmem:[%s1192_s6 + $0x4c] ss:$16 sps:$4 sm:$0xff]   ;;  %v920_v4 = vld [vmem:[%s1192_s6 + $0x40] ss:$16 sps:$4 sm:$0xff]   ;;  %v921_v5 = vld [vmem:[%s1192_s6 + $0x48] ss:$16 sps:$4 sm:$0xff]  }
  0x39   : > { %v922_v6 = vld [vmem:[%s1192_s6 + $0x64] ss:$16 sps:$4 sm:$0xff]   ;;  %v924_v7 = vld [vmem:[%s1192_s6 + $0x6c] ss:$16 sps:$4 sm:$0xff]   ;;  %v926_v8 = vld [vmem:[%s1192_s6 + $0x60] ss:$16 sps:$4 sm:$0xff]  }
  0x3a   : > { %v927_v9 = vld [vmem:[%s1192_s6 + $0x68] ss:$16 sps:$4 sm:$0xff]   ;;  %v928_v10 = vld [vmem:[%s1192_s6 + $0x84] ss:$16 sps:$4 sm:$0xff]   ;;  %v930_v11 = vld [vmem:[%s1192_s6 + $0x8c] ss:$16 sps:$4 sm:$0xff]  }
  0x3b   : > { %657 = vmatpush1.bf16.msra.mxu0 %v914_v0  ;;  %698 = vmatpush1.bf16.msra.mxu1 %v915_v1  ;;  %v932_v12 = vld [vmem:[%s1192_s6 + $0x80] ss:$16 sps:$4 sm:$0xff]   ;;  %v933_v13 = vld [vmem:[%s1192_s6 + $0x88] ss:$16 sps:$4 sm:$0xff]   ;;  %v934_v14 = vld [vmem:[%s1192_s6 + $0xa4] ss:$16 sps:$4 sm:$0xff]  }
  0x3c   : > { %658 = vmatprep.subr.bf16.mxu0 %v916_v2  ;;  %699 = vmatprep.subr.bf16.mxu1 %v918_v3  ;;  %v936_v15 = vld [vmem:[%s1192_s6 + $0xac] ss:$16 sps:$4 sm:$0xff]   ;;  %v938_v16 = vld [vmem:[%s1192_s6 + $0xa0] ss:$16 sps:$4 sm:$0xff]   ;;  %v939_v17 = vld [vmem:[%s1192_s6 + $0xa8] ss:$16 sps:$4 sm:$0xff]  }
  0x3d   : > { %v940_v18 = vld [vmem:[%s1192_s6 + $0xc4] ss:$16 sps:$4 sm:$0xff]   ;;  %v942_v19 = vld [vmem:[%s1192_s6 + $0xcc] ss:$16 sps:$4 sm:$0xff]   ;;  %v944_v20 = vld [vmem:[%s1192_s6 + $0xc0] ss:$16 sps:$4 sm:$0xff]  }
  0x3e   : > { %v945_v21 = vld [vmem:[%s1192_s6 + $0xc8] ss:$16 sps:$4 sm:$0xff]   ;;  %v946_v22 = vld [vmem:[%s1192_s6 + $0xe4] ss:$16 sps:$4 sm:$0xff]   ;;  %v948_v23 = vld [vmem:[%s1192_s6 + $0xec] ss:$16 sps:$4 sm:$0xff]  }
  0x3f   : > { %659 = vmatpush1.bf16.msra.mxu0 %v920_v4  ;;  %700 = vmatpush1.bf16.msra.mxu1 %v921_v5  ;;  %v950_v24 = vld [vmem:[%s1192_s6 + $0xe0] ss:$16 sps:$4 sm:$0xff]   ;;  %v951_v25 = vld [vmem:[%s1192_s6 + $0xe8] ss:$16 sps:$4 sm:$0xff]   ;;  %v952_v26 = vld [vmem:[%s1192_s6 + $0x104] ss:$16 sps:$4 sm:$0xff]  }
  0x40   : > { %660 = vmatprep.subr.bf16.mxu0 %v922_v6  ;;  %701 = vmatprep.subr.bf16.mxu1 %v924_v7  ;;  %v954_v27 = vld [vmem:[%s1192_s6 + $0x10c] ss:$16 sps:$4 sm:$0xff]   ;;  %v956_v28 = vld [vmem:[%s1192_s6 + $0x100] ss:$16 sps:$4 sm:$0xff]   ;;  %v957_v29 = vld [vmem:[%s1192_s6 + $0x108] ss:$16 sps:$4 sm:$0xff]  }
  0x41   : > { %v958_v30 = vld [vmem:[%s1192_s6 + $0x124] ss:$16 sps:$4 sm:$0xff]   ;;  %v960_v31 = vld [vmem:[%s1192_s6 + $0x12c] ss:$16 sps:$4 sm:$0xff]   ;;  %v962_v32 = vld [vmem:[%s1192_s6 + $0x120] ss:$16 sps:$4 sm:$0xff]  }
  0x42   : > { %v963_v33 = vld [vmem:[%s1192_s6 + $0x128] ss:$16 sps:$4 sm:$0xff]   ;;  %v964_v34 = vld [vmem:[%s1192_s6 + $0x144] ss:$16 sps:$4 sm:$0xff]   ;;  %v966_v35 = vld [vmem:[%s1192_s6 + $0x14c] ss:$16 sps:$4 sm:$0xff]  }
  0x43   : > { %661 = vmatpush1.bf16.msra.mxu0 %v926_v8  ;;  %702 = vmatpush1.bf16.msra.mxu1 %v927_v9  ;;  %v968_v36 = vld [vmem:[%s1192_s6 + $0x140] ss:$16 sps:$4 sm:$0xff]   ;;  %v969_v37 = vld [vmem:[%s1192_s6 + $0x148] ss:$16 sps:$4 sm:$0xff]   ;;  %v970_v38 = vld [vmem:[%s1192_s6 + $0x164] ss:$16 sps:$4 sm:$0xff]  }
  0x44   : > { %662 = vmatprep.subr.bf16.mxu0 %v928_v10  ;;  %703 = vmatprep.subr.bf16.mxu1 %v930_v11  ;;  %v972_v39 = vld [vmem:[%s1192_s6 + $0x16c] ss:$16 sps:$4 sm:$0xff]   ;;  %v974_v40 = vld [vmem:[%s1192_s6 + $0x160] ss:$16 sps:$4 sm:$0xff]   ;;  %v975_v41 = vld [vmem:[%s1192_s6 + $0x168] ss:$16 sps:$4 sm:$0xff]  }
  0x45   : > { %v976_v42 = vld [vmem:[%s1192_s6 + $0x184] ss:$16 sps:$4 sm:$0xff]   ;;  %v978_v43 = vld [vmem:[%s1192_s6 + $0x18c] ss:$16 sps:$4 sm:$0xff]   ;;  %v980_v46 = vld [vmem:[%s1192_s6 + $0x180] ss:$16 sps:$4 sm:$0xff]  }
  0x46   : > { %v353_v44 = vld [vmem:[%s1192_s6 + $0x1a0] sm:$0xff]  ;;  %v354_v45 = vld [vmem:[%s1192_s6 + $0x1a8] sm:$0xff]  ;;  %s1273_s7 = smov (!%p294_p8, %s809_s7), 63 }
  0x47   : > { %663 = vmatpush1.bf16.msra.mxu0 %v932_v12  ;;  %704 = vmatpush1.bf16.msra.mxu1 %v933_v13  ;;  %v981_v47 = vld [vmem:[%s1192_s6 + $0x188] ss:$16 sps:$4 sm:$0xff]   ;;  %v866_v48 = vcombine.high %v353_v44, %v353_v44  ;;  %v868_v49 = vcombine.high %v354_v45, %v354_v45  ;;  %v865_v50 = vcombine.low %v353_v44, %v353_v44  ;;  %s810_s8 = sshll.u32 %s1273_s7, 3 }
  0x48   : > { %664 = vmatprep.subr.bf16.mxu0 %v934_v14  ;;  %705 = vmatprep.subr.bf16.mxu1 %v936_v15  ;;  %v867_v51 = vcombine.low %v354_v45, %v354_v45  ;;  %s297_s11 = scalar_lea.vmem %s1268_s3, %s810_s8 }
  0x49   : > { %v643_v52 = vsel %vm641_vm1, %v865_v50, 0 }
  0x4a   : > { %v649_v53 = vsel %vm641_vm1, %v867_v51, 0 }
  0x4b   : > { %665 = vmatpush1.bf16.msra.mxu0 %v938_v16  ;;  %706 = vmatpush1.bf16.msra.mxu1 %v939_v17 }
  0x4c   : > { %666 = vmatprep.subr.bf16.mxu0 %v940_v18  ;;  %707 = vmatprep.subr.bf16.mxu1 %v942_v19 }
  0x4f   : > { %667 = vmatpush1.bf16.msra.mxu0 %v944_v20  ;;  %708 = vmatpush1.bf16.msra.mxu1 %v945_v21 }
  0x50   : > { %668 = vmatprep.subr.bf16.mxu0 %v946_v22  ;;  %709 = vmatprep.subr.bf16.mxu1 %v948_v23 }
  0x53   : > { %669 = vmatpush1.bf16.msra.mxu0 %v950_v24  ;;  %710 = vmatpush1.bf16.msra.mxu1 %v951_v25 }
  0x54   : > { %670 = vmatprep.subr.bf16.mxu0 %v952_v26  ;;  %711 = vmatprep.subr.bf16.mxu1 %v954_v27 }
  0x57   : > { %671 = vmatpush1.bf16.msra.mxu0 %v956_v28  ;;  %712 = vmatpush1.bf16.msra.mxu1 %v957_v29 }
  0x58   : > { %672 = vmatprep.subr.bf16.mxu0 %v958_v30  ;;  %713 = vmatprep.subr.bf16.mxu1 %v960_v31 }
  0x5b   : > { %673 = vmatpush1.bf16.msra.mxu0 %v962_v32  ;;  %714 = vmatpush1.bf16.msra.mxu1 %v963_v33 }
  0x5c   : > { %674 = vmatprep.subr.bf16.mxu0 %v964_v34  ;;  %715 = vmatprep.subr.bf16.mxu1 %v966_v35 }
  0x5f   : > { %675 = vmatpush1.bf16.msra.mxu0 %v968_v36  ;;  %716 = vmatpush1.bf16.msra.mxu1 %v969_v37 }
  0x60   : > { %676 = vmatprep.subr.bf16.mxu0 %v970_v38  ;;  %717 = vmatprep.subr.bf16.mxu1 %v972_v39 }
  0x63   : > { %677 = vmatpush1.bf16.msra.mxu0 %v974_v40  ;;  %718 = vmatpush1.bf16.msra.mxu1 %v975_v41 }
  0x64   : > { %678 = vmatprep.subr.bf16.mxu0 %v976_v42  ;;  %719 = vmatprep.subr.bf16.mxu1 %v978_v43 }
  0x67   : > { %679 = vmatpush1.bf16.msra.mxu0 %v980_v46  ;;  %720 = vmatpush1.bf16.msra.mxu1 %v981_v47 }
  0x68   : > { %869 = vmatprep.subr.msk.bf16.mxu0 %vm641_vm1, %v866_v48  ;;  %871 = vmatprep.subr.msk.bf16.mxu1 %vm641_vm1, %v868_v49 }
  0x6b   : > { %681 = vmatpush1.bf16.msra.mxu0 %v643_v52  ;;  %722 = vmatpush1.bf16.msra.mxu1 %v649_v53 }
  0x6e   : > { %687 = vmatmul.mubr.bf16.vlgmr.msra.gmra.mrb[0].mxu0 %v811_v55  ;;  %728 = vmatmul.mubr.bf16.vlgmr.msra.gmra.mrb[0].mxu1 %v811_v55 }
  0xb1   : > { %v359_v56 = vpop.permute.xlu0 %358 }
 0x141   : > { %v688_v57 = vpop.f32.mrb[0].mxu0  ;;  %v729_v58 = vpop.f32.mrb[0].mxu1 }
 0x142   : > { %v689_v59 = vadd.f32 %v688_v57, %v359_v56  ;;  %v730_v60 = vadd.f32 %v729_v58, %v359_v56  ;;  %v690_v61 = vpop.f32.mrb[1].mxu0  ;;  %v731_v54 = vpop.f32.mrb[1].mxu1 }
 0x143   : > { %v691_v62 = vadd.f32 %v690_v61, %v359_v56  ;;  %v732_v63 = vadd.f32 %v731_v54, %v359_v56  ;;  %v692_v0 = vpop.f32.mrb[2].mxu0  ;;  %v733_v1 = vpop.f32.mrb[2].mxu1 }
 0x144   : > { %736 = vst [vmem:[%s297_s11] sm:$0xff] %v689_v59  ;;  %738 = vst [vmem:[%s297_s11 + $0x10] sm:$0xff] %v730_v60  ;;  %v693_v2 = vpop.f32.mrb[3].mxu0  ;;  %v734_v3 = vpop.f32.mrb[3].mxu1 }
 0x145   : > { %737 = vst [vmem:[%s297_s11 + $0x8] sm:$0xff] %v691_v62  ;;  %739 = vst [vmem:[%s297_s11 + $0x18] sm:$0xff] %v732_v63 }
 0x146 PF: > { %p10_p9 = scmp.ge.s32.totalorder %s1050_s16, 18   ;;  %s1269_s12 = smov %s1006_s13 }
 0x147   : > { %s1270_s13 = smov %s1059_s19  ;;  %s1271_s14 = smov %s1050_s16 }
 0x148   :  { %12 = sbr.rel (!%p10_p9) target bundleno = 2 (0x2), region = 90 }

// kernel: appearance_model_style_forward.26
= control target key start
LH: loop header
LB: loop body
LE: loop exit
PB: predicated region body
PF: predicated region fallthrough
CT: control target
= control target key end

     0   :  { %v426_v63 = vmov 0   ;;  %s1146_s0 = inlined_call_operand.vmem [shape: f32[8,4096], index: 0, kind: input, shape index: {}]   ;;  %s1147_s1 = inlined_call_operand.vmem [shape: f32[8,1], index: 1, kind: input, shape index: {}]   ;;  %s1148_s2 = inlined_call_operand.vmem [shape: f32[8,1], index: 2, kind: input, shape index: {}]   ;;  %s1149_s3 = inlined_call_operand.vmem [shape: f32[8,4096], index: 3, kind: output, shape index: {}]  }
   0x1   :  { %v450_v0 = vld [vmem:[%s1146_s0] sm:$0xff]  ;;  %v455_v1 = vld [vmem:[%s1146_s0 + $0x8] sm:$0xff]  ;;  %v460_v2 = vld [vmem:[%s1146_s0 + $0x10] sm:$0xff]  ;;  %422 = vset.pattern.permute.xlu1 %v426_v63  ;;  %423 = vset.pattern.permute.xlu0 %v426_v63 }
   0x2   :  { %v46_v3 = vadd.f32 %v455_v1, %v450_v0  ;;  %v467_v4 = vld [vmem:[%s1146_s0 + $0x18] sm:$0xff]  ;;  %v473_v6 = vld [vmem:[%s1146_s0 + $0x20] sm:$0xff]  ;;  %v479_v8 = vld [vmem:[%s1146_s0 + $0x28] sm:$0xff] }
   0x3   :  { %v485_v10 = vld [vmem:[%s1146_s0 + $0x30] sm:$0xff]  ;;  %v491_v12 = vld [vmem:[%s1146_s0 + $0x38] sm:$0xff]  ;;  %v497_v14 = vld [vmem:[%s1146_s0 + $0x40] sm:$0xff] }
   0x4   :  { %v47_v5 = vadd.f32 %v46_v3, %v460_v2  ;;  %v503_v16 = vld [vmem:[%s1146_s0 + $0x48] sm:$0xff]  ;;  %v509_v18 = vld [vmem:[%s1146_s0 + $0x50] sm:$0xff]  ;;  %v515_v20 = vld [vmem:[%s1146_s0 + $0x58] sm:$0xff] }
   0x5   :  { %v521_v22 = vld [vmem:[%s1146_s0 + $0x60] sm:$0xff]  ;;  %v527_v24 = vld [vmem:[%s1146_s0 + $0x68] sm:$0xff]  ;;  %v533_v26 = vld [vmem:[%s1146_s0 + $0x70] sm:$0xff] }
   0x6   :  { %v48_v7 = vadd.f32 %v47_v5, %v467_v4  ;;  %v539_v28 = vld [vmem:[%s1146_s0 + $0x78] sm:$0xff]  ;;  %v545_v30 = vld [vmem:[%s1146_s0 + $0x80] sm:$0xff]  ;;  %v551_v32 = vld [vmem:[%s1146_s0 + $0x88] sm:$0xff] }
   0x7   :  { %v557_v34 = vld [vmem:[%s1146_s0 + $0x90] sm:$0xff]  ;;  %v563_v36 = vld [vmem:[%s1146_s0 + $0x98] sm:$0xff]  ;;  %v569_v38 = vld [vmem:[%s1146_s0 + $0xa0] sm:$0xff] }
   0x8   :  { %v49_v9 = vadd.f32 %v48_v7, %v473_v6  ;;  %v575_v40 = vld [vmem:[%s1146_s0 + $0xa8] sm:$0xff]  ;;  %v581_v42 = vld [vmem:[%s1146_s0 + $0xb0] sm:$0xff]  ;;  %v587_v44 = vld [vmem:[%s1146_s0 + $0xb8] sm:$0xff] }
   0x9   :  { %v593_v46 = vld [vmem:[%s1146_s0 + $0xc0] sm:$0xff]  ;;  %v599_v48 = vld [vmem:[%s1146_s0 + $0xc8] sm:$0xff]  ;;  %v605_v50 = vld [vmem:[%s1146_s0 + $0xd0] sm:$0xff] }
   0xa   :  { %v50_v11 = vadd.f32 %v49_v9, %v479_v8  ;;  %v611_v52 = vld [vmem:[%s1146_s0 + $0xd8] sm:$0xff]  ;;  %v617_v54 = vld [vmem:[%s1146_s0 + $0xe0] sm:$0xff]  ;;  %v623_v56 = vld [vmem:[%s1146_s0 + $0xe8] sm:$0xff] }
   0xb   :  { %v629_v58 = vld [vmem:[%s1146_s0 + $0xf0] sm:$0xff]  ;;  %v635_v60 = vld [vmem:[%s1146_s0 + $0xf8] sm:$0xff]  ;;  %v213_v3 = vld [vmem:[%s1147_s1] sm:$0xff] }
   0xc   :  { %v51_v13 = vadd.f32 %v50_v11, %v485_v10  ;;  %216 = vperm.xlu1 %422, %v213_v3   ;;  %v251_v5 = vld [vmem:[%s1148_s2] sm:$0xff] }
   0xe   :  { %v52_v15 = vadd.f32 %v51_v13, %v491_v12 }
  0x10   :  { %v53_v17 = vadd.f32 %v52_v15, %v497_v14  ;;  %254 = vperm.xlu1 %422, %v251_v5  }
  0x12   :  { %v54_v19 = vadd.f32 %v53_v17, %v503_v16 }
  0x14   :  { %v55_v21 = vadd.f32 %v54_v19, %v509_v18 }
  0x16   :  { %v56_v23 = vadd.f32 %v55_v21, %v515_v20 }
  0x18   :  { %v57_v25 = vadd.f32 %v56_v23, %v521_v22 }
  0x1a   :  { %v58_v27 = vadd.f32 %v57_v25, %v527_v24 }
  0x1c   :  { %v59_v29 = vadd.f32 %v58_v27, %v533_v26 }
  0x1e   :  { %v60_v31 = vadd.f32 %v59_v29, %v539_v28 }
  0x20   :  { %v61_v33 = vadd.f32 %v60_v31, %v545_v30 }
  0x22   :  { %v62_v35 = vadd.f32 %v61_v33, %v551_v32 }
  0x24   :  { %v63_v37 = vadd.f32 %v62_v35, %v557_v34 }
  0x26   :  { %v64_v39 = vadd.f32 %v63_v37, %v563_v36 }
  0x28   :  { %v65_v41 = vadd.f32 %v64_v39, %v569_v38 }
  0x2a   :  { %v66_v43 = vadd.f32 %v65_v41, %v575_v40 }
  0x2c   :  { %v67_v45 = vadd.f32 %v66_v43, %v581_v42 }
  0x2e   :  { %v68_v47 = vadd.f32 %v67_v45, %v587_v44 }
  0x30   :  { %v69_v49 = vadd.f32 %v68_v47, %v593_v46 }
  0x32   :  { %v70_v51 = vadd.f32 %v69_v49, %v599_v48 }
  0x34   :  { %v71_v53 = vadd.f32 %v70_v51, %v605_v50 }
  0x36   :  { %v72_v55 = vadd.f32 %v71_v53, %v611_v52 }
  0x38   :  { %v73_v57 = vadd.f32 %v72_v55, %v617_v54 }
  0x3a   :  { %v74_v59 = vadd.f32 %v73_v57, %v623_v56 }
  0x3c   :  { %v75_v61 = vadd.f32 %v74_v59, %v629_v58 }
  0x3e   :  { %v76_v62 = vadd.f32 %v75_v61, %v635_v60 }
  0x40   :  { %77 = vadd.xlane.f32.xlu0 %v76_v62 }
  0xcd   :  { %v78_v7 = vpop.xlane.xlu0 %77 }
  0xce   :  { %v645_v9 = vmul.f32 0.00024414063, %v78_v7 }
  0xd0   :  { %v649_v11 = vsub.f32 %v450_v0, %v645_v9  ;;  %v653_v13 = vsub.f32 %v455_v1, %v645_v9  ;;  %v657_v15 = vsub.f32 %v460_v2, %v645_v9  ;;  %v665_v21 = vsub.f32 %v467_v4, %v645_v9 }
  0xd1   :  { %v669_v0 = vsub.f32 %v473_v6, %v645_v9  ;;  %v675_v2 = vsub.f32 %v479_v8, %v645_v9  ;;  %v681_v4 = vsub.f32 %v485_v10, %v645_v9  ;;  %v687_v31 = vsub.f32 %v491_v12, %v645_v9 }
  0xd2   :  { %v113_v17 = vmul.f32 %v649_v11, %v649_v11  ;;  %v114_v19 = vmul.f32 %v653_v13, %v653_v13  ;;  %v115_v1 = vmul.f32 %v657_v15, %v657_v15  ;;  %v116_v25 = vmul.f32 %v665_v21, %v665_v21 }
  0xd3   :  { %v117_v6 = vmul.f32 %v669_v0, %v669_v0  ;;  %v118_v8 = vmul.f32 %v675_v2, %v675_v2  ;;  %v693_v35 = vsub.f32 %v497_v14, %v645_v9  ;;  %v119_v10 = vmul.f32 %v681_v4, %v681_v4 }
  0xd4   :  { %v145_v23 = vadd.f32 %v114_v19, %v113_v17  ;;  %v699_v39 = vsub.f32 %v503_v16, %v645_v9  ;;  %v120_v12 = vmul.f32 %v687_v31, %v687_v31  ;;  %v705_v43 = vsub.f32 %v509_v18, %v645_v9 }
  0xd5   :  { %v121_v14 = vmul.f32 %v693_v35, %v693_v35  ;;  %v711_v47 = vsub.f32 %v515_v20, %v645_v9  ;;  %v717_v51 = vsub.f32 %v521_v22, %v645_v9  ;;  %v723_v55 = vsub.f32 %v527_v24, %v645_v9 }
  0xd6   :  { %v146_v27 = vadd.f32 %v145_v23, %v115_v1  ;;  %v122_v16 = vmul.f32 %v699_v39, %v699_v39  ;;  %v123_v18 = vmul.f32 %v705_v43, %v705_v43  ;;  %v729_v59 = vsub.f32 %v533_v26, %v645_v9 }
  0xd7   :  { %v124_v20 = vmul.f32 %v711_v47, %v711_v47  ;;  %v125_v22 = vmul.f32 %v717_v51, %v717_v51  ;;  %v735_v62 = vsub.f32 %v539_v28, %v645_v9  ;;  %v126_v24 = vmul.f32 %v723_v55, %v723_v55 }
  0xd8   :  { %v147_v29 = vadd.f32 %v146_v27, %v116_v25  ;;  %v741_v3 = vsub.f32 %v545_v30, %v645_v9  ;;  %v127_v26 = vmul.f32 %v729_v59, %v729_v59  ;;  %v747_v7 = vsub.f32 %v551_v32, %v645_v9 }
  0xd9   :  { %v128_v28 = vmul.f32 %v735_v62, %v735_v62  ;;  %v753_v19 = vsub.f32 %v557_v34, %v645_v9  ;;  %v759_v23 = vsub.f32 %v563_v36, %v645_v9  ;;  %v765_v27 = vsub.f32 %v569_v38, %v645_v9 }
  0xda   :  { %v148_v33 = vadd.f32 %v147_v29, %v117_v6  ;;  %v129_v30 = vmul.f32 %v741_v3, %v741_v3  ;;  %v130_v32 = vmul.f32 %v747_v7, %v747_v7  ;;  %v771_v29 = vsub.f32 %v575_v40, %v645_v9 }
  0xdb   :  { %v131_v34 = vmul.f32 %v753_v19, %v753_v19  ;;  %v132_v36 = vmul.f32 %v759_v23, %v759_v23  ;;  %v133_v38 = vmul.f32 %v765_v27, %v765_v27 }
  0xdc   :  { %v149_v37 = vadd.f32 %v148_v33, %v118_v8  ;;  %v777_v33 = vsub.f32 %v581_v42, %v645_v9  ;;  %v106_v42 = vsub.f32 %v599_v48, %v645_v9  ;;  %v110_v48 = vsub.f32 %v623_v56, %v645_v9 }
  0xde   :  { %v150_v41 = vadd.f32 %v149_v37, %v119_v10  ;;  %v104_v37 = vsub.f32 %v587_v44, %v645_v9 }
  0xe0   :  { %v151_v45 = vadd.f32 %v150_v41, %v120_v12  ;;  %v134_v12 = vmul.f32 %v771_v29, %v771_v29  ;;  %v105_v41 = vsub.f32 %v593_v46, %v645_v9  ;;  %v109_v46 = vsub.f32 %v617_v54, %v645_v9 }
  0xe2   :  { %v152_v49 = vadd.f32 %v151_v45, %v121_v14  ;;  %v135_v14 = vmul.f32 %v777_v33, %v777_v33  ;;  %v137_v44 = vmul.f32 %v105_v41, %v105_v41 }
  0xe4   :  { %v153_v53 = vadd.f32 %v152_v49, %v122_v16  ;;  %v136_v16 = vmul.f32 %v104_v37, %v104_v37 }
  0xe6   :  { %v154_v57 = vadd.f32 %v153_v53, %v123_v18  ;;  %v107_v18 = vsub.f32 %v605_v50, %v645_v9  ;;  %v111_v50 = vsub.f32 %v629_v58, %v645_v9 }
  0xe8   :  { %v155_v61 = vadd.f32 %v154_v57, %v124_v20  ;;  %v108_v20 = vsub.f32 %v611_v52, %v645_v9  ;;  %v138_v57 = vmul.f32 %v106_v42, %v106_v42  ;;  %v112_v52 = vsub.f32 %v635_v60, %v645_v9 }
  0xea   :  { %v156_v63 = vadd.f32 %v155_v61, %v125_v22  ;;  %v139_v61 = vmul.f32 %v107_v18, %v107_v18  ;;  %v144_v54 = vmul.f32 %v112_v52, %v112_v52 }
  0xec   :  { %v157_v5 = vadd.f32 %v156_v63, %v126_v24  ;;  %v140_v63 = vmul.f32 %v108_v20, %v108_v20 }
  0xee   :  { %v158_v17 = vadd.f32 %v157_v5, %v127_v26  ;;  %v141_v5 = vmul.f32 %v109_v46, %v109_v46 }
  0xf0   :  { %v159_v1 = vadd.f32 %v158_v17, %v128_v28  ;;  %v142_v17 = vmul.f32 %v110_v48, %v110_v48 }
  0xf2   :  { %v160_v25 = vadd.f32 %v159_v1, %v129_v30  ;;  %v143_v1 = vmul.f32 %v111_v50, %v111_v50 }
  0xf4   :  { %v161_v6 = vadd.f32 %v160_v25, %v130_v32 }
  0xf6   :  { %v162_v8 = vadd.f32 %v161_v6, %v131_v34 }
  0xf8   :  { %v163_v10 = vadd.f32 %v162_v8, %v132_v36 }
  0xfa   :  { %v164_v40 = vadd.f32 %v163_v10, %v133_v38 }
  0xfc   :  { %v165_v45 = vadd.f32 %v164_v40, %v134_v12 }
  0xfe   :  { %v166_v49 = vadd.f32 %v165_v45, %v135_v14 }
 0x100   :  { %v167_v53 = vadd.f32 %v166_v49, %v136_v16 }
 0x102   :  { %v168_v22 = vadd.f32 %v167_v53, %v137_v44 }
 0x104   :  { %v169_v24 = vadd.f32 %v168_v22, %v138_v57 }
 0x106   :  { %v170_v26 = vadd.f32 %v169_v24, %v139_v61 }
 0x108   :  { %v171_v28 = vadd.f32 %v170_v26, %v140_v63 }
 0x10a   :  { %v172_v30 = vadd.f32 %v171_v28, %v141_v5 }
 0x10c   :  { %v173_v32 = vadd.f32 %v172_v30, %v142_v17 }
 0x10e   :  { %v174_v25 = vadd.f32 %v173_v32, %v143_v1 }
 0x110   :  { %v175_v34 = vadd.f32 %v174_v25, %v144_v54 }
 0x112   :  { %176 = vadd.xlane.f32.xlu0 %v175_v34 }
 0x19f   :  { %v177_v6 = vpop.xlane.xlu0 %176 }
 0x1a0   :  { %v178_v56 = vmul.f32 0.00024414063, %v177_v6 }
 0x1a2   :  { %v179_v36 = vadd.f32 1e-05, %v178_v56 }
 0x1a4   :  { %424 = vrsqrt.f32 %v179_v36 }
 0x1ae   :  { %v425_v8 = vpop.eup %424 }
 0x1af   :  { %v181_v58 = vmul.f32 %v425_v8, %v649_v11  ;;  %v182_v38 = vmul.f32 %v425_v8, %v653_v13  ;;  %v183_v10 = vmul.f32 %v425_v8, %v657_v15  ;;  %v184_v60 = vmul.f32 %v425_v8, %v665_v21 }
 0x1b0   :  { %v185_v9 = vmul.f32 %v425_v8, %v669_v0  ;;  %v186_v12 = vmul.f32 %v425_v8, %v675_v2  ;;  %v187_v40 = vmul.f32 %v425_v8, %v681_v4  ;;  %v188_v14 = vmul.f32 %v425_v8, %v687_v31 }
 0x1b1   :  { %v189_v45 = vmul.f32 %v425_v8, %v693_v35  ;;  %v190_v16 = vmul.f32 %v425_v8, %v699_v39  ;;  %v191_v11 = vmul.f32 %v425_v8, %v705_v43  ;;  %v192_v13 = vmul.f32 %v425_v8, %v711_v47 }
 0x1b2   :  { %v193_v15 = vmul.f32 %v425_v8, %v717_v51  ;;  %v194_v21 = vmul.f32 %v425_v8, %v723_v55  ;;  %v195_v0 = vmul.f32 %v425_v8, %v729_v59  ;;  %v196_v2 = vmul.f32 %v425_v8, %v735_v62  ;;  %v217_v62 = vpop.permute.xlu1 %216 }
 0x1b3   :  { %v197_v4 = vmul.f32 %v425_v8, %v741_v3  ;;  %v198_v31 = vmul.f32 %v425_v8, %v747_v7  ;;  %v199_v35 = vmul.f32 %v425_v8, %v753_v19  ;;  %v200_v39 = vmul.f32 %v425_v8, %v759_v23 }
 0x1b4   :  { %v201_v43 = vmul.f32 %v425_v8, %v765_v27  ;;  %v202_v47 = vmul.f32 %v425_v8, %v771_v29  ;;  %v203_v51 = vmul.f32 %v425_v8, %v777_v33  ;;  %v204_v49 = vmul.f32 %v425_v8, %v104_v37 }
 0x1b5   :  { %v205_v55 = vmul.f32 %v425_v8, %v105_v41  ;;  %v206_v44 = vmul.f32 %v425_v8, %v106_v42  ;;  %v207_v59 = vmul.f32 %v425_v8, %v107_v18  ;;  %v208_v53 = vmul.f32 %v425_v8, %v108_v20 }
 0x1b6   :  { %v209_v57 = vmul.f32 %v425_v8, %v109_v46  ;;  %v210_v3 = vmul.f32 %v425_v8, %v110_v48  ;;  %v211_v22 = vmul.f32 %v425_v8, %v111_v50  ;;  %v212_v7 = vmul.f32 %v425_v8, %v112_v52  ;;  %v255_v56 = vpop.permute.xlu1 %254 }
 0x1b7   :  { %v219_v61 = vmul.f32 %v217_v62, %v181_v58  ;;  %v220_v19 = vmul.f32 %v217_v62, %v182_v38  ;;  %v221_v24 = vmul.f32 %v217_v62, %v183_v10  ;;  %v222_v23 = vmul.f32 %v217_v62, %v184_v60 }
 0x1b8   :  { %v223_v63 = vmul.f32 %v217_v62, %v185_v9  ;;  %v224_v27 = vmul.f32 %v217_v62, %v186_v12  ;;  %v225_v26 = vmul.f32 %v217_v62, %v187_v40  ;;  %v226_v29 = vmul.f32 %v217_v62, %v188_v14 }
 0x1b9   :  { %v227_v5 = vmul.f32 %v217_v62, %v189_v45  ;;  %v228_v33 = vmul.f32 %v217_v62, %v190_v16  ;;  %v229_v37 = vmul.f32 %v217_v62, %v191_v11  ;;  %v230_v41 = vmul.f32 %v217_v62, %v192_v13 }
 0x1ba   :  { %v231_v42 = vmul.f32 %v217_v62, %v193_v15  ;;  %v232_v18 = vmul.f32 %v217_v62, %v194_v21  ;;  %v233_v20 = vmul.f32 %v217_v62, %v195_v0  ;;  %v234_v28 = vmul.f32 %v217_v62, %v196_v2 }
 0x1bb   :  { %v235_v46 = vmul.f32 %v217_v62, %v197_v4  ;;  %v236_v48 = vmul.f32 %v217_v62, %v198_v31  ;;  %v237_v50 = vmul.f32 %v217_v62, %v199_v35  ;;  %v238_v52 = vmul.f32 %v217_v62, %v200_v39 }
 0x1bc   :  { %v239_v17 = vmul.f32 %v217_v62, %v201_v43  ;;  %v240_v30 = vmul.f32 %v217_v62, %v202_v47  ;;  %v241_v1 = vmul.f32 %v217_v62, %v203_v51  ;;  %v242_v32 = vmul.f32 %v217_v62, %v204_v49 }
 0x1bd   :  { %v243_v54 = vmul.f32 %v217_v62, %v205_v55  ;;  %v244_v25 = vmul.f32 %v217_v62, %v206_v44  ;;  %v245_v34 = vmul.f32 %v217_v62, %v207_v59  ;;  %v246_v6 = vmul.f32 %v217_v62, %v208_v53 }
 0x1be   :  { %v247_v36 = vmul.f32 %v217_v62, %v209_v57  ;;  %v248_v8 = vmul.f32 %v217_v62, %v210_v3  ;;  %v249_v58 = vmul.f32 %v217_v62, %v211_v22  ;;  %v250_v38 = vmul.f32 %v217_v62, %v212_v7 }
 0x1bf   :  { %v826_v10 = vadd.f32 %v255_v56, %v219_v61  ;;  %v828_v60 = vadd.f32 %v255_v56, %v220_v19  ;;  %v830_v9 = vadd.f32 %v255_v56, %v221_v24  ;;  %v832_v12 = vadd.f32 %v255_v56, %v222_v23 }
 0x1c0   :  { %v834_v40 = vadd.f32 %v255_v56, %v223_v63  ;;  %v836_v14 = vadd.f32 %v255_v56, %v224_v27  ;;  %v838_v45 = vadd.f32 %v255_v56, %v225_v26  ;;  %v840_v16 = vadd.f32 %v255_v56, %v226_v29 }
 0x1c1   :  { %v842_v11 = vadd.f32 %v255_v56, %v227_v5  ;;  %v844_v13 = vadd.f32 %v255_v56, %v228_v33  ;;  %v846_v15 = vadd.f32 %v255_v56, %v229_v37  ;;  %v848_v21 = vadd.f32 %v255_v56, %v230_v41 }
 0x1c2   :  { %v850_v0 = vadd.f32 %v255_v56, %v231_v42  ;;  %v852_v2 = vadd.f32 %v255_v56, %v232_v18  ;;  %v854_v4 = vadd.f32 %v255_v56, %v233_v20  ;;  %v856_v31 = vadd.f32 %v255_v56, %v234_v28 }
 0x1c3   :  { %v858_v35 = vadd.f32 %v255_v56, %v235_v46  ;;  %v860_v39 = vadd.f32 %v255_v56, %v236_v48  ;;  %v862_v43 = vadd.f32 %v255_v56, %v237_v50  ;;  %v864_v47 = vadd.f32 %v255_v56, %v238_v52 }
 0x1c4   :  { %v866_v51 = vadd.f32 %v255_v56, %v239_v17  ;;  %v868_v49 = vadd.f32 %v255_v56, %v240_v30  ;;  %v870_v55 = vadd.f32 %v255_v56, %v241_v1  ;;  %v872_v44 = vadd.f32 %v255_v56, %v242_v32 }
 0x1c5   :  { %v874_v59 = vadd.f32 %v255_v56, %v243_v54  ;;  %v876_v53 = vadd.f32 %v255_v56, %v244_v25  ;;  %v878_v62 = vadd.f32 %v255_v56, %v245_v34  ;;  %v880_v57 = vadd.f32 %v255_v56, %v246_v6 }
 0x1c6   :  { %v882_v3 = vadd.f32 %v255_v56, %v247_v36  ;;  %v884_v22 = vadd.f32 %v255_v56, %v248_v8  ;;  %vm289_vm0 = vcmp.ge.f32.partialorder %v826_v10, 0.0  ;;  %vm290_vm1 = vcmp.ge.f32.partialorder %v828_v60, 0.0 }
 0x1c7   :  { %vm291_vm2 = vcmp.ge.f32.partialorder %v830_v9, 0.0  ;;  %vm292_vm3 = vcmp.ge.f32.partialorder %v832_v12, 0.0  ;;  %vm293_vm4 = vcmp.ge.f32.partialorder %v834_v40, 0.0  ;;  %vm294_vm5 = vcmp.ge.f32.partialorder %v836_v14, 0.0 }
 0x1c8   :  { %vm295_vm6 = vcmp.ge.f32.partialorder %v838_v45, 0.0  ;;  %vm296_vm7 = vcmp.ge.f32.partialorder %v840_v16, 0.0  ;;  %vm297_vm8 = vcmp.ge.f32.partialorder %v842_v11, 0.0  ;;  %v896_v7 = vadd.f32 %v255_v56, %v249_v58 }
 0x1c9   :  { %v321_v61 = vmul.f32 0.2, %v826_v10  ;;  %v322_v19 = vmul.f32 0.2, %v828_v60  ;;  %v323_v24 = vmul.f32 0.2, %v830_v9  ;;  %v905_v23 = vadd.f32 %v255_v56, %v250_v38 }
 0x1ca   :  { %vm304_vm15 = vcmp.ge.f32.partialorder %v856_v31, 0.0  ;;  %vm305_vm10 = vcmp.ge.f32.partialorder %v858_v35, 0.0  ;;  %v324_v63 = vmul.f32 0.2, %v832_v12  ;;  %v325_v27 = vmul.f32 0.2, %v834_v40 }
 0x1cb   :  { %v326_v26 = vmul.f32 0.2, %v836_v14  ;;  %vm310_vm14 = vcmp.ge.f32.partialorder %v868_v49, 0.0  ;;  %v327_v29 = vmul.f32 0.2, %v838_v45  ;;  %v353_v37 = vsel %vm289_vm0, %v826_v10, %v321_v61 }
 0x1cc   :  { %v328_v5 = vmul.f32 0.2, %v840_v16  ;;  %v329_v33 = vmul.f32 0.2, %v842_v11  ;;  %vm311_vm11 = vcmp.ge.f32.partialorder %v870_v55, 0.0  ;;  %v354_v20 = vsel %vm290_vm1, %v828_v60, %v322_v19  ;;  %385 = vst [vmem:[%s1149_s3] sm:$0xff] %v353_v37 }
 0x1cd   :  { %v330_v41 = vmul.f32 0.2, %v844_v13  ;;  %v331_v42 = vmul.f32 0.2, %v846_v15  ;;  %v332_v18 = vmul.f32 0.2, %v848_v21  ;;  %v355_v50 = vsel %vm291_vm2, %v830_v9, %v323_v24 }
 0x1ce   :  { %vm315_vm0 = vcmp.ge.f32.partialorder %v878_v62, 0.0  ;;  %vm316_vm12 = vcmp.ge.f32.partialorder %v880_v57, 0.0  ;;  %vm318_vm13 = vcmp.ge.f32.partialorder %v884_v22, 0.0  ;;  %v333_v28 = vmul.f32 0.2, %v850_v0  ;;  %386 = vst [vmem:[%s1149_s3 + $0x8] sm:$0xff] %v354_v20 }
 0x1cf   :  { %v334_v46 = vmul.f32 0.2, %v852_v2  ;;  %v335_v48 = vmul.f32 0.2, %v854_v4  ;;  %vm319_vm1 = vcmp.ge.f32.partialorder %v896_v7, 0.0  ;;  %vm320_vm9 = vcmp.ge.f32.partialorder %v905_v23, 0.0 }
 0x1d0   :  { %v336_v52 = vmul.f32 0.2, %v856_v31  ;;  %v337_v17 = vmul.f32 0.2, %v858_v35  ;;  %v338_v30 = vmul.f32 0.2, %v860_v39  ;;  %v356_v1 = vsel %vm292_vm3, %v832_v12, %v324_v63 }
 0x1d1   :  { %387 = vst [vmem:[%s1149_s3 + $0x10] sm:$0xff] %v355_v50  ;;  %v339_v32 = vmul.f32 0.2, %v862_v43  ;;  %v340_v54 = vmul.f32 0.2, %v864_v47  ;;  %v357_v34 = vsel %vm293_vm4, %v834_v40, %v325_v27  ;;  %388 = vst [vmem:[%s1149_s3 + $0x18] sm:$0xff] %v356_v1  ;;  %v358_v8 = vsel %vm294_vm5, %v836_v14, %v326_v26 }
 0x1d2   :  { %v341_v25 = vmul.f32 0.2, %v866_v51  ;;  %v342_v6 = vmul.f32 0.2, %v868_v49  ;;  %v343_v56 = vmul.f32 0.2, %v870_v55  ;;  %v359_v60 = vsel %vm295_vm6, %v838_v45, %v327_v29 }
 0x1d3   :  { %v344_v36 = vmul.f32 0.2, %v872_v44  ;;  %389 = vst [vmem:[%s1149_s3 + $0x20] sm:$0xff] %v357_v34  ;;  %v345_v58 = vmul.f32 0.2, %v874_v59  ;;  %390 = vst [vmem:[%s1149_s3 + $0x28] sm:$0xff] %v358_v8  ;;  %v360_v14 = vsel %vm296_vm7, %v840_v16, %v328_v5  ;;  %v361_v19 = vsel %vm297_vm8, %v842_v11, %v329_v33 }
 0x1d4   :  { %v346_v38 = vmul.f32 0.2, %v876_v53  ;;  %v347_v10 = vmul.f32 0.2, %v878_v62  ;;  %v348_v9 = vmul.f32 0.2, %v880_v57 }
 0x1d5   :  { %v349_v12 = vmul.f32 0.2, %v882_v3  ;;  %v350_v40 = vmul.f32 0.2, %v884_v22  ;;  %391 = vst [vmem:[%s1149_s3 + $0x30] sm:$0xff] %v359_v60  ;;  %vm1150_vm2 = vcmp.ge.f32.partialorder %v844_v13, 0.0 }
 0x1d6   :  { %v351_v45 = vmul.f32 0.2, %v896_v7  ;;  %v352_v61 = vmul.f32 0.2, %v905_v23  ;;  %v362_v24 = vsel %vm1150_vm2, %v844_v13, %v330_v41  ;;  %392 = vst [vmem:[%s1149_s3 + $0x38] sm:$0xff] %v360_v14  ;;  %vm1151_vm3 = vcmp.ge.f32.partialorder %v846_v15, 0.0 }
 0x1d7   :  { %v363_v16 = vsel %vm1151_vm3, %v846_v15, %v331_v42  ;;  %vm1152_vm4 = vcmp.ge.f32.partialorder %v848_v21, 0.0  ;;  %vm1153_vm5 = vcmp.ge.f32.partialorder %v850_v0, 0.0  ;;  %vm1154_vm6 = vcmp.ge.f32.partialorder %v852_v2, 0.0  ;;  %393 = vst [vmem:[%s1149_s3 + $0x40] sm:$0xff] %v361_v19  ;;  %394 = vst [vmem:[%s1149_s3 + $0x48] sm:$0xff] %v362_v24 }
 0x1d8   :  { %v364_v63 = vsel %vm1152_vm4, %v848_v21, %v332_v18  ;;  %v365_v11 = vsel %vm1153_vm5, %v850_v0, %v333_v28  ;;  %v366_v13 = vsel %vm1154_vm6, %v852_v2, %v334_v46  ;;  %vm1155_vm7 = vcmp.ge.f32.partialorder %v854_v4, 0.0  ;;  %395 = vst [vmem:[%s1149_s3 + $0x50] sm:$0xff] %v363_v16 }
 0x1d9   :  { %v367_v15 = vsel %vm1155_vm7, %v854_v4, %v335_v48  ;;  %v368_v21 = vsel %vm304_vm15, %v856_v31, %v336_v52  ;;  %v369_v0 = vsel %vm305_vm10, %v858_v35, %v337_v17  ;;  %vm1156_vm8 = vcmp.ge.f32.partialorder %v860_v39, 0.0  ;;  %396 = vst [vmem:[%s1149_s3 + $0x58] sm:$0xff] %v364_v63  ;;  %397 = vst [vmem:[%s1149_s3 + $0x60] sm:$0xff] %v365_v11 }
 0x1da   :  { %v370_v2 = vsel %vm1156_vm8, %v860_v39, %v338_v30  ;;  %398 = vst [vmem:[%s1149_s3 + $0x68] sm:$0xff] %v366_v13  ;;  %vm1157_vm10 = vcmp.ge.f32.partialorder %v862_v43, 0.0  ;;  %vm1158_vm15 = vcmp.ge.f32.partialorder %v864_v47, 0.0  ;;  %vm1159_vm2 = vcmp.ge.f32.partialorder %v866_v51, 0.0  ;;  %399 = vst [vmem:[%s1149_s3 + $0x70] sm:$0xff] %v367_v15 }
 0x1db   :  { %v371_v4 = vsel %vm1157_vm10, %v862_v43, %v339_v32  ;;  %v372_v31 = vsel %vm1158_vm15, %v864_v47, %v340_v54  ;;  %v373_v35 = vsel %vm1159_vm2, %v866_v51, %v341_v25  ;;  %v374_v39 = vsel %vm310_vm14, %v868_v49, %v342_v6  ;;  %400 = vst [vmem:[%s1149_s3 + $0x78] sm:$0xff] %v368_v21 }
 0x1dc   :  { %401 = vst [vmem:[%s1149_s3 + $0x80] sm:$0xff] %v369_v0  ;;  %402 = vst [vmem:[%s1149_s3 + $0x88] sm:$0xff] %v370_v2  ;;  %v375_v43 = vsel %vm311_vm11, %v870_v55, %v343_v56  ;;  %vm1160_vm14 = vcmp.ge.f32.partialorder %v872_v44, 0.0  ;;  %vm1161_vm3 = vcmp.ge.f32.partialorder %v874_v59, 0.0  ;;  %vm1162_vm4 = vcmp.ge.f32.partialorder %v876_v53, 0.0 }
 0x1dd   :  { %v376_v47 = vsel %vm1160_vm14, %v872_v44, %v344_v36  ;;  %v377_v51 = vsel %vm1161_vm3, %v874_v59, %v345_v58  ;;  %v378_v49 = vsel %vm1162_vm4, %v876_v53, %v346_v38  ;;  %403 = vst [vmem:[%s1149_s3 + $0x90] sm:$0xff] %v371_v4  ;;  %404 = vst [vmem:[%s1149_s3 + $0x98] sm:$0xff] %v372_v31  ;;  %vm1163_vm11 = vcmp.ge.f32.partialorder %v882_v3, 0.0 }
 0x1de   :  { %405 = vst [vmem:[%s1149_s3 + $0xa0] sm:$0xff] %v373_v35  ;;  %406 = vst [vmem:[%s1149_s3 + $0xa8] sm:$0xff] %v374_v39  ;;  %v379_v55 = vsel %vm315_vm0, %v878_v62, %v347_v10  ;;  %v380_v44 = vsel %vm316_vm12, %v880_v57, %v348_v9  ;;  %v381_v59 = vsel %vm1163_vm11, %v882_v3, %v349_v12 }
 0x1df   :  { %v382_v53 = vsel %vm318_vm13, %v884_v22, %v350_v40  ;;  %407 = vst [vmem:[%s1149_s3 + $0xb0] sm:$0xff] %v375_v43  ;;  %408 = vst [vmem:[%s1149_s3 + $0xb8] sm:$0xff] %v376_v47  ;;  %v383_v62 = vsel %vm319_vm1, %v896_v7, %v351_v45  ;;  %v384_v57 = vsel %vm320_vm9, %v905_v23, %v352_v61 }
 0x1e0   :  { %409 = vst [vmem:[%s1149_s3 + $0xc0] sm:$0xff] %v377_v51  ;;  %410 = vst [vmem:[%s1149_s3 + $0xc8] sm:$0xff] %v378_v49 }
 0x1e1   :  { %411 = vst [vmem:[%s1149_s3 + $0xd0] sm:$0xff] %v379_v55  ;;  %412 = vst [vmem:[%s1149_s3 + $0xd8] sm:$0xff] %v380_v44 }
 0x1e2   :  { %413 = vst [vmem:[%s1149_s3 + $0xe0] sm:$0xff] %v381_v59  ;;  %414 = vst [vmem:[%s1149_s3 + $0xe8] sm:$0xff] %v382_v53 }
 0x1e3   :  { %415 = vst [vmem:[%s1149_s3 + $0xf0] sm:$0xff] %v383_v62  ;;  %416 = vst [vmem:[%s1149_s3 + $0xf8] sm:$0xff] %v384_v57 }

// kernel: appearance_model_style_forward.27
= control target key start
LH: loop header
LB: loop body
LE: loop exit
PB: predicated region body
PF: predicated region fallthrough
CT: control target
= control target key end

     0   :  { %s755_s12 = smov 0   ;;  %s757_s13 = smov 0   ;;  %s904_s0 = inlined_call_operand.vmem [shape: bf16[8,108], index: 0, kind: input, shape index: {}]   ;;  %s905_s1 = inlined_call_operand.vmem [shape: bf16[108,8192], index: 1, kind: input, shape index: {}]   ;;  %s906_s2 = inlined_call_operand.vmem [shape: f32[8,1], index: 2, kind: input, shape index: {}]   ;;  %s907_s3 = inlined_call_operand.vmem [shape: f32[8,8192], index: 3, kind: output, shape index: {}]  }
   0x1   :  { %s759_s14 = smov 0  }
   0x2 LB: > { %s588_s15 = sadd.s32 4294967295, %s732_s14   ;;  %s772_s16 = sadd.s32 1, %s732_s14   ;;  %s732_s14 = sphi %s759_s14, %s910_s14   ;;  %s728_s13 = sphi %s757_s13, %s909_s13   ;;  %s724_s12 = sphi %s755_s12, %s908_s12  }
   0x3   : > { %s38_s17 = ssub.s32 %s732_s14, %s772_s16  ;;  %s41_s18 = sadd.s32 1, %s728_s13 }
   0x4   : > { %p39_p0 = scmp.eq.s32.totalorder %s38_s17, 0  ;;  %p48_p1 = scmp.ne.s32.totalorder %s728_s13, %s724_s12 }
   0x5   : > { %p49_p2 = scmp.eq.s32.totalorder %s732_s14, 0  ;;  %p591_p4 = scmp.ge.s32.totalorder %s732_s14, 16 }
   0x6   : > { %s781_s19 = scalar_select %p39_p0, %s728_s13, %s41_s18  }
   0x7   : > { %p50_p3 = por %p49_p2, %p48_p1  ;;  %127 = sbr.rel (%p591_p4) target bundleno = 32 (0x20), region = 24 }
   0xe   : > { %130 = sbr.rel (!%p50_p3) target bundleno = 32 (0x20), region = 28  ;;  %s132_s20 = sand.u32 (%p50_p3), 1, %s728_s13  }
   0xf   : > { %s631_s21 = sshll.u32 (%p50_p3), %s732_s14, 4  ;;  %s632_s22 = smul.u32 (%p50_p3), 224, %s132_s20 }
  0x10   : > { %s789_s25 = scalar_lea.vmem (%p50_p3), %s905_s1, %s631_s21 }
  0x11   : > { %v150_v0 = vld [vmem:[%s789_s25] sm:$0xff] (%p50_p3)  ;;  %v152_v1 = vld [vmem:[%s789_s25 + $0x8] sm:$0xff] (%p50_p3)  ;;  %s797_s26 = scalar_lea.vmem (%p50_p3), [#allocation2], %s632_s22 }
  0x12   : > { %v154_v2 = vld [vmem:[%s789_s25 + $0x100] sm:$0xff] (%p50_p3)  ;;  %v156_v3 = vld [vmem:[%s789_s25 + $0x108] sm:$0xff] (%p50_p3)  ;;  %151 = vst [vmem:[%s797_s26] sm:$0xff] (%p50_p3), %v150_v0  ;;  %153 = vst [vmem:[%s797_s26 + $0x8] sm:$0xff] (%p50_p3), %v152_v1 }
  0x13   : > { %v158_v4 = vld [vmem:[%s789_s25 + $0x200] sm:$0xff] (%p50_p3)  ;;  %v160_v5 = vld [vmem:[%s789_s25 + $0x208] sm:$0xff] (%p50_p3)  ;;  %155 = vst [vmem:[%s797_s26 + $0x10] sm:$0xff] (%p50_p3), %v154_v2  ;;  %157 = vst [vmem:[%s797_s26 + $0x18] sm:$0xff] (%p50_p3), %v156_v3 }
  0x14   : > { %159 = vst [vmem:[%s797_s26 + $0x20] sm:$0xff] (%p50_p3), %v158_v4  ;;  %161 = vst [vmem:[%s797_s26 + $0x28] sm:$0xff] (%p50_p3), %v160_v5  ;;  %v162_v6 = vld [vmem:[%s789_s25 + $0x300] sm:$0xff] (%p50_p3)  ;;  %v164_v7 = vld [vmem:[%s789_s25 + $0x308] sm:$0xff] (%p50_p3) }
  0x15   : > { %v166_v8 = vld [vmem:[%s789_s25 + $0x400] sm:$0xff]  ;;  %163 = vst [vmem:[%s797_s26 + $0x30] sm:$0xff] %v162_v6  ;;  %165 = vst [vmem:[%s797_s26 + $0x38] sm:$0xff] %v164_v7  ;;  %v168_v9 = vld [vmem:[%s789_s25 + $0x408] sm:$0xff] }
  0x16   : > { %167 = vst [vmem:[%s797_s26 + $0x40] sm:$0xff] %v166_v8  ;;  %v170_v10 = vld [vmem:[%s789_s25 + $0x500] sm:$0xff]  ;;  %v172_v11 = vld [vmem:[%s789_s25 + $0x508] sm:$0xff]  ;;  %169 = vst [vmem:[%s797_s26 + $0x48] sm:$0xff] %v168_v9 }
  0x17   : > { %171 = vst [vmem:[%s797_s26 + $0x50] sm:$0xff] %v170_v10  ;;  %173 = vst [vmem:[%s797_s26 + $0x58] sm:$0xff] %v172_v11  ;;  %v174_v12 = vld [vmem:[%s789_s25 + $0x600] sm:$0xff]  ;;  %v176_v13 = vld [vmem:[%s789_s25 + $0x608] sm:$0xff] }
  0x18   : > { %v178_v14 = vld [vmem:[%s789_s25 + $0x700] sm:$0xff]  ;;  %175 = vst [vmem:[%s797_s26 + $0x60] sm:$0xff] %v174_v12  ;;  %177 = vst [vmem:[%s797_s26 + $0x68] sm:$0xff] %v176_v13  ;;  %v180_v15 = vld [vmem:[%s789_s25 + $0x708] sm:$0xff] }
  0x19   : > { %179 = vst [vmem:[%s797_s26 + $0x70] sm:$0xff] %v178_v14  ;;  %v182_v16 = vld [vmem:[%s789_s25 + $0x800] sm:$0xff]  ;;  %v184_v17 = vld [vmem:[%s789_s25 + $0x808] sm:$0xff]  ;;  %181 = vst [vmem:[%s797_s26 + $0x78] sm:$0xff] %v180_v15 }
  0x1a   : > { %183 = vst [vmem:[%s797_s26 + $0x80] sm:$0xff] %v182_v16  ;;  %185 = vst [vmem:[%s797_s26 + $0x88] sm:$0xff] %v184_v17  ;;  %v186_v18 = vld [vmem:[%s789_s25 + $0x900] sm:$0xff]  ;;  %v188_v19 = vld [vmem:[%s789_s25 + $0x908] sm:$0xff] }
  0x1b   : > { %v190_v20 = vld [vmem:[%s789_s25 + $0xa00] sm:$0xff]  ;;  %187 = vst [vmem:[%s797_s26 + $0x90] sm:$0xff] %v186_v18  ;;  %189 = vst [vmem:[%s797_s26 + $0x98] sm:$0xff] %v188_v19  ;;  %v192_v21 = vld [vmem:[%s789_s25 + $0xa08] sm:$0xff] }
  0x1c   : > { %191 = vst [vmem:[%s797_s26 + $0xa0] sm:$0xff] %v190_v20  ;;  %v194_v22 = vld [vmem:[%s789_s25 + $0xb00] sm:$0xff]  ;;  %v196_v23 = vld [vmem:[%s789_s25 + $0xb08] sm:$0xff]  ;;  %193 = vst [vmem:[%s797_s26 + $0xa8] sm:$0xff] %v192_v21 }
  0x1d   : > { %195 = vst [vmem:[%s797_s26 + $0xb0] sm:$0xff] %v194_v22  ;;  %197 = vst [vmem:[%s797_s26 + $0xb8] sm:$0xff] %v196_v23  ;;  %v198_v24 = vld [vmem:[%s789_s25 + $0xc00] sm:$0xff]  ;;  %v200_v25 = vld [vmem:[%s789_s25 + $0xc08] sm:$0xff] }
  0x1e   : > { %v202_v26 = vld [vmem:[%s789_s25 + $0xd00] sm:$0xff]  ;;  %199 = vst [vmem:[%s797_s26 + $0xc0] sm:$0xff] %v198_v24  ;;  %201 = vst [vmem:[%s797_s26 + $0xc8] sm:$0xff] %v200_v25  ;;  %v204_v27 = vld [vmem:[%s789_s25 + $0xd08] sm:$0xff] }
  0x1f   : > { %203 = vst [vmem:[%s797_s26 + $0xd0] sm:$0xff] %v202_v26  ;;  %205 = vst [vmem:[%s797_s26 + $0xd8] sm:$0xff] %v204_v27 }
  0x20 PF: > { %p594_p5 = scmp.ge.s32.totalorder %s732_s14, 1  ;;  %p210_p6 = scmp.lt.s32.totalorder %s732_s14, 17 }
  0x22   : > { %p211_p7 = pnand %p594_p5, %p210_p6 }
  0x23   : > { %s217_s27 = sand.u32 (!%p211_p7), 1, %s724_s12   ;;  %v734_v28 = vmov (!%p211_p7), 0   ;;  %v277_v29 = vld [vmem:[%s906_s2] sm:$0xff] (!%p211_p7)  ;;  %vm423_vm0 = vcmask (!%p211_p7), 1045504   ;;  %vm419_vm1 = vcmask (!%p211_p7), 883712   ;;  %s595_s7 = sshll.u32 (!%p211_p7), %s588_s15, 2 }
  0x24   : > { %214 = sbr.rel (%p211_p7) target bundleno = 298 (0x12a), region = 51  ;;  %468 = vmatprep.mubr.bf16.mxu0 (!%p211_p7), %v734_v28  ;;  %509 = vmatprep.mubr.bf16.mxu1 (!%p211_p7), %v734_v28  ;;  %v248_v60 = vld [vmem:[%s904_s0] sm:$0xf] (!%p211_p7)  ;;  %p242_p8 = scmp.lt.s32.totalorder (!%p211_p7), %s595_s7, 63 }
  0x25   : > { %s633_s28 = smul.u32 (!%p211_p7), 224, %s217_s27  ;;  %659 = vset.pattern.permute.xlu0 (!%p211_p7), %v734_v28 }
  0x26   : > { %280 = vperm.xlu0 (!%p211_p7), %659, %v277_v29  }
  0x27   : > { %s855_s4 = scalar_lea.vmem (!%p211_p7), [#allocation2], %s633_s28 }
  0x28   : > { %v660_v30 = vld [vmem:[%s855_s4 + $0x4] ss:$16 sps:$4 sm:$0xff] (!%p211_p7)   ;;  %v662_v31 = vld [vmem:[%s855_s4 + $0xc] ss:$16 sps:$4 sm:$0xff] (!%p211_p7)   ;;  %v664_v32 = vld [vmem:[%s855_s4] ss:$16 sps:$4 sm:$0xff] (!%p211_p7)  }
  0x29   : > { %436 = vmatprep.subr.bf16.mxu0 (!%p211_p7), %v660_v30  ;;  %v665_v33 = vld [vmem:[%s855_s4 + $0x8] ss:$16 sps:$4 sm:$0xff] (!%p211_p7)   ;;  %477 = vmatprep.subr.bf16.mxu1 (!%p211_p7), %v662_v31  ;;  %v666_v34 = vld [vmem:[%s855_s4 + $0x24] ss:$16 sps:$4 sm:$0xff] (!%p211_p7)   ;;  %v668_v35 = vld [vmem:[%s855_s4 + $0x2c] ss:$16 sps:$4 sm:$0xff] (!%p211_p7)  }
  0x2a   : > { %437 = vmatpush1.bf16.msra.mxu0 (!%p211_p7), %v664_v32  ;;  %478 = vmatpush1.bf16.msra.mxu1 (!%p211_p7), %v665_v33  ;;  %v670_v36 = vld [vmem:[%s855_s4 + $0x20] ss:$16 sps:$4 sm:$0xff] (!%p211_p7)   ;;  %v671_v37 = vld [vmem:[%s855_s4 + $0x28] ss:$16 sps:$4 sm:$0xff] (!%p211_p7)   ;;  %v672_v38 = vld [vmem:[%s855_s4 + $0x44] ss:$16 sps:$4 sm:$0xff] (!%p211_p7)  }
  0x2b   : > { %438 = vmatprep.subr.bf16.mxu0 %v666_v34  ;;  %479 = vmatprep.subr.bf16.mxu1 %v668_v35  ;;  %v674_v39 = vld [vmem:[%s855_s4 + $0x4c] ss:$16 sps:$4 sm:$0xff]   ;;  %v676_v40 = vld [vmem:[%s855_s4 + $0x40] ss:$16 sps:$4 sm:$0xff]   ;;  %v677_v41 = vld [vmem:[%s855_s4 + $0x48] ss:$16 sps:$4 sm:$0xff]  }
  0x2c   : > { %v678_v42 = vld [vmem:[%s855_s4 + $0x64] ss:$16 sps:$4 sm:$0xff]   ;;  %v680_v43 = vld [vmem:[%s855_s4 + $0x6c] ss:$16 sps:$4 sm:$0xff]   ;;  %v682_v44 = vld [vmem:[%s855_s4 + $0x60] ss:$16 sps:$4 sm:$0xff]  }
  0x2d   : > { %v683_v45 = vld [vmem:[%s855_s4 + $0x68] ss:$16 sps:$4 sm:$0xff]   ;;  %v684_v46 = vld [vmem:[%s855_s4 + $0x84] ss:$16 sps:$4 sm:$0xff]   ;;  %v686_v47 = vld [vmem:[%s855_s4 + $0x8c] ss:$16 sps:$4 sm:$0xff]  }
  0x2e   : > { %439 = vmatpush1.bf16.msra.mxu0 %v670_v36  ;;  %480 = vmatpush1.bf16.msra.mxu1 %v671_v37  ;;  %v688_v48 = vld [vmem:[%s855_s4 + $0x80] ss:$16 sps:$4 sm:$0xff]   ;;  %v689_v49 = vld [vmem:[%s855_s4 + $0x88] ss:$16 sps:$4 sm:$0xff]   ;;  %v690_v50 = vld [vmem:[%s855_s4 + $0xa4] ss:$16 sps:$4 sm:$0xff]  }
  0x2f   : > { %440 = vmatprep.subr.bf16.mxu0 %v672_v38  ;;  %481 = vmatprep.subr.bf16.mxu1 %v674_v39  ;;  %v692_v51 = vld [vmem:[%s855_s4 + $0xac] ss:$16 sps:$4 sm:$0xff]   ;;  %v694_v52 = vld [vmem:[%s855_s4 + $0xa0] ss:$16 sps:$4 sm:$0xff]   ;;  %v695_v53 = vld [vmem:[%s855_s4 + $0xa8] ss:$16 sps:$4 sm:$0xff]  }
  0x30   : > { %v696_v54 = vld [vmem:[%s855_s4 + $0xc4] ss:$16 sps:$4 sm:$0x3f]   ;;  %v698_v55 = vld [vmem:[%s855_s4 + $0xcc] ss:$16 sps:$4 sm:$0x3f]  }
  0x31   : > { %v700_v56 = vld [vmem:[%s855_s4 + $0xc0] ss:$16 sps:$4 sm:$0x3f]   ;;  %v701_v57 = vld [vmem:[%s855_s4 + $0xc8] ss:$16 sps:$4 sm:$0x3f]  }
  0x32   : > { %441 = vmatpush1.bf16.msra.mxu0 %v676_v40  ;;  %482 = vmatpush1.bf16.msra.mxu1 %v677_v41  ;;  %v425_v58 = vsel %vm423_vm0, %v700_v56, 0  ;;  %v431_v59 = vsel %vm423_vm0, %v701_v57, 0  ;;  %s912_s7 = smov (!%p242_p8, %s595_s7), 63 }
  0x33   : > { %442 = vmatprep.subr.bf16.mxu0 %v678_v42  ;;  %483 = vmatprep.subr.bf16.mxu1 %v680_v43  ;;  %s596_s8 = sshll.u32 %s912_s7, 3 }
  0x34   : > { %s245_s11 = scalar_lea.vmem %s907_s3, %s596_s8 }
  0x36   : > { %443 = vmatpush1.bf16.msra.mxu0 %v682_v44  ;;  %484 = vmatpush1.bf16.msra.mxu1 %v683_v45 }
  0x37   : > { %444 = vmatprep.subr.bf16.mxu0 %v684_v46  ;;  %485 = vmatprep.subr.bf16.mxu1 %v686_v47 }
  0x3a   : > { %445 = vmatpush1.bf16.msra.mxu0 %v688_v48  ;;  %486 = vmatpush1.bf16.msra.mxu1 %v689_v49 }
  0x3b   : > { %446 = vmatprep.subr.bf16.mxu0 %v690_v50  ;;  %487 = vmatprep.subr.bf16.mxu1 %v692_v51 }
  0x3e   : > { %447 = vmatpush1.bf16.msra.mxu0 %v694_v52  ;;  %488 = vmatpush1.bf16.msra.mxu1 %v695_v53 }
  0x3f   : > { %625 = vmatprep.subr.msk.bf16.mxu0 %vm423_vm0, %v696_v54  ;;  %627 = vmatprep.subr.msk.bf16.mxu1 %vm423_vm0, %v698_v55 }
  0x42   : > { %449 = vmatpush1.bf16.msra.mxu0 %v425_v58  ;;  %490 = vmatpush1.bf16.msra.mxu1 %v431_v59 }
  0x45   : > { %626 = vmatmul.mubr.msk.bf16.vlgmr.msra.gmra.mrb[0].mxu0 %vm419_vm1, %v248_v60  ;;  %628 = vmatmul.mubr.msk.bf16.vlgmr.msra.gmra.mrb[0].mxu1 %vm419_vm1, %v248_v60 }
  0xa5   : > { %v281_v61 = vpop.permute.xlu0 %280 }
 0x118   : > { %v470_v62 = vpop.f32.mrb[0].mxu0  ;;  %v511_v63 = vpop.f32.mrb[0].mxu1 }
 0x119   : > { %v471_v0 = vadd.f32 %v470_v62, %v281_v61  ;;  %v512_v1 = vadd.f32 %v511_v63, %v281_v61  ;;  %v472_v2 = vpop.f32.mrb[1].mxu0  ;;  %v513_v3 = vpop.f32.mrb[1].mxu1 }
 0x11a   : > { %v473_v4 = vadd.f32 %v472_v2, %v281_v61  ;;  %v514_v5 = vadd.f32 %v513_v3, %v281_v61  ;;  %v474_v6 = vpop.f32.mrb[2].mxu0  ;;  %v515_v7 = vpop.f32.mrb[2].mxu1 }
 0x11b   : > { %702 = vtanh.f32 %v471_v0  ;;  %v475_v8 = vpop.f32.mrb[3].mxu0  ;;  %v516_v9 = vpop.f32.mrb[3].mxu1 }
 0x11c   : > { %704 = vtanh.f32 %v512_v1 }
 0x11d   : > { %706 = vtanh.f32 %v473_v4 }
 0x11e   : > { %708 = vtanh.f32 %v514_v5 }
 0x125   : > { %v703_v10 = vpop.eup %702 }
 0x126   : > { %v705_v11 = vpop.eup %704  ;;  %522 = vst [vmem:[%s245_s11] sm:$0xff] %v703_v10 }
 0x127   : > { %v707_v12 = vpop.eup %706  ;;  %524 = vst [vmem:[%s245_s11 + $0x10] sm:$0xff] %v705_v11 }
 0x128   : > { %v709_v13 = vpop.eup %708  ;;  %523 = vst [vmem:[%s245_s11 + $0x8] sm:$0xff] %v707_v12 }
 0x129   : > { %525 = vst [vmem:[%s245_s11 + $0x18] sm:$0xff] %v709_v13 }
 0x12a PF: > { %p10_p9 = scmp.ge.s32.totalorder %s772_s16, 18   ;;  %s908_s12 = smov %s728_s13 }
 0x12b   : > { %s909_s13 = smov %s781_s19  ;;  %s910_s14 = smov %s772_s16 }
 0x12c   :  { %12 = sbr.rel (!%p10_p9) target bundleno = 2 (0x2), region = 90 }

</bundles_post_ra>
